<compile_context>
chip_gen: v5e
topology: v5e:2x2
jax: 0.10.0
libtpu: 0.0.40
codegen_flags: <defaults>
</compile_context>

<pallas_src>
import functools

import jax
import jax.numpy as jnp
from jax.experimental import pallas as pl
from jax.experimental.pallas import tpu as pltpu

LABEL_DIM = 5
C_IN = 2
C_OUT = 2
K = 5
L_OUT = 516
L_IN = L_OUT + K - 1  # 520


def _round_up(x, m):
    return ((x + m - 1) // m) * m


def complex_net_kernel(x_ref, wlm_ref, wlt_ref, bl_ref, cwb_ref, o_ref,
                       h_ref, conv_ref, *, strip, n_strips):
    # x_ref:    (C_IN, TM, L_IN)   bf16  channel-major activation tile (VMEM)
    # wlm_ref:  (L_IN, L_IN)       bf16  LearnableMatrix weight        (VMEM)
    # wlt_ref:  (L_OUT, LABEL_DIM) bf16  linear weight, transposed     (VMEM)
    # bl_ref:   (1, LABEL_DIM)     f32   linear bias                   (VMEM)
    # cwb_ref:  (C_OUT, C_IN*K+1)  f32   conv weights + bias           (SMEM scalars)
    # o_ref:    (C_OUT, TM, LABEL_DIM)  f32
    # h_ref:    (C_IN*TM, L_IN)    f32   scratch: ReLU(x @ W_lm)
    # conv_ref: (C_OUT*TM, L_OUT)  f32   scratch: ReLU(conv + bias)
    tm = x_ref.shape[1]

    # ---- LearnableMatrix + ReLU: ONE fused (C_IN*TM, 520) @ (520, 520) bf16 MXU matmul.
    x2 = x_ref[...].reshape(C_IN * tm, L_IN)   # layout-free: TM is a multiple of 16
    h = jnp.dot(x2, wlm_ref[...], preferred_element_type=jnp.float32)
    h_ref[...] = jnp.maximum(h, 0.0)

    # ---- Conv1d(in=2, out=2, k=5, 'valid') + bias + ReLU, strip-wise so the FMA chain
    #      stays vreg-resident.  Shifted slices are shared across output channels.
    #      (The Sequential's second ReLU is ReLU∘ReLU == ReLU and is dropped.)
    @pl.loop(0, n_strips)
    def _conv_strip(s):
        row = pl.multiple_of(s * strip, strip)
        accs = [jnp.zeros((strip, L_OUT), jnp.float32) for _ in range(C_OUT)]
        for ic in range(C_IN):
            h_s = h_ref[pl.ds(ic * tm + row, strip), :]          # (strip, 520) f32
            for k in range(K):
                sl = h_s[:, k:k + L_OUT]                         # (strip, 516)
                for o in range(C_OUT):
                    accs[o] = accs[o] + cwb_ref[o, ic * K + k] * sl
        for o in range(C_OUT):
            a = jnp.maximum(accs[o] + cwb_ref[o, C_IN * K], 0.0)  # bias + ReLU
            conv_ref[pl.ds(o * tm + row, strip), :] = a

    # ---- Linear(516 -> 5): ONE (C_OUT*TM, 516) @ (516, 5) bf16 MXU matmul.
    conv_bf = conv_ref[...].astype(jnp.bfloat16)
    logits = jnp.dot(conv_bf, wlt_ref[...],
                     preferred_element_type=jnp.float32) + bl_ref[...]

    # ---- Softmax(dim=-1): exact division keeps row sums == 1 to f32 accuracy.
    m = jnp.max(logits, axis=-1, keepdims=True)
    e = jnp.exp(logits - m)
    p = e / jnp.sum(e, axis=-1, keepdims=True)

    for o in range(C_OUT):
        o_ref[o] = p[o * tm:(o + 1) * tm].astype(o_ref.dtype)


def complex_net_forward(x, wlm, conv_w, conv_b, lin_w, lin_b, *, tm=512, strip=16):
    """x: (N, C_IN, L_IN) fp32; params in PyTorch layouts:
       wlm (L_IN, L_IN), conv_w (C_OUT, C_IN, K), conv_b (C_OUT,),
       lin_w (LABEL_DIM, 516), lin_b (LABEL_DIM,).
       Returns (N, C_OUT, LABEL_DIM) softmax probabilities."""
    assert tm % 16 == 0, "tile must be a multiple of 16 (bf16 sublane packing)"
    assert strip % 8 == 0, "strip must be a multiple of the 8-sublane granule"
    n = x.shape[0]
    # >= 2 grid steps whenever possible (v7x: keeps both TensorCores busy).
    tm_eff = min(tm, _round_up(pl.cdiv(n, 2), 16))
    n_pad = _round_up(n, tm_eff)
    strip_eff = strip if tm_eff % strip == 0 else 8
    n_strips = tm_eff // strip_eff

    # Channel-major bf16 activation layout (C_IN, N_pad, L_IN).
    x_cm = jnp.transpose(x.astype(jnp.bfloat16), (1, 0, 2))
    if n_pad != n:
        x_cm = jnp.pad(x_cm, ((0, 0), (0, n_pad - n), (0, 0)))

    # Conv weights+bias packed for SMEM scalar reads: row o = [w[o,0,:], w[o,1,:], b[o]].
    cwb = jnp.concatenate(
        [conv_w.reshape(C_OUT, C_IN * K), conv_b.reshape(C_OUT, 1)], axis=1
    ).astype(jnp.float32)                                     # (2, 11)
    wlm_b = wlm.astype(jnp.bfloat16)                          # (520, 520)
    wlt = lin_w.T.astype(jnp.bfloat16)                        # (516, 5)
    bl = lin_b.reshape(1, LABEL_DIM).astype(jnp.float32)      # (1, 5)

    grid = (n_pad // tm_eff,)

    flops = int(2 * C_IN * n_pad * L_IN * L_IN
                + 2 * C_OUT * C_IN * K * n_pad * L_OUT
                + 2 * C_OUT * n_pad * L_OUT * LABEL_DIM)
    transcendentals = int(n_pad * C_OUT * LABEL_DIM)
    bytes_accessed = int(2 * C_IN * n_pad * L_IN                       # bf16 activations
                         + 2 * (L_IN * L_IN + L_OUT * LABEL_DIM)       # bf16 weights
                         + 4 * (LABEL_DIM + C_OUT * (C_IN * K + 1))
                         + 4 * C_OUT * n_pad * LABEL_DIM)

    kernel = functools.partial(complex_net_kernel, strip=strip_eff, n_strips=n_strips)

    out_cm = pl.pallas_call(
        kernel,
        out_shape=jax.ShapeDtypeStruct((C_OUT, n_pad, LABEL_DIM), jnp.float32),
        grid=grid,
        in_specs=[
            pl.BlockSpec((C_IN, tm_eff, L_IN), lambda i: (0, i, 0)),
            pl.BlockSpec((L_IN, L_IN), lambda i: (0, 0)),
            pl.BlockSpec((L_OUT, LABEL_DIM), lambda i: (0, 0)),
            pl.BlockSpec((1, LABEL_DIM), lambda i: (0, 0)),
            pl.BlockSpec(memory_space=pltpu.MemorySpace.SMEM),
        ],
        out_specs=pl.BlockSpec((C_OUT, tm_eff, LABEL_DIM), lambda i: (0, i, 0)),
        scratch_shapes=[
            pltpu.VMEM((C_IN * tm_eff, L_IN), jnp.float32),
            pltpu.VMEM((C_OUT * tm_eff, L_OUT), jnp.float32),
        ],
        compiler_params=pltpu.CompilerParams(
            dimension_semantics=("parallel",),
            allow_input_fusion=[True, False, False, False, False]),
        cost_estimate=pl.CostEstimate(flops=flops,
                                      transcendentals=transcendentals,
                                      bytes_accessed=bytes_accessed),
    )(x_cm, wlm_b, wlt, bl, cwb)

    # (C_OUT, N_pad, D) -> (N, C_OUT, D)
    return jnp.transpose(out_cm, (1, 0, 2))[:n]


def _reference_forward(x, wlm, conv_w, conv_b, lin_w, lin_b,
                       matmul_dtype=jnp.float32):
    """Pure-JAX reference mirroring the PyTorch forward.  matmul_dtype=bfloat16
    reproduces the kernel's MXU precision for a tight structural check."""
    h = jnp.maximum(
        jnp.einsum('ncl,lm->ncm', x.astype(matmul_dtype), wlm.astype(matmul_dtype),
                   preferred_element_type=jnp.float32), 0.0)
    patches = jnp.stack([h[:, :, k:k + L_OUT] for k in range(K)], axis=2)  # (N,C_IN,K,L_OUT)
    conv = jnp.einsum('oik,nikl->nol', conv_w, patches) + conv_b[None, :, None]
    conv = jnp.maximum(conv, 0.0)   # second ReLU of the Sequential is a no-op
    logits = jnp.einsum('nol,dl->nod', conv.astype(matmul_dtype),
                        lin_w.astype(matmul_dtype),
                        preferred_element_type=jnp.float32) + lin_b[None, None, :]
    return jax.nn.softmax(logits, axis=-1)


if __name__ == "__main__":
    key = jax.random.PRNGKey(0)
    k_x, k_wlm, k_cw, k_cb, k_lw, k_lb = jax.random.split(key, 6)

    # Deterministic synthetic parameters (module __init__ gives only shapes).
    N = 44
    x = jax.random.normal(k_x, (N, C_IN, L_IN), dtype=jnp.float32)
    wlm = jax.random.normal(k_wlm, (L_IN, L_IN), dtype=jnp.float32) * 0.05
    conv_w = jax.random.normal(k_cw, (C_OUT, C_IN, K), dtype=jnp.float32) * 0.3
    conv_b = jax.random.normal(k_cb, (C_OUT,), dtype=jnp.float32) * 0.1
    lin_w = jax.random.normal(k_lw, (LABEL_DIM, L_OUT), dtype=jnp.float32) * 0.05
    lin_b = jax.random.normal(k_lb, (LABEL_DIM,), dtype=jnp.float32) * 0.1

    # tm=16 / strip=8 at this small N exercises a 3-step grid, batch padding and a
    # multi-strip conv loop; production batches use the defaults (tm=512, strip=16).
    out = complex_net_forward(x, wlm, conv_w, conv_b, lin_w, lin_b, tm=16, strip=8)
    out = jax.block_until_ready(out)
    assert out.shape == (N, C_OUT, LABEL_DIM)

    # Tight check vs a reference that mirrors the kernel's bf16 MXU feed.
    ref_bf16 = _reference_forward(x, wlm, conv_w, conv_b, lin_w, lin_b,
                                  matmul_dtype=jnp.bfloat16)
    assert jnp.allclose(out, ref_bf16, rtol=1e-2, atol=2e-3), \
        "mismatch vs bf16-matched reference"

    # Loose check vs the full-f32 reference (tolerance for the bf16 MXU feed).
    ref_f32 = _reference_forward(x, wlm, conv_w, conv_b, lin_w, lin_b)
    assert jnp.allclose(out, ref_f32, rtol=5e-2, atol=3e-2), \
        "mismatch vs f32 reference"

    assert jnp.allclose(jnp.sum(out, axis=-1), 1.0, atol=1e-5), \
        "softmax rows must sum to 1"

    print("KERNEL_OK")
</pallas_src>

<mosaic_0001>
module attributes {stable_mosaic.version = 11 : i64} {
  func.func @complex_net_kernel(%arg0: i32, %arg1: memref<2x16x520xbf16, #tpu.memory_space<vmem>>, %arg2: memref<520x520xbf16, #tpu.memory_space<vmem>>, %arg3: memref<516x5xbf16, #tpu.memory_space<vmem>>, %arg4: memref<1x5xf32, #tpu.memory_space<vmem>>, %arg5: memref<2x11xf32, #tpu.memory_space<smem>>, %arg6: memref<2x16x5xf32, #tpu.memory_space<vmem>>, %arg7: memref<32x520xf32, #tpu.memory_space<vmem>>, %arg8: memref<32x516xf32, #tpu.memory_space<vmem>>) attributes {dimension_semantics = [#tpu.dimension_semantics<parallel>], iteration_bounds = array<i64: 3>, scalar_prefetch = 0 : i64, scratch_operands = 2 : i64, tpu.core_type = #tpu.core_type<tc>, window_params = [{transform_indices = @transform_0, window_bounds = array<i64: 2, 16, 520>}, {pipeline_mode = #tpu.pipeline_mode<synchronous>, transform_indices = @transform_1, window_bounds = array<i64: 520, 520>}, {pipeline_mode = #tpu.pipeline_mode<synchronous>, transform_indices = @transform_2, window_bounds = array<i64: 516, 5>}, {pipeline_mode = #tpu.pipeline_mode<synchronous>, transform_indices = @transform_3, window_bounds = array<i64: 1, 5>}, {transform_indices = @transform_4, window_bounds = array<i64: 2, 11>}, {transform_indices = @transform_5, window_bounds = array<i64: 2, 16, 5>}]} {
    %c0 = arith.constant 0 : index
    %c0_0 = arith.constant 0 : index
    %c0_1 = arith.constant 0 : index
    %0 = vector.load %arg1[%c0, %c0_0, %c0_1] : memref<2x16x520xbf16, #tpu.memory_space<vmem>>, vector<2x16x520xbf16>
    %1 = vector.shape_cast %0 : vector<2x16x520xbf16> to vector<32x520xbf16>
    %c0_2 = arith.constant 0 : index
    %c0_3 = arith.constant 0 : index
    %2 = vector.load %arg2[%c0_2, %c0_3] : memref<520x520xbf16, #tpu.memory_space<vmem>>, vector<520x520xbf16>
    %cst = arith.constant dense<0.000000e+00> : vector<32x520xf32>
    %3 = tpu.matmul %1, %2, %cst {dimension_numbers = #tpu.dot_dimension_numbers<[1], [0], [0], [1], [0, 0, 1, 1], [], []>} : vector<32x520xbf16>, vector<520x520xbf16>, vector<32x520xf32> -> vector<32x520xf32>
    %cst_4 = arith.constant 0.000000e+00 : f32
    %4 = vector.broadcast %cst_4 : f32 to vector<32x520xf32>
    %5 = arith.maximumf %3, %4 : vector<32x520xf32>
    %c0_5 = arith.constant 0 : index
    %c0_6 = arith.constant 0 : index
    %6 = vector.load %arg7[%c0_5, %c0_6] : memref<32x520xf32, #tpu.memory_space<vmem>>, vector<32x520xf32>
    tpu.vector_store %arg7[%c0_5, %c0_6], %5 {strides = array<i32>} : memref<32x520xf32, #tpu.memory_space<vmem>>, vector<32x520xf32>,
    %c0_i32 = arith.constant 0 : i32
    %c2_i32 = arith.constant 2 : i32
    %7 = arith.addi %c0_i32, %c2_i32 : i32
    %c1_i32 = arith.constant 1 : i32
    scf.for %arg9 = %c0_i32 to %7 step %c1_i32  : i32 {
      %c1_i32_22 = arith.constant 1 : i32
      %32 = arith.muli %arg9, %c1_i32_22 : i32
      %c0_i32_23 = arith.constant 0 : i32
      %33 = arith.addi %c0_i32_23, %32 : i32
      %c8_i32 = arith.constant 8 : i32
      %34 = arith.muli %33, %c8_i32 : i32
      %35 = tpu.assume_multiple %34, 8 : i32
      %cst_24 = arith.constant 0.000000e+00 : f32
      %36 = vector.broadcast %cst_24 : f32 to vector<8x516xf32>
      %cst_25 = arith.constant 0.000000e+00 : f32
      %37 = vector.broadcast %cst_25 : f32 to vector<8x516xf32>
      %c0_i32_26 = arith.constant 0 : i32
      %38 = arith.addi %c0_i32_26, %35 : i32
      %39 = arith.index_cast %38 : i32 to index
      %c0_27 = arith.constant 0 : index
      %40 = vector.load %arg7[%39, %c0_27] : memref<32x520xf32, #tpu.memory_space<vmem>>, vector<8x520xf32>
      %41 = vector.extract_strided_slice %40 {offsets = [0, 0], sizes = [8, 516], strides = [1, 1]} : vector<8x520xf32> to vector<8x516xf32>
      %c0_28 = arith.constant 0 : index
      %c0_29 = arith.constant 0 : index
      %42 = memref.load %arg5[%c0_28, %c0_29] : memref<2x11xf32, #tpu.memory_space<smem>>
      %43 = vector.broadcast %42 : f32 to vector<8x516xf32>
      %44 = arith.mulf %43, %41 : vector<8x516xf32>
      %45 = arith.addf %36, %44 : vector<8x516xf32>
      %c1_30 = arith.constant 1 : index
      %c0_31 = arith.constant 0 : index
      %46 = memref.load %arg5[%c1_30, %c0_31] : memref<2x11xf32, #tpu.memory_space<smem>>
      %47 = vector.broadcast %46 : f32 to vector<8x516xf32>
      %48 = arith.mulf %47, %41 : vector<8x516xf32>
      %49 = arith.addf %37, %48 : vector<8x516xf32>
      %50 = vector.extract_strided_slice %40 {offsets = [0, 1], sizes = [8, 516], strides = [1, 1]} : vector<8x520xf32> to vector<8x516xf32>
      %c0_32 = arith.constant 0 : index
      %c1_33 = arith.constant 1 : index
      %51 = memref.load %arg5[%c0_32, %c1_33] : memref<2x11xf32, #tpu.memory_space<smem>>
      %52 = vector.broadcast %51 : f32 to vector<8x516xf32>
      %53 = arith.mulf %52, %50 : vector<8x516xf32>
      %54 = arith.addf %45, %53 : vector<8x516xf32>
      %c1_34 = arith.constant 1 : index
      %c1_35 = arith.constant 1 : index
      %55 = memref.load %arg5[%c1_34, %c1_35] : memref<2x11xf32, #tpu.memory_space<smem>>
      %56 = vector.broadcast %55 : f32 to vector<8x516xf32>
      %57 = arith.mulf %56, %50 : vector<8x516xf32>
      %58 = arith.addf %49, %57 : vector<8x516xf32>
      %59 = vector.extract_strided_slice %40 {offsets = [0, 2], sizes = [8, 516], strides = [1, 1]} : vector<8x520xf32> to vector<8x516xf32>
      %c0_36 = arith.constant 0 : index
      %c2 = arith.constant 2 : index
      %60 = memref.load %arg5[%c0_36, %c2] : memref<2x11xf32, #tpu.memory_space<smem>>
      %61 = vector.broadcast %60 : f32 to vector<8x516xf32>
      %62 = arith.mulf %61, %59 : vector<8x516xf32>
      %63 = arith.addf %54, %62 : vector<8x516xf32>
      %c1_37 = arith.constant 1 : index
      %c2_38 = arith.constant 2 : index
      %64 = memref.load %arg5[%c1_37, %c2_38] : memref<2x11xf32, #tpu.memory_space<smem>>
      %65 = vector.broadcast %64 : f32 to vector<8x516xf32>
      %66 = arith.mulf %65, %59 : vector<8x516xf32>
      %67 = arith.addf %58, %66 : vector<8x516xf32>
      %68 = vector.extract_strided_slice %40 {offsets = [0, 3], sizes = [8, 516], strides = [1, 1]} : vector<8x520xf32> to vector<8x516xf32>
      %c0_39 = arith.constant 0 : index
      %c3 = arith.constant 3 : index
      %69 = memref.load %arg5[%c0_39, %c3] : memref<2x11xf32, #tpu.memory_space<smem>>
      %70 = vector.broadcast %69 : f32 to vector<8x516xf32>
      %71 = arith.mulf %70, %68 : vector<8x516xf32>
      %72 = arith.addf %63, %71 : vector<8x516xf32>
      %c1_40 = arith.constant 1 : index
      %c3_41 = arith.constant 3 : index
      %73 = memref.load %arg5[%c1_40, %c3_41] : memref<2x11xf32, #tpu.memory_space<smem>>
      %74 = vector.broadcast %73 : f32 to vector<8x516xf32>
      %75 = arith.mulf %74, %68 : vector<8x516xf32>
      %76 = arith.addf %67, %75 : vector<8x516xf32>
      %77 = vector.extract_strided_slice %40 {offsets = [0, 4], sizes = [8, 516], strides = [1, 1]} : vector<8x520xf32> to vector<8x516xf32>
      %c0_42 = arith.constant 0 : index
      %c4 = arith.constant 4 : index
      %78 = memref.load %arg5[%c0_42, %c4] : memref<2x11xf32, #tpu.memory_space<smem>>
      %79 = vector.broadcast %78 : f32 to vector<8x516xf32>
      %80 = arith.mulf %79, %77 : vector<8x516xf32>
      %81 = arith.addf %72, %80 : vector<8x516xf32>
      %c1_43 = arith.constant 1 : index
      %c4_44 = arith.constant 4 : index
      %82 = memref.load %arg5[%c1_43, %c4_44] : memref<2x11xf32, #tpu.memory_space<smem>>
      %83 = vector.broadcast %82 : f32 to vector<8x516xf32>
      %84 = arith.mulf %83, %77 : vector<8x516xf32>
      %85 = arith.addf %76, %84 : vector<8x516xf32>
      %c16_i32 = arith.constant 16 : i32
      %86 = arith.addi %c16_i32, %35 : i32
      %87 = arith.index_cast %86 : i32 to index
      %c0_45 = arith.constant 0 : index
      %88 = vector.load %arg7[%87, %c0_45] : memref<32x520xf32, #tpu.memory_space<vmem>>, vector<8x520xf32>
      %89 = vector.extract_strided_slice %88 {offsets = [0, 0], sizes = [8, 516], strides = [1, 1]} : vector<8x520xf32> to vector<8x516xf32>
      %c0_46 = arith.constant 0 : index
      %c5 = arith.constant 5 : index
      %90 = memref.load %arg5[%c0_46, %c5] : memref<2x11xf32, #tpu.memory_space<smem>>
      %91 = vector.broadcast %90 : f32 to vector<8x516xf32>
      %92 = arith.mulf %91, %89 : vector<8x516xf32>
      %93 = arith.addf %81, %92 : vector<8x516xf32>
      %c1_47 = arith.constant 1 : index
      %c5_48 = arith.constant 5 : index
      %94 = memref.load %arg5[%c1_47, %c5_48] : memref<2x11xf32, #tpu.memory_space<smem>>
      %95 = vector.broadcast %94 : f32 to vector<8x516xf32>
      %96 = arith.mulf %95, %89 : vector<8x516xf32>
      %97 = arith.addf %85, %96 : vector<8x516xf32>
      %98 = vector.extract_strided_slice %88 {offsets = [0, 1], sizes = [8, 516], strides = [1, 1]} : vector<8x520xf32> to vector<8x516xf32>
      %c0_49 = arith.constant 0 : index
      %c6 = arith.constant 6 : index
      %99 = memref.load %arg5[%c0_49, %c6] : memref<2x11xf32, #tpu.memory_space<smem>>
      %100 = vector.broadcast %99 : f32 to vector<8x516xf32>
      %101 = arith.mulf %100, %98 : vector<8x516xf32>
      %102 = arith.addf %93, %101 : vector<8x516xf32>
      %c1_50 = arith.constant 1 : index
      %c6_51 = arith.constant 6 : index
      %103 = memref.load %arg5[%c1_50, %c6_51] : memref<2x11xf32, #tpu.memory_space<smem>>
      %104 = vector.broadcast %103 : f32 to vector<8x516xf32>
      %105 = arith.mulf %104, %98 : vector<8x516xf32>
      %106 = arith.addf %97, %105 : vector<8x516xf32>
      %107 = vector.extract_strided_slice %88 {offsets = [0, 2], sizes = [8, 516], strides = [1, 1]} : vector<8x520xf32> to vector<8x516xf32>
      %c0_52 = arith.constant 0 : index
      %c7 = arith.constant 7 : index
      %108 = memref.load %arg5[%c0_52, %c7] : memref<2x11xf32, #tpu.memory_space<smem>>
      %109 = vector.broadcast %108 : f32 to vector<8x516xf32>
      %110 = arith.mulf %109, %107 : vector<8x516xf32>
      %111 = arith.addf %102, %110 : vector<8x516xf32>
      %c1_53 = arith.constant 1 : index
      %c7_54 = arith.constant 7 : index
      %112 = memref.load %arg5[%c1_53, %c7_54] : memref<2x11xf32, #tpu.memory_space<smem>>
      %113 = vector.broadcast %112 : f32 to vector<8x516xf32>
      %114 = arith.mulf %113, %107 : vector<8x516xf32>
      %115 = arith.addf %106, %114 : vector<8x516xf32>
      %116 = vector.extract_strided_slice %88 {offsets = [0, 3], sizes = [8, 516], strides = [1, 1]} : vector<8x520xf32> to vector<8x516xf32>
      %c0_55 = arith.constant 0 : index
      %c8 = arith.constant 8 : index
      %117 = memref.load %arg5[%c0_55, %c8] : memref<2x11xf32, #tpu.memory_space<smem>>
      %118 = vector.broadcast %117 : f32 to vector<8x516xf32>
      %119 = arith.mulf %118, %116 : vector<8x516xf32>
      %120 = arith.addf %111, %119 : vector<8x516xf32>
      %c1_56 = arith.constant 1 : index
      %c8_57 = arith.constant 8 : index
      %121 = memref.load %arg5[%c1_56, %c8_57] : memref<2x11xf32, #tpu.memory_space<smem>>
      %122 = vector.broadcast %121 : f32 to vector<8x516xf32>
      %123 = arith.mulf %122, %116 : vector<8x516xf32>
      %124 = arith.addf %115, %123 : vector<8x516xf32>
      %125 = vector.extract_strided_slice %88 {offsets = [0, 4], sizes = [8, 516], strides = [1, 1]} : vector<8x520xf32> to vector<8x516xf32>
      %c0_58 = arith.constant 0 : index
      %c9 = arith.constant 9 : index
      %126 = memref.load %arg5[%c0_58, %c9] : memref<2x11xf32, #tpu.memory_space<smem>>
      %127 = vector.broadcast %126 : f32 to vector<8x516xf32>
      %128 = arith.mulf %127, %125 : vector<8x516xf32>
      %129 = arith.addf %120, %128 : vector<8x516xf32>
      %c1_59 = arith.constant 1 : index
      %c9_60 = arith.constant 9 : index
      %130 = memref.load %arg5[%c1_59, %c9_60] : memref<2x11xf32, #tpu.memory_space<smem>>
      %131 = vector.broadcast %130 : f32 to vector<8x516xf32>
      %132 = arith.mulf %131, %125 : vector<8x516xf32>
      %133 = arith.addf %124, %132 : vector<8x516xf32>
      %c0_61 = arith.constant 0 : index
      %c10 = arith.constant 10 : index
      %134 = memref.load %arg5[%c0_61, %c10] : memref<2x11xf32, #tpu.memory_space<smem>>
      %135 = vector.broadcast %134 : f32 to vector<8x516xf32>
      %136 = arith.addf %129, %135 : vector<8x516xf32>
      %cst_62 = arith.constant 0.000000e+00 : f32
      %137 = vector.broadcast %cst_62 : f32 to vector<8x516xf32>
      %138 = arith.maximumf %136, %137 : vector<8x516xf32>
      %c0_i32_63 = arith.constant 0 : i32
      %139 = arith.addi %c0_i32_63, %35 : i32
      %140 = arith.index_cast %139 : i32 to index
      %c0_64 = arith.constant 0 : index
      %141 = vector.load %arg8[%140, %c0_64] : memref<32x516xf32, #tpu.memory_space<vmem>>, vector<8x516xf32>
      tpu.vector_store %arg8[%140, %c0_64], %138 {strides = array<i32>} : memref<32x516xf32, #tpu.memory_space<vmem>>, vector<8x516xf32>,
      %c1_65 = arith.constant 1 : index
      %c10_66 = arith.constant 10 : index
      %142 = memref.load %arg5[%c1_65, %c10_66] : memref<2x11xf32, #tpu.memory_space<smem>>
      %143 = vector.broadcast %142 : f32 to vector<8x516xf32>
      %144 = arith.addf %133, %143 : vector<8x516xf32>
      %cst_67 = arith.constant 0.000000e+00 : f32
      %145 = vector.broadcast %cst_67 : f32 to vector<8x516xf32>
      %146 = arith.maximumf %144, %145 : vector<8x516xf32>
      %c16_i32_68 = arith.constant 16 : i32
      %147 = arith.addi %c16_i32_68, %35 : i32
      %148 = arith.index_cast %147 : i32 to index
      %c0_69 = arith.constant 0 : index
      %149 = vector.load %arg8[%148, %c0_69] : memref<32x516xf32, #tpu.memory_space<vmem>>, vector<8x516xf32>
      tpu.vector_store %arg8[%148, %c0_69], %146 {strides = array<i32>} : memref<32x516xf32, #tpu.memory_space<vmem>>, vector<8x516xf32>,
    }
    %c2_i32_7 = arith.constant 2 : i32
    %c0_8 = arith.constant 0 : index
    %c0_9 = arith.constant 0 : index
    %8 = vector.load %arg8[%c0_8, %c0_9] : memref<32x516xf32, #tpu.memory_space<vmem>>, vector<32x516xf32>
    %9 = arith.truncf %8 : vector<32x516xf32> to vector<32x516xbf16>
    %c0_10 = arith.constant 0 : index
    %c0_11 = arith.constant 0 : index
    %10 = vector.load %arg3[%c0_10, %c0_11] : memref<516x5xbf16, #tpu.memory_space<vmem>>, vector<516x5xbf16>
    %cst_12 = arith.constant dense<0.000000e+00> : vector<32x5xf32>
    %11 = tpu.matmul %9, %10, %cst_12 {dimension_numbers = #tpu.dot_dimension_numbers<[1], [0], [0], [1], [0, 0, 1, 1], [], []>} : vector<32x516xbf16>, vector<516x5xbf16>, vector<32x5xf32> -> vector<32x5xf32>
    %c0_13 = arith.constant 0 : index
    %c0_14 = arith.constant 0 : index
    %12 = vector.load %arg4[%c0_13, %c0_14] : memref<1x5xf32, #tpu.memory_space<vmem>>, vector<1x5xf32>
    %13 = vector.broadcast %12 : vector<1x5xf32> to vector<32x5xf32>
    %14 = arith.addf %11, %13 : vector<32x5xf32>
    %cst_15 = arith.constant dense<0xFF800000> : vector<32xf32>
    %15 = vector.multi_reduction <maximumf>, %14, %cst_15 [1] : vector<32x5xf32> to vector<32xf32>
    %16 = vector.shape_cast %15 : vector<32xf32> to vector<32x1xf32>
    %17 = vector.broadcast %16 : vector<32x1xf32> to vector<32x5xf32>
    %18 = arith.subf %14, %17 : vector<32x5xf32>
    %19 = math.exp %18 : vector<32x5xf32>
    %cst_16 = arith.constant dense<0.000000e+00> : vector<32xf32>
    %20 = vector.multi_reduction <add>, %19, %cst_16 [1] : vector<32x5xf32> to vector<32xf32>
    %21 = vector.shape_cast %20 : vector<32xf32> to vector<32x1xf32>
    %22 = vector.broadcast %21 : vector<32x1xf32> to vector<32x5xf32>
    %23 = arith.divf %19, %22 : vector<32x5xf32>
    %24 = vector.extract_strided_slice %23 {offsets = [0, 0], sizes = [16, 5], strides = [1, 1]} : vector<32x5xf32> to vector<16x5xf32>
    %c0_17 = arith.constant 0 : index
    %c0_18 = arith.constant 0 : index
    %c0_19 = arith.constant 0 : index
    %25 = vector.load %arg6[%c0_17, %c0_18, %c0_19] : memref<2x16x5xf32, #tpu.memory_space<vmem>>, vector<1x16x5xf32>
    %26 = vector.shape_cast %25 : vector<1x16x5xf32> to vector<16x5xf32>
    %27 = vector.shape_cast %24 : vector<16x5xf32> to vector<1x16x5xf32>
    tpu.vector_store %arg6[%c0_17, %c0_18, %c0_19], %27 {strides = array<i32>} : memref<2x16x5xf32, #tpu.memory_space<vmem>>, vector<1x16x5xf32>,
    %28 = vector.extract_strided_slice %23 {offsets = [16, 0], sizes = [16, 5], strides = [1, 1]} : vector<32x5xf32> to vector<16x5xf32>
    %c1 = arith.constant 1 : index
    %c0_20 = arith.constant 0 : index
    %c0_21 = arith.constant 0 : index
    %29 = vector.load %arg6[%c1, %c0_20, %c0_21] : memref<2x16x5xf32, #tpu.memory_space<vmem>>, vector<1x16x5xf32>
    %30 = vector.shape_cast %29 : vector<1x16x5xf32> to vector<16x5xf32>
    %31 = vector.shape_cast %28 : vector<16x5xf32> to vector<1x16x5xf32>
    tpu.vector_store %arg6[%c1, %c0_20, %c0_21], %31 {strides = array<i32>} : memref<2x16x5xf32, #tpu.memory_space<vmem>>, vector<1x16x5xf32>,
    return
  }
  func.func @transform_0(%arg0: i32) -> (i32, i32, i32) {
    %c0_i32 = arith.constant 0 : i32
    %c0_i32_0 = arith.constant 0 : i32
    %c0_i32_1 = arith.constant 0 : i32
    return %c0_i32, %arg0, %c0_i32_0 : i32, i32, i32
  }
  func.func @transform_1(%arg0: i32) -> (i32, i32) {
    %c0_i32 = arith.constant 0 : i32
    %c0_i32_0 = arith.constant 0 : i32
    %c0_i32_1 = arith.constant 0 : i32
    return %c0_i32, %c0_i32_0 : i32, i32
  }
  func.func @transform_2(%arg0: i32) -> (i32, i32) {
    %c0_i32 = arith.constant 0 : i32
    %c0_i32_0 = arith.constant 0 : i32
    %c0_i32_1 = arith.constant 0 : i32
    return %c0_i32, %c0_i32_0 : i32, i32
  }
  func.func @transform_3(%arg0: i32) -> (i32, i32) {
    %c0_i32 = arith.constant 0 : i32
    %c0_i32_0 = arith.constant 0 : i32
    %c0_i32_1 = arith.constant 0 : i32
    return %c0_i32, %c0_i32_0 : i32, i32
  }
  func.func @transform_4(%arg0: i32) -> (i32, i32) {
    %c0_i32 = arith.constant 0 : i32
    %c0_i32_0 = arith.constant 0 : i32
    %c0_i32_1 = arith.constant 0 : i32
    return %c0_i32, %c0_i32_0 : i32, i32
  }
  func.func @transform_5(%arg0: i32) -> (i32, i32, i32) {
    %c0_i32 = arith.constant 0 : i32
    %c0_i32_0 = arith.constant 0 : i32
    %c0_i32_1 = arith.constant 0 : i32
    return %c0_i32, %arg0, %c0_i32_0 : i32, i32, i32
  }
}

</mosaic_0001>

<bundles_post_ra>
// kernel: tpu_custom_call.1
= control target key start
LH: loop header
LB: loop body
LE: loop exit
PB: predicated region body
PF: predicated region fallthrough
CT: control target
= control target key end

     0   :  { %10 = vsyncpa [#allocation6], 0  ;;  %s5329_s0 = inlined_call_operand.vmem [shape: bf16[2,48,520], index: 0, kind: input, shape index: {}]   ;;  %s5330_s1 = inlined_call_operand.hbm [shape: bf16[520,520], index: 1, kind: input, shape index: {}]   ;;  %s5331_s2 = inlined_call_operand.vmem [shape: bf16[516,5], index: 2, kind: input, shape index: {}]   ;;  %s5332_s3 = inlined_call_operand.vmem [shape: f32[1,5], index: 3, kind: input, shape index: {}]   ;;  %s5333_s4 = inlined_call_operand.vmem [shape: f32[2,11], index: 4, kind: input, shape index: {}]   ;;  %s5334_s5 = inlined_call_operand.vmem [shape: f32[2,48,5], index: 5, kind: output, shape index: {}]  }
   0x1   :  { %11 = vsyncpa [#allocation7], 0  ;;  %s4587_s18 = smov 0   ;;  %s4589_s19 = smov 0  }
   0x2   :  { %s4591_s20 = smov 0  }
   0x3 LB: > { %s4603_s21 = sadd.s32 4294967295, %s4543_s20   ;;  %s4606_s22 = sadd.s32 1, %s4543_s20   ;;  %s4543_s20 = sphi %s4591_s20, %s5340_s20   ;;  %s4539_s19 = sphi %s4589_s19, %s5339_s19   ;;  %s4535_s18 = sphi %s4587_s18, %s5338_s18  }
   0x4   : > { %s21_s23 = ssub.s32 %s4543_s20, %s4606_s22  ;;  %s24_s24 = sadd.s32 1, %s4539_s19 }
   0x5   : > { %p22_p0 = scmp.eq.s32.totalorder %s21_s23, 0  ;;  %p31_p1 = scmp.ne.s32.totalorder %s4539_s19, %s4535_s18 }
   0x6   : > { %p32_p2 = scmp.eq.s32.totalorder %s4543_s20, 0  ;;  %p145_p3 = scmp.eq.s32.totalorder %s4603_s21, 2 }
   0x7   : > { %s4616_s25 = scalar_select %p22_p0, %s4539_s19, %s24_s24  }
   0x8   : > { %p4618_p4 = por %p32_p2, %p31_p1  ;;  %p4622_p5 = por %p145_p3, %p31_p1 }
   0x9   : > { %p3297_p6 = scmp.ge.s32.totalorder %s4543_s20, 1  ;;  %p158_p7 = scmp.lt.s32.totalorder %s4543_s20, 4 }
   0xa   : > { %p4403_p8 = scmp.eq.s32.totalorder %s4603_s21, 0  ;;  %s169_s6 = sshll.u32 %s5330_s1, 4  ;;  %s170_s6 = int_to_ptr.hbm [resolvable:$true] %s169_s6 }
   0xb   : > { %p4629_p9 = pnand %p3297_p6, %p158_p7  ;;  %s4549_s7 = smov [#allocation5]  }
   0xc   : > { %s171_s8 = sshll.u32 %s4549_s7, 4  ;;  %s190_s11 = sshll.u32 %s5333_s4, 4  ;;  %s172_s8 = int_to_ptr.vmem [resolvable:$true] %s171_s8  ;;  %s191_s11 = int_to_ptr.vmem [resolvable:$true] %s190_s11 }
   0xd   : > { %p4396_p10 = pneg %p4629_p9  ;;  %s4550_s12 = smov 320  }
   0xe   : > { %s4551_s13 = smov 20   ;;  %s4552_s14 = smov [#allocation8]  }
   0xf   : > { %p4397_p11 = pnand %p4403_p8, %p4396_p10  ;;  %p3300_p12 = scmp.ge.s32.totalorder %s4543_s20, 3 }
  0x11   : > { %4399 = dma.hbm_to_vmem [thread:$0]  (!%p4397_p11), %s170_s6, 20800, %s172_s8, [#allocation6], %s4550_s12, %s4550_s12, %s4551_s13  }
  0x12   : > { %4402 = dma.vmem_to_smem (!%p4397_p11), %s191_s11, 32, %s4552_s14, [#allocation7]  }
  0x13   : > { %197 = sbr.rel (%p3300_p12) target bundleno = 41 (0x29), region = 32 }
  0x18   : > { %200 = sbr.rel (!%p4618_p4) target bundleno = 41 (0x29), region = 36  ;;  %s202_s15 = sand.u32 (%p4618_p4), 1, %s4539_s19  }
  0x19   : > { %s4386_s16 = smul.u32 (%p4618_p4), 40, %s4543_s20 }
  0x1a   : > { %s4385_s17 = smul.u32 (%p4618_p4), 80, %s202_s15 }
  0x1b   : > { %s208_s29 = scalar_lea.vmem (%p4618_p4), %s5329_s0, %s4386_s16 }
  0x1c   : > { %v223_v0 = vld [vmem:[%s208_s29] sm:$0xff] (%p4618_p4)  ;;  %v225_v1 = vld [vmem:[%s208_s29 + $0x8] sm:$0xff] (%p4618_p4)  ;;  %v227_v2 = vld [vmem:[%s208_s29 + $0x14] sm:$0xff] (%p4618_p4)  ;;  %s204_s30 = scalar_lea.vmem (%p4618_p4), [#allocation4], %s4385_s17 }
  0x1d   : > { %224 = vst [vmem:[%s204_s30] sm:$0xff] %v223_v0  ;;  %v229_v3 = vld [vmem:[%s208_s29 + $0x1c] sm:$0xff]  ;;  %v235_v6 = vld [vmem:[%s208_s29 + $0x8c] sm:$0xff]  ;;  %v237_v7 = vld [vmem:[%s208_s29 + $0x94] sm:$0xff] }
  0x1e   : > { %226 = vst [vmem:[%s204_s30 + $0x8] sm:$0xff] %v225_v1  ;;  %v231_v4 = vld [vmem:[%s208_s29 + $0x78] sm:$0xff]  ;;  %v233_v5 = vld [vmem:[%s208_s29 + $0x80] sm:$0xff]  ;;  %v3304_v8 = vld [vmem:[%s208_s29 + $0x10] sm:$0xf] }
  0x1f   : > { %228 = vst [vmem:[%s204_s30 + $0x14] sm:$0xff] %v227_v2  ;;  %v3306_v9 = vld [vmem:[%s208_s29 + $0x24] sm:$0xf]  ;;  %v3308_v10 = vld [vmem:[%s208_s29 + $0x88] sm:$0xf] }
  0x20   : > { %230 = vst [vmem:[%s204_s30 + $0x1c] sm:$0xff] %v229_v3  ;;  %v3310_v11 = vld [vmem:[%s208_s29 + $0x9c] sm:$0xf] }
  0x21   : > { %232 = vst [vmem:[%s204_s30 + $0x28] sm:$0xff] %v231_v4 }
  0x22   : > { %234 = vst [vmem:[%s204_s30 + $0x30] sm:$0xff] %v233_v5 }
  0x23   : > { %236 = vst [vmem:[%s204_s30 + $0x3c] sm:$0xff] %v235_v6 }
  0x24   : > { %238 = vst [vmem:[%s204_s30 + $0x44] sm:$0xff] %v237_v7 }
  0x25   : > { %3305 = vst [vmem:[%s204_s30 + $0x10] sm:$0xf] %v3304_v8 }
  0x26   : > { %3307 = vst [vmem:[%s204_s30 + $0x24] sm:$0xf] %v3306_v9 }
  0x27   : > { %3309 = vst [vmem:[%s204_s30 + $0x38] sm:$0xf] %v3308_v10 }
  0x28   : > { %3311 = vst [vmem:[%s204_s30 + $0x4c] sm:$0xf] %v3310_v11 }
  0x29 PF: > { %263 = sbr.rel (%p4629_p9) target bundleno = 1232 (0x4d0), region = 62  ;;  %s266_s20 = sand.u32 (!%p4629_p9), 1, %s4535_s18  }
  0x2a   : > { %s4387_s26 = smul.u32 (!%p4629_p9), 80, %s266_s20 }
  0x2c   : > { %s4654_s6 = scalar_lea.vmem (!%p4629_p9), [#allocation4], %s4387_s26 }
  0x2e   : > { %4526 = dma.done.wait (%p4403_p8), [#allocation6], 20800  }
  0x2f   : > { %4528 = vsyncadd (%p4403_p8), [#allocation6], 4294946496 }
  0x30   : > { %4530 = dma.done.wait (%p4403_p8), [#allocation7], 32  }
  0x31   : > { %4532 = vsyncadd (%p4403_p8), [#allocation7], 4294967264 }
  0x32   : > { %282 = sfence }
  0x33   : > { %s4664_s28 = sshll.u32 %s266_s20, 5  ;;  %v3498_v12 = vld [vmem:[#allocation5 + $0x118] sm:$0xf]  ;;  %v4216_v13 = vld [vmem:[#allocation5 + $0x128] sm:$0xf0]  ;;  %vm1415_vm0 = vcmask 1043456  }
  0x34   : > { %v3499_v14 = vor.u32 %v4216_v13, %v3498_v12  ;;  %v3658_v15 = vld [vmem:[#allocation5 + $0x258] sm:$0xf]  ;;  %v4256_v16 = vld [vmem:[#allocation5 + $0x268] sm:$0xf0]  ;;  %v3478_v23 = vld [vmem:[#allocation5 + $0xf0] sm:$0xf] }
  0x35   : > { %v3659_v17 = vor.u32 %v4256_v16, %v3658_v15  ;;  %v3818_v18 = vld [vmem:[#allocation5 + $0x398] sm:$0xf]  ;;  %v4296_v19 = vld [vmem:[#allocation5 + $0x3a8] sm:$0xf0]  ;;  %v4211_v24 = vld [vmem:[#allocation5 + $0x100] sm:$0xf0] }
  0x36   : > { %v3978_v20 = vld [vmem:[#allocation5 + $0x4d8] sm:$0xf]  ;;  %1431 = vmatpush.bf16.msra.mxu0 %v3499_v14  ;;  %v3819_v21 = vor.u32 %v4296_v19, %v3818_v18  ;;  %v4336_v22 = vld [vmem:[#allocation5 + $0x4e8] sm:$0xf0]  ;;  %v3479_v26 = vor.u32 %v4211_v24, %v3478_v23  ;;  %v3638_v27 = vld [vmem:[#allocation5 + $0x230] sm:$0xf] }
  0x37   : > { %1450 = vmatpush.bf16.msra.mxu1 %v3659_v17  ;;  %v3979_v25 = vor.u32 %v4336_v22, %v3978_v20  ;;  %v4251_v28 = vld [vmem:[#allocation5 + $0x240] sm:$0xf0]  ;;  %v3798_v29 = vld [vmem:[#allocation5 + $0x370] sm:$0xf]  ;;  %v3458_v36 = vld [vmem:[#allocation5 + $0xc8] sm:$0xf] }
  0x38   : > { %1469 = vmatpush.bf16.msra.mxu2 %v3819_v21  ;;  %v3639_v30 = vor.u32 %v4251_v28, %v3638_v27  ;;  %v4291_v31 = vld [vmem:[#allocation5 + $0x380] sm:$0xf0]  ;;  %v3958_v32 = vld [vmem:[#allocation5 + $0x4b0] sm:$0xf]  ;;  %v4206_v37 = vld [vmem:[#allocation5 + $0xd8] sm:$0xf0] }
  0x39   : > { %v4331_v33 = vld [vmem:[#allocation5 + $0x4c0] sm:$0xf0]  ;;  %1488 = vmatpush.bf16.msra.mxu3 %v3979_v25  ;;  %v3799_v34 = vor.u32 %v4291_v31, %v3798_v29  ;;  %v3618_v38 = vld [vmem:[#allocation5 + $0x208] sm:$0xf]  ;;  %v3459_v39 = vor.u32 %v4206_v37, %v3458_v36  ;;  %v4246_v40 = vld [vmem:[#allocation5 + $0x218] sm:$0xf0] }
  0x3a   : > { %v3959_v35 = vor.u32 %v4331_v33, %v3958_v32  ;;  %1432 = vmatpush.bf16.msra.mxu0 %v3479_v26  ;;  %v3778_v41 = vld [vmem:[#allocation5 + $0x348] sm:$0xf]  ;;  %v4286_v42 = vld [vmem:[#allocation5 + $0x358] sm:$0xf0]  ;;  %v3619_v43 = vor.u32 %v4246_v40, %v3618_v38  ;;  %v3438_v46 = vld [vmem:[#allocation5 + $0xa0] sm:$0xf] }
  0x3b   : > { %1451 = vmatpush.bf16.msra.mxu1 %v3639_v30  ;;  %v3938_v44 = vld [vmem:[#allocation5 + $0x488] sm:$0xf]  ;;  %v4326_v45 = vld [vmem:[#allocation5 + $0x498] sm:$0xf0]  ;;  %v3779_v47 = vor.u32 %v4286_v42, %v3778_v41  ;;  %v4201_v48 = vld [vmem:[#allocation5 + $0xb0] sm:$0xf0] }
  0x3c   : > { %1470 = vmatpush.bf16.msra.mxu2 %v3799_v34  ;;  %v3598_v49 = vld [vmem:[#allocation5 + $0x1e0] sm:$0xf]  ;;  %v4241_v50 = vld [vmem:[#allocation5 + $0x1f0] sm:$0xf0]  ;;  %v3939_v51 = vor.u32 %v4326_v45, %v3938_v44  ;;  %v3439_v54 = vor.u32 %v4201_v48, %v3438_v46  ;;  %v3418_v58 = vld [vmem:[#allocation5 + $0x78] sm:$0xf] }
  0x3d   : > { %1489 = vmatpush.bf16.msra.mxu3 %v3959_v35  ;;  %v3758_v52 = vld [vmem:[#allocation5 + $0x320] sm:$0xf]  ;;  %v4281_v53 = vld [vmem:[#allocation5 + $0x330] sm:$0xf0]  ;;  %v3599_v57 = vor.u32 %v4241_v50, %v3598_v49  ;;  %v4196_v59 = vld [vmem:[#allocation5 + $0x88] sm:$0xf0] }
  0x3e   : > { %1433 = vmatpush.bf16.msra.mxu0 %v3459_v39  ;;  %v3918_v55 = vld [vmem:[#allocation5 + $0x460] sm:$0xf]  ;;  %v4321_v56 = vld [vmem:[#allocation5 + $0x470] sm:$0xf0]  ;;  %v3759_v60 = vor.u32 %v4281_v53, %v3758_v52  ;;  %v3578_v61 = vld [vmem:[#allocation5 + $0x1b8] sm:$0xf]  ;;  %v3419_v2 = vor.u32 %v4196_v59, %v3418_v58 }
  0x3f   : > { %1452 = vmatpush.bf16.msra.mxu1 %v3619_v43  ;;  %v4236_v62 = vld [vmem:[#allocation5 + $0x1c8] sm:$0xf0]  ;;  %v3919_v63 = vor.u32 %v4321_v56, %v3918_v55  ;;  %v3738_v0 = vld [vmem:[#allocation5 + $0x2f8] sm:$0xf]  ;;  %v3398_v6 = vld [vmem:[#allocation5 + $0x50] sm:$0xf] }
  0x40   : > { %1471 = vmatpush.bf16.msra.mxu2 %v3779_v47  ;;  %v4276_v1 = vld [vmem:[#allocation5 + $0x308] sm:$0xf0]  ;;  %v3898_v3 = vld [vmem:[#allocation5 + $0x438] sm:$0xf]  ;;  %v3579_v5 = vor.u32 %v4236_v62, %v3578_v61  ;;  %v4191_v7 = vld [vmem:[#allocation5 + $0x60] sm:$0xf0] }
  0x41   : > { %1490 = vmatpush.bf16.msra.mxu3 %v3939_v51  ;;  %v4316_v4 = vld [vmem:[#allocation5 + $0x448] sm:$0xf0]  ;;  %v3739_v8 = vor.u32 %v4276_v1, %v3738_v0  ;;  %v3558_v9 = vld [vmem:[#allocation5 + $0x190] sm:$0xf]  ;;  %v4231_v10 = vld [vmem:[#allocation5 + $0x1a0] sm:$0xf0]  ;;  %v3399_v14 = vor.u32 %v4191_v7, %v3398_v6 }
  0x42   : > { %1434 = vmatpush.bf16.msra.mxu0 %v3439_v54  ;;  %v3899_v11 = vor.u32 %v4316_v4, %v3898_v3  ;;  %v3718_v12 = vld [vmem:[#allocation5 + $0x2d0] sm:$0xf]  ;;  %v4271_v13 = vld [vmem:[#allocation5 + $0x2e0] sm:$0xf0]  ;;  %v3559_v17 = vor.u32 %v4231_v10, %v3558_v9  ;;  %v3378_v18 = vld [vmem:[#allocation5 + $0x28] sm:$0xf] }
  0x43   : > { %1453 = vmatpush.bf16.msra.mxu1 %v3599_v57  ;;  %v3878_v15 = vld [vmem:[#allocation5 + $0x410] sm:$0xf]  ;;  %v4311_v16 = vld [vmem:[#allocation5 + $0x420] sm:$0xf0]  ;;  %v4186_v19 = vld [vmem:[#allocation5 + $0x38] sm:$0xf0]  ;;  %v3719_v21 = vor.u32 %v4271_v13, %v3718_v12 }
  0x44   : > { %1472 = vmatpush.bf16.msra.mxu2 %v3759_v60  ;;  %v3538_v20 = vld [vmem:[#allocation5 + $0x168] sm:$0xf]  ;;  %v4226_v22 = vld [vmem:[#allocation5 + $0x178] sm:$0xf0]  ;;  %v3879_v25 = vor.u32 %v4311_v16, %v3878_v15  ;;  %v3358_v28 = vld [vmem:[#allocation5] sm:$0xf]  ;;  %v3379_v29 = vor.u32 %v4186_v19, %v3378_v18 }
  0x45   : > { %1491 = vmatpush.bf16.msra.mxu3 %v3919_v63  ;;  %v3698_v23 = vld [vmem:[#allocation5 + $0x2a8] sm:$0xf]  ;;  %v4266_v24 = vld [vmem:[#allocation5 + $0x2b8] sm:$0xf0]  ;;  %v4181_v30 = vld [vmem:[#allocation5 + $0x10] sm:$0xf0]  ;;  %v3539_v33 = vor.u32 %v4226_v22, %v3538_v20 }
  0x46   : > { %1435 = vmatpush.bf16.msra.mxu0 %v3419_v2  ;;  %v3858_v26 = vld [vmem:[#allocation5 + $0x3e8] sm:$0xf]  ;;  %v4306_v27 = vld [vmem:[#allocation5 + $0x3f8] sm:$0xf0]  ;;  %v3518_v31 = vld [vmem:[#allocation5 + $0x140] sm:$0xf]  ;;  %v3699_v37 = vor.u32 %v4266_v24, %v3698_v23  ;;  %v3359_v47 = vor.u32 %v4181_v30, %v3358_v28 }
  0x47   : > { %1454 = vmatpush.bf16.msra.mxu1 %v3579_v5  ;;  %v4221_v32 = vld [vmem:[#allocation5 + $0x150] sm:$0xf0]  ;;  %v3678_v34 = vld [vmem:[#allocation5 + $0x280] sm:$0xf]  ;;  %v3859_v43 = vor.u32 %v4306_v27, %v3858_v26  ;;  %v4214_v45 = vld [vmem:[#allocation5 + $0x11c] sm:$0xf] }
  0x48   : > { %1473 = vmatpush.bf16.msra.mxu2 %v3739_v8  ;;  %v4261_v35 = vld [vmem:[#allocation5 + $0x290] sm:$0xf0]  ;;  %v4666_v36 = vld [vmem:[#allocation5 + $0x500] sm:$0xff]  ;;  %v3500_v46 = vld [vmem:[#allocation5 + $0x12c] sm:$0xf0]  ;;  %v3519_v52 = vor.u32 %v4221_v32, %v3518_v31  ;;  %vm1408_vm1 = vcmask 64512  }
  0x49   : > { %1492 = vmatpush.bf16.msra.mxu3 %v3899_v11  ;;  %v3838_v38 = vld [vmem:[#allocation5 + $0x3c0] sm:$0xf]  ;;  %v4301_v39 = vld [vmem:[#allocation5 + $0x3d0] sm:$0xf0]  ;;  %v1078_v42 = vunpack.c.l.b16 %v4666_v36  ;;  %v3320_v48 = vld [vmem:[%s4654_s6 + $0x14] sm:$0xf0]  ;;  %v3679_v56 = vor.u32 %v4261_v35, %v3678_v34  ;;  %v3503_v58 = vor.u32 %v4214_v45, %v3500_v46 }
  0x4a   : > { %1436 = vmatpush.bf16.msra.mxu0 %v3399_v14  ;;  %v3318_v40 = vld [vmem:[%s4654_s6] sm:$0xf]  ;;  %v4171_v41 = vld [vmem:[%s4654_s6 + $0x10] sm:$0xf0]  ;;  %v4169_v44 = vld [vmem:[%s4654_s6 + $0x4] sm:$0xf]  ;;  %v3839_v61 = vor.u32 %v4301_v39, %v3838_v38 }
  0x4b   : > { %1455 = vmatpush.bf16.msra.mxu1 %v3559_v17  ;;  %v3326_v49 = vld [vmem:[%s4654_s6 + $0x8] sm:$0xf]  ;;  %v4172_v50 = vld [vmem:[%s4654_s6 + $0x18] sm:$0xf0]  ;;  %v1243_v51 = vpack.c.b16 %v1078_v42, %v1078_v42  ;;  %v3660_v54 = vld [vmem:[#allocation5 + $0x26c] sm:$0xf0]  ;;  %v4677_v62 = vor.u32 %v4171_v41, %v3318_v40  ;;  %v4680_v2 = vor.u32 %v4169_v44, %v3320_v48 }
  0x4c   : > { %1474 = vmatpush.bf16.msra.mxu2 %v3719_v21  ;;  %v4254_v53 = vld [vmem:[#allocation5 + $0x25c] sm:$0xf]  ;;  %v3820_v60 = vld [vmem:[#allocation5 + $0x3ac] sm:$0xf0]  ;;  %v4209_v0 = vld [vmem:[#allocation5 + $0xf4] sm:$0xf]  ;;  %v4682_v4 = vor.u32 %v4172_v50, %v3326_v49 }
  0x4d   : > { %1493 = vmatpush.bf16.msra.mxu3 %v3879_v25  ;;  %v4170_v55 = vld [vmem:[%s4654_s6 + $0xc] sm:$0xf]  ;;  %v1417_v57 = vsel %vm1415_vm0, %v1243_v51, 0  ;;  %v3328_v63 = vld [vmem:[%s4654_s6 + $0x1c] sm:$0xf0]  ;;  %v3663_v3 = vor.u32 %v4254_v53, %v3660_v54  ;;  %s4784_s18 = scalar_lea.vmem [#allocation9], %s4664_s28 }
  0x4e   : > { %1437 = vmatpush.bf16.msra.mxu0 %v3379_v29  ;;  %v4294_v59 = vld [vmem:[#allocation5 + $0x39c] sm:$0xf]  ;;  %v3480_v1 = vld [vmem:[#allocation5 + $0x104] sm:$0xf0]  ;;  %v4249_v6 = vld [vmem:[#allocation5 + $0x234] sm:$0xf]  ;;  %v4684_v8 = vor.u32 %v4170_v55, %v3328_v63 }
  0x4f   : > { %1456 = vmatpush.bf16.msra.mxu1 %v3539_v33  ;;  %v3823_v5 = vor.u32 %v4294_v59, %v3820_v60  ;;  %v3640_v7 = vld [vmem:[#allocation5 + $0x244] sm:$0xf0]  ;;  %v3483_v9 = vor.u32 %v4209_v0, %v3480_v1  ;;  %v4289_v10 = vld [vmem:[#allocation5 + $0x374] sm:$0xf]  ;;  %v4204_v12 = vld [vmem:[#allocation5 + $0xcc] sm:$0xf] }
  0x50   : > { %1475 = vmatpush.bf16.msra.mxu2 %v3699_v37  ;;  %v3800_v11 = vld [vmem:[#allocation5 + $0x384] sm:$0xf0]  ;;  %v3460_v13 = vld [vmem:[#allocation5 + $0xdc] sm:$0xf0]  ;;  %v3643_v14 = vor.u32 %v4249_v6, %v3640_v7  ;;  %v4244_v16 = vld [vmem:[#allocation5 + $0x20c] sm:$0xf] }
  0x51   : > { %1494 = vmatpush.bf16.msra.mxu3 %v3859_v43  ;;  %v3803_v15 = vor.u32 %v4289_v10, %v3800_v11  ;;  %v3620_v17 = vld [vmem:[#allocation5 + $0x21c] sm:$0xf0]  ;;  %v3463_v18 = vor.u32 %v4204_v12, %v3460_v13  ;;  %v4284_v19 = vld [vmem:[#allocation5 + $0x34c] sm:$0xf]  ;;  %v4199_v21 = vld [vmem:[#allocation5 + $0xa4] sm:$0xf] }
  0x52   : > { %1438 = vmatpush.bf16.msra.mxu0 %v3359_v47  ;;  %v3780_v20 = vld [vmem:[#allocation5 + $0x35c] sm:$0xf0]  ;;  %v3440_v22 = vld [vmem:[#allocation5 + $0xb4] sm:$0xf0]  ;;  %v3623_v23 = vor.u32 %v4244_v16, %v3620_v17  ;;  %v4239_v25 = vld [vmem:[#allocation5 + $0x1e4] sm:$0xf] }
  0x53   : > { %1457 = vmatpush.bf16.msra.mxu1 %v3519_v52  ;;  %v3783_v24 = vor.u32 %v4284_v19, %v3780_v20  ;;  %v3600_v26 = vld [vmem:[#allocation5 + $0x1f4] sm:$0xf0]  ;;  %v4279_v27 = vld [vmem:[#allocation5 + $0x324] sm:$0xf]  ;;  %v3443_v28 = vor.u32 %v4199_v21, %v3440_v22  ;;  %v4176_v31 = vld [vmem:[%s4654_s6 + $0x38] sm:$0xf0] }
  0x54   : > { %1476 = vmatpush.bf16.msra.mxu2 %v3679_v56  ;;  %v3760_v29 = vld [vmem:[#allocation5 + $0x334] sm:$0xf0]  ;;  %v4174_v32 = vld [vmem:[%s4654_s6 + $0x2c] sm:$0xf]  ;;  %v3340_v33 = vld [vmem:[%s4654_s6 + $0x3c] sm:$0xf0]  ;;  %v3603_v37 = vor.u32 %v4239_v25, %v3600_v26 }
  0x55   : > { %1495 = vmatpush.bf16.msra.mxu3 %v3839_v61  ;;  %1439 = vmatmul.bf16.vlgmr.msra.gmra.mxu0 %v4677_v62  ;;  %v3338_v30 = vld [vmem:[%s4654_s6 + $0x28] sm:$0xf]  ;;  %v4194_v34 = vld [vmem:[#allocation5 + $0x7c] sm:$0xf]  ;;  %v3420_v35 = vld [vmem:[#allocation5 + $0x8c] sm:$0xf0]  ;;  %v3763_v41 = vor.u32 %v4279_v27, %v3760_v29  ;;  %v4700_v54 = vor.u32 %v4174_v32, %v3340_v33 }
  0x56   : > { %1514 = vmatpush.bf16.msrb.mxu0 %v1417_v57  ;;  %1458 = vmatmul.bf16.vlgmr.msra.gmra.mxu1 %v4680_v2  ;;  %v3346_v38 = vld [vmem:[%s4654_s6 + $0x30] sm:$0xf]  ;;  %v4177_v39 = vld [vmem:[%s4654_s6 + $0x40] sm:$0xf0]  ;;  %v4234_v40 = vld [vmem:[#allocation5 + $0x1bc] sm:$0xf]  ;;  %v3423_v45 = vor.u32 %v4194_v34, %v3420_v35  ;;  %v4697_v49 = vor.u32 %v4176_v31, %v3338_v30 }
  0x57   : > { %1526 = vmatpush.bf16.msrb.mxu1 %v3503_v58  ;;  %1477 = vmatmul.bf16.vlgmr.msra.gmra.mxu2 %v4682_v4  ;;  %v3580_v42 = vld [vmem:[#allocation5 + $0x1cc] sm:$0xf0]  ;;  %v4175_v43 = vld [vmem:[%s4654_s6 + $0x34] sm:$0xf]  ;;  %v4274_v44 = vld [vmem:[#allocation5 + $0x2fc] sm:$0xf]  ;;  %v4702_v58 = vor.u32 %v4177_v39, %v3346_v38 }
  0x58   : > { %1545 = vmatpush.bf16.msrb.mxu2 %v3663_v3  ;;  %1496 = vmatmul.bf16.vlgmr.msra.gmra.mxu3 %v4684_v8  ;;  %v3740_v46 = vld [vmem:[#allocation5 + $0x30c] sm:$0xf0]  ;;  %v4334_v47 = vld [vmem:[#allocation5 + $0x4dc] sm:$0xf]  ;;  %v3348_v50 = vld [vmem:[%s4654_s6 + $0x44] sm:$0xf0]  ;;  %v3583_v55 = vor.u32 %v4234_v40, %v3580_v42 }
  0x59   : > { %1564 = vmatpush.bf16.msrb.mxu3 %v3823_v5  ;;  %v3980_v48 = vld [vmem:[#allocation5 + $0x4ec] sm:$0xf0]  ;;  %v4189_v51 = vld [vmem:[#allocation5 + $0x54] sm:$0xf]  ;;  %v3400_v52 = vld [vmem:[#allocation5 + $0x64] sm:$0xf0]  ;;  %v3743_v59 = vor.u32 %v4274_v44, %v3740_v46  ;;  %v4704_v63 = vor.u32 %v4175_v43, %v3348_v50 }
  0x5a   : > { %v3983_v53 = vor.u32 %v4334_v47, %v3980_v48  ;;  %v4329_v56 = vld [vmem:[#allocation5 + $0x4b4] sm:$0xf]  ;;  %v3960_v57 = vld [vmem:[#allocation5 + $0x4c4] sm:$0xf0]  ;;  %v3403_v0 = vor.u32 %v4189_v51, %v3400_v52  ;;  %v4184_v5 = vld [vmem:[#allocation5 + $0x2c] sm:$0xf] }
  0x5b   : > { %1527 = vmatpush.bf16.msrb.mxu1 %v3483_v9  ;;  %v4229_v60 = vld [vmem:[#allocation5 + $0x194] sm:$0xf]  ;;  %v3560_v61 = vld [vmem:[#allocation5 + $0x1a4] sm:$0xf0]  ;;  %v3380_v6 = vld [vmem:[#allocation5 + $0x3c] sm:$0xf0]  ;;  %v3963_v7 = vor.u32 %v4329_v56, %v3960_v57 }
  0x5c   : > { %1546 = vmatpush.bf16.msrb.mxu2 %v3643_v14  ;;  %1583 = vmatpush.bf16.msra.mxu0 %v3983_v53  ;;  %v4269_v1 = vld [vmem:[#allocation5 + $0x2d4] sm:$0xf]  ;;  %v3720_v3 = vld [vmem:[#allocation5 + $0x2e4] sm:$0xf0]  ;;  %v3563_v9 = vor.u32 %v4229_v60, %v3560_v61  ;;  %v4324_v10 = vld [vmem:[#allocation5 + $0x48c] sm:$0xf]  ;;  %v3383_v16 = vor.u32 %v4184_v5, %v3380_v6 }
  0x5d   : > { %1565 = vmatpush.bf16.msrb.mxu3 %v3803_v15  ;;  %v3940_v11 = vld [vmem:[#allocation5 + $0x49c] sm:$0xf0]  ;;  %v3723_v12 = vor.u32 %v4269_v1, %v3720_v3  ;;  %v4224_v13 = vld [vmem:[#allocation5 + $0x16c] sm:$0xf]  ;;  %v1079_v15 = vunpack.c.h.b16 %v4666_v36  ;;  %v4179_v19 = vld [vmem:[#allocation5 + $0x4] sm:$0xf] }
  0x5e   : > { %v3540_v14 = vld [vmem:[#allocation5 + $0x17c] sm:$0xf0]  ;;  %v4264_v17 = vld [vmem:[#allocation5 + $0x2ac] sm:$0xf]  ;;  %v3360_v20 = vld [vmem:[#allocation5 + $0x14] sm:$0xf0]  ;;  %v3943_v21 = vor.u32 %v4324_v10, %v3940_v11 }
  0x5f   : > { %1528 = vmatpush.bf16.msrb.mxu1 %v3463_v18  ;;  %v3700_v18 = vld [vmem:[#allocation5 + $0x2bc] sm:$0xf0]  ;;  %v3543_v22 = vor.u32 %v4224_v13, %v3540_v14  ;;  %v4219_v26 = vld [vmem:[#allocation5 + $0x144] sm:$0xf]  ;;  %v3520_v36 = vld [vmem:[#allocation5 + $0x154] sm:$0xf0]  ;;  %v1244_v32 = vpack.c.b16 %v1079_v15, %v1079_v15 }
  0x60   : > { %1547 = vmatpush.bf16.msrb.mxu2 %v3623_v23  ;;  %1584 = vmatpush.bf16.msra.mxu0 %v3963_v7  ;;  %v4319_v23 = vld [vmem:[#allocation5 + $0x464] sm:$0xf]  ;;  %v3703_v25 = vor.u32 %v4264_v17, %v3700_v18  ;;  %v3680_v29 = vld [vmem:[#allocation5 + $0x294] sm:$0xf0]  ;;  %v3506_v30 = vld [vmem:[#allocation5 + $0x120] sm:$0xf] }
  0x61   : > { %1566 = vmatpush.bf16.msrb.mxu3 %v3783_v24  ;;  %v3920_v24 = vld [vmem:[#allocation5 + $0x474] sm:$0xf0]  ;;  %v4259_v27 = vld [vmem:[#allocation5 + $0x284] sm:$0xf]  ;;  %v4217_v31 = vld [vmem:[#allocation5 + $0x130] sm:$0xf0] }
  0x62   : > { %v3666_v33 = vld [vmem:[#allocation5 + $0x260] sm:$0xf]  ;;  %v4257_v34 = vld [vmem:[#allocation5 + $0x270] sm:$0xf0]  ;;  %v3923_v35 = vor.u32 %v4319_v23, %v3920_v24  ;;  %v1420_v40 = vsel %vm1415_vm0, %v1244_v32, 0  ;;  %v3507_v42 = vor.u32 %v4217_v31, %v3506_v30  ;;  %s4786_s7 = smov 0  }
  0x63   : > { %1529 = vmatpush.bf16.msrb.mxu1 %v3443_v28  ;;  %v3363_v28 = vor.u32 %v4179_v19, %v3360_v20  ;;  %v3334_v38 = vld [vmem:[%s4654_s6 + $0x10] sm:$0xf]  ;;  %v4173_v39 = vld [vmem:[%s4654_s6 + $0x20] sm:$0xf0]  ;;  %v4314_v43 = vld [vmem:[#allocation5 + $0x43c] sm:$0xf] }
  0x64   : > { %1548 = vmatpush.bf16.msrb.mxu2 %v3603_v37  ;;  %1585 = vmatpush.bf16.msra.mxu0 %v3943_v21  ;;  %v3523_v37 = vor.u32 %v4219_v26, %v3520_v36  ;;  %v3900_v44 = vld [vmem:[#allocation5 + $0x44c] sm:$0xf0]  ;;  %v4714_v46 = vor.u32 %v4173_v39, %v3334_v38  ;;  %v3486_v47 = vld [vmem:[#allocation5 + $0xf8] sm:$0xf]  ;;  %v4212_v48 = vld [vmem:[#allocation5 + $0x108] sm:$0xf0] }
  0x65   : > { %1567 = vmatpush.bf16.msrb.mxu3 %v3763_v41  ;;  %1444 = vmatmul.bf16.gmra.mxu0 %v4697_v49  ;;  %v3683_v41 = vor.u32 %v4259_v27, %v3680_v29  ;;  %v3646_v50 = vld [vmem:[#allocation5 + $0x238] sm:$0xf]  ;;  %v4252_v51 = vld [vmem:[#allocation5 + $0x248] sm:$0xf0]  ;;  %v3903_v52 = vor.u32 %v4314_v43, %v3900_v44  ;;  %v4309_v53 = vld [vmem:[#allocation5 + $0x414] sm:$0xf]  ;;  %v3487_v56 = vor.u32 %v4212_v48, %v3486_v47 }
  0x66   : > { %1463 = vmatmul.bf16.gmra.mxu1 %v4700_v54  ;;  %v3647_v57 = vor.u32 %v4252_v51, %v3646_v50  ;;  %v4207_v60 = vld [vmem:[#allocation5 + $0xe0] sm:$0xf0]  ;;  %v3986_v61 = vld [vmem:[#allocation5 + $0x4e0] sm:$0xf]  ;;  %v4337_v5 = vld [vmem:[#allocation5 + $0x4f0] sm:$0xf0] }
  0x67   : > { %1530 = vmatpush.bf16.msrb.mxu1 %v3423_v45  ;;  %1482 = vmatmul.bf16.gmra.mxu2 %v4702_v58  ;;  %v3667_v45 = vor.u32 %v4257_v34, %v3666_v33  ;;  %v4247_v1 = vld [vmem:[#allocation5 + $0x220] sm:$0xf0]  ;;  %v4304_v6 = vld [vmem:[#allocation5 + $0x3ec] sm:$0xf]  ;;  %v3860_v7 = vld [vmem:[#allocation5 + $0x3fc] sm:$0xf0] }
  0x68   : > { %1549 = vmatpush.bf16.msrb.mxu2 %v3583_v55  ;;  %1501 = vmatmul.bf16.gmra.mxu3 %v4704_v63  ;;  %v3880_v55 = vld [vmem:[#allocation5 + $0x424] sm:$0xf0]  ;;  %v3966_v11 = vld [vmem:[#allocation5 + $0x4b8] sm:$0xf]  ;;  %v4202_v14 = vld [vmem:[#allocation5 + $0xb8] sm:$0xf0]  ;;  %v3863_v18 = vor.u32 %v4304_v6, %v3860_v7 }
  0x69   : > { %1568 = vmatpush.bf16.msrb.mxu3 %v3743_v59  ;;  %1586 = vmatpush.bf16.msra.mxu0 %v3923_v35  ;;  %v3466_v59 = vld [vmem:[#allocation5 + $0xd0] sm:$0xf]  ;;  %v3883_v3 = vor.u32 %v4309_v53, %v3880_v55  ;;  %v3446_v13 = vld [vmem:[#allocation5 + $0xa8] sm:$0xf]  ;;  %v4332_v15 = vld [vmem:[#allocation5 + $0x4c8] sm:$0xf0] }
  0x6a   : > { %v3467_v10 = vor.u32 %v4207_v60, %v3466_v59  ;;  %v4242_v17 = vld [vmem:[#allocation5 + $0x1f8] sm:$0xf0]  ;;  %v3967_v19 = vor.u32 %v4332_v15, %v3966_v11  ;;  %v3946_v20 = vld [vmem:[#allocation5 + $0x490] sm:$0xf]  ;;  %v4299_v21 = vld [vmem:[#allocation5 + $0x3c4] sm:$0xf]  ;;  %v3447_v24 = vor.u32 %v4202_v14, %v3446_v13 }
  0x6b   : > { %1531 = vmatpush.bf16.msrb.mxu1 %v3403_v0  ;;  %v3626_v0 = vld [vmem:[#allocation5 + $0x210] sm:$0xf]  ;;  %v4327_v23 = vld [vmem:[#allocation5 + $0x4a0] sm:$0xf0]  ;;  %v4297_v26 = vld [vmem:[#allocation5 + $0x3b0] sm:$0xf0] }
  0x6c   : > { %1550 = vmatpush.bf16.msrb.mxu2 %v3563_v9  ;;  %v3987_v9 = vor.u32 %v4337_v5, %v3986_v61  ;;  %v3354_v27 = vld [vmem:[%s4654_s6 + $0x38] sm:$0xf]  ;;  %v4197_v29 = vld [vmem:[#allocation5 + $0x90] sm:$0xf0]  ;;  %v3947_v30 = vor.u32 %v4327_v23, %v3946_v20  ;;  %v4178_v31 = vld [vmem:[%s4654_s6 + $0x48] sm:$0xf0] }
  0x6d   : > { %1569 = vmatpush.bf16.msrb.mxu3 %v3723_v12  ;;  %1587 = vmatpush.bf16.msra.mxu0 %v3903_v52  ;;  %v3627_v12 = vor.u32 %v4247_v1, %v3626_v0  ;;  %v3586_v32 = vld [vmem:[#allocation5 + $0x1c0] sm:$0xf]  ;;  %v4237_v33 = vld [vmem:[#allocation5 + $0x1d0] sm:$0xf0]  ;;  %v3806_v38 = vld [vmem:[#allocation5 + $0x378] sm:$0xf] }
  0x6e   : > { %v4292_v39 = vld [vmem:[#allocation5 + $0x388] sm:$0xf0]  ;;  %v3566_v44 = vld [vmem:[#allocation5 + $0x198] sm:$0xf]  ;;  %v3926_v47 = vld [vmem:[#allocation5 + $0x468] sm:$0xf] }
  0x6f   : > { %1532 = vmatpush.bf16.msrb.mxu1 %v3383_v16  ;;  %v3606_v16 = vld [vmem:[#allocation5 + $0x1e8] sm:$0xf]  ;;  %v4192_v43 = vld [vmem:[#allocation5 + $0x68] sm:$0xf0]  ;;  %v4322_v48 = vld [vmem:[#allocation5 + $0x478] sm:$0xf0]  ;;  %v3807_v50 = vor.u32 %v4292_v39, %v3806_v38 }
  0x70   : > { %1551 = vmatpush.bf16.msrb.mxu2 %v3543_v22  ;;  %v3840_v22 = vld [vmem:[#allocation5 + $0x3d4] sm:$0xf0]  ;;  %v3607_v36 = vor.u32 %v4242_v17, %v3606_v16  ;;  %v3786_v52 = vld [vmem:[#allocation5 + $0x350] sm:$0xf]  ;;  %v4287_v53 = vld [vmem:[#allocation5 + $0x360] sm:$0xf0]  ;;  %v3927_v60 = vor.u32 %v4322_v48, %v3926_v47 }
  0x71   : > { %1570 = vmatpush.bf16.msrb.mxu3 %v3703_v25  ;;  %1588 = vmatpush.bf16.msra.mxu0 %v3883_v3  ;;  %v3826_v25 = vld [vmem:[#allocation5 + $0x3a0] sm:$0xf]  ;;  %v3843_v34 = vor.u32 %v4299_v21, %v3840_v22  ;;  %v3546_v59 = vld [vmem:[#allocation5 + $0x170] sm:$0xf]  ;;  %v4227_v61 = vld [vmem:[#allocation5 + $0x180] sm:$0xf0]  ;;  %v3787_v3 = vor.u32 %v4287_v53, %v3786_v52 }
  0x72   : > { %v3827_v35 = vor.u32 %v4297_v26, %v3826_v25  ;;  %v3906_v0 = vld [vmem:[#allocation5 + $0x440] sm:$0xf]  ;;  %v4317_v1 = vld [vmem:[#allocation5 + $0x450] sm:$0xf0]  ;;  %v3366_v6 = vld [vmem:[#allocation5 + $0x8] sm:$0xf] }
  0x73   : > { %1533 = vmatpush.bf16.msrb.mxu1 %v3363_v28  ;;  %v3426_v28 = vld [vmem:[#allocation5 + $0x80] sm:$0xf]  ;;  %v3766_v7 = vld [vmem:[#allocation5 + $0x328] sm:$0xf]  ;;  %v4182_v11 = vld [vmem:[#allocation5 + $0x18] sm:$0xf0]  ;;  %v3907_v13 = vor.u32 %v4317_v1, %v3906_v0 }
  0x74   : > { %1552 = vmatpush.bf16.msrb.mxu2 %v3523_v37  ;;  %v3427_v37 = vor.u32 %v4197_v29, %v3426_v28  ;;  %v4730_v14 = vld [vmem:[#allocation5 + $0x508] sm:$0xff]  ;;  %v4222_v15 = vld [vmem:[#allocation5 + $0x158] sm:$0xf0]  ;;  %v3886_v16 = vld [vmem:[#allocation5 + $0x418] sm:$0xf]  ;;  %v3367_v22 = vor.u32 %v4182_v11, %v3366_v6 }
  0x75   : > { %1571 = vmatpush.bf16.msrb.mxu3 %v3683_v41  ;;  %3996 = vmatmul.msk.bf16.vlgmr.msrb.gmra.mxu0 %vm1408_vm1, %v4714_v46  ;;  %v3587_v41 = vor.u32 %v4237_v33, %v3586_v32  ;;  %v4312_v17 = vld [vmem:[#allocation5 + $0x428] sm:$0xf0]  ;;  %v3508_v20 = vld [vmem:[#allocation5 + $0x134] sm:$0xf0]  ;;  %v3746_v23 = vld [vmem:[#allocation5 + $0x300] sm:$0xf] }
  0x76   : > { %1534 = vmatmul.bf16.vlgmr.msrb.gmra.mxu1 %v4677_v62  ;;  %1589 = vmatpush.bf16.msra.mxu0 %v3863_v18  ;;  %v1080_v18 = vunpack.c.l.b16 %v4730_v14  ;;  %v3866_v28 = vld [vmem:[#allocation5 + $0x3f0] sm:$0xf]  ;;  %v4307_v29 = vld [vmem:[#allocation5 + $0x400] sm:$0xf0]  ;;  %v3846_v39 = vld [vmem:[#allocation5 + $0x3c8] sm:$0xf] }
  0x77   : > { %1609 = vmatpush.bf16.msra.mxu1 %v1420_v40  ;;  %1553 = vmatmul.bf16.vlgmr.msrb.gmra.mxu2 %v4680_v2  ;;  %v4723_v40 = vor.u32 %v4178_v31, %v3354_v27  ;;  %v3488_v31 = vld [vmem:[#allocation5 + $0x10c] sm:$0xf0]  ;;  %v4267_v47 = vld [vmem:[#allocation5 + $0x2c0] sm:$0xf0]  ;;  %v4200_v48 = vld [vmem:[#allocation5 + $0xac] sm:$0xf] }
  0x78   : > { %1621 = vmatpush.bf16.msra.mxu2 %v3507_v42  ;;  %1572 = vmatmul.bf16.vlgmr.msrb.gmra.mxu3 %v4682_v4  ;;  %v3406_v42 = vld [vmem:[#allocation5 + $0x58] sm:$0xf]  ;;  %v1245_v25 = vpack.c.b16 %v1080_v18, %v1080_v18  ;;  %v4290_v6 = vld [vmem:[#allocation5 + $0x37c] sm:$0xf] }
  0x79   : > { %1640 = vmatpush.bf16.msra.mxu3 %v3667_v45  ;;  %v4232_v45 = vld [vmem:[#allocation5 + $0x1a8] sm:$0xf0]  ;;  %v3407_v51 = vor.u32 %v4192_v43, %v3406_v42  ;;  %v4205_v42 = vld [vmem:[#allocation5 + $0xd4] sm:$0xf]  ;;  %v3468_v43 = vld [vmem:[#allocation5 + $0xe4] sm:$0xf0] }
  0x7a   : > { %1590 = vmatpush.bf16.msra.mxu0 %v3843_v34  ;;  %v3567_v55 = vor.u32 %v4232_v45, %v3566_v44  ;;  %v1423_v33 = vsel %vm1415_vm0, %v1245_v25, 0  ;;  %v3726_v34 = vld [vmem:[#allocation5 + $0x2d8] sm:$0xf]  ;;  %v3706_v45 = vld [vmem:[#allocation5 + $0x2b0] sm:$0xf]  ;;  %v3471_v52 = vor.u32 %v4205_v42, %v3468_v43 }
  0x7b   : > { %1678 = vmatpush.bf16.msrb.mxu1 %v3987_v9  ;;  %v4282_v9 = vld [vmem:[#allocation5 + $0x338] sm:$0xf0]  ;;  %v3828_v53 = vld [vmem:[#allocation5 + $0x3b4] sm:$0xf0] }
  0x7c   : > { %1622 = vmatpush.bf16.msra.mxu2 %v3487_v56  ;;  %v3386_v56 = vld [vmem:[#allocation5 + $0x30] sm:$0xf]  ;;  %v3767_v21 = vor.u32 %v4282_v9, %v3766_v7  ;;  %v4330_v9 = vld [vmem:[#allocation5 + $0x4bc] sm:$0xf] }
  0x7d   : > { %1641 = vmatpush.bf16.msra.mxu3 %v3647_v57  ;;  %v4187_v57 = vld [vmem:[#allocation5 + $0x40] sm:$0xf0]  ;;  %v3808_v7 = vld [vmem:[#allocation5 + $0x38c] sm:$0xf0] }
  0x7e   : > { %1659 = vmatpush.bf16.msrb.mxu0 %v3827_v35  ;;  %v3387_v5 = vor.u32 %v4187_v57, %v3386_v56  ;;  %v4272_v35 = vld [vmem:[#allocation5 + $0x2e8] sm:$0xf0]  ;;  %v3988_v56 = vld [vmem:[#allocation5 + $0x4f4] sm:$0xf0]  ;;  %v3448_v57 = vld [vmem:[#allocation5 + $0xbc] sm:$0xf0] }
  0x7f   : > { %1679 = vmatpush.bf16.msrb.mxu1 %v3967_v19  ;;  %v4215_v19 = vld [vmem:[#allocation5 + $0x124] sm:$0xf]  ;;  %v3727_v44 = vor.u32 %v4272_v35, %v3726_v34  ;;  %v3451_v11 = vor.u32 %v4200_v48, %v3448_v57  ;;  %v4245_v34 = vld [vmem:[#allocation5 + $0x214] sm:$0xf]  ;;  %v3628_v35 = vld [vmem:[#allocation5 + $0x224] sm:$0xf0] }
  0x80   : > { %1623 = vmatpush.bf16.msra.mxu2 %v3467_v10  ;;  %v3547_v10 = vor.u32 %v4227_v61, %v3546_v59  ;;  %v3511_v27 = vor.u32 %v4215_v19, %v3508_v20  ;;  %v3707_v59 = vor.u32 %v4267_v47, %v3706_v45  ;;  %v4262_v61 = vld [vmem:[#allocation5 + $0x298] sm:$0xf0]  ;;  %v3788_v19 = vld [vmem:[#allocation5 + $0x364] sm:$0xf0]  ;;  %v4325_v20 = vld [vmem:[#allocation5 + $0x494] sm:$0xf]  ;;  %v3631_v43 = vor.u32 %v4245_v34, %v3628_v35 }
  0x81   : > { %1642 = vmatpush.bf16.msra.mxu3 %v3627_v12  ;;  %v3526_v12 = vld [vmem:[#allocation5 + $0x148] sm:$0xf]  ;;  %v3608_v45 = vld [vmem:[#allocation5 + $0x1fc] sm:$0xf0]  ;;  %v4275_v47 = vld [vmem:[#allocation5 + $0x304] sm:$0xf] }
  0x82   : > { %1660 = vmatpush.bf16.msrb.mxu0 %v3807_v50  ;;  %v3527_v26 = vor.u32 %v4222_v15, %v3526_v12  ;;  %v4195_v12 = vld [vmem:[#allocation5 + $0x84] sm:$0xf]  ;;  %v3811_v15 = vor.u32 %v4290_v6, %v3808_v7  ;;  %v3888_v6 = vld [vmem:[#allocation5 + $0x42c] sm:$0xf0]  ;;  %v4218_v34 = vld [vmem:[#allocation5 + $0x138] sm:$0xf0] }
  0x83   : > { %1680 = vmatpush.bf16.msrb.mxu1 %v3947_v30  ;;  %v4210_v30 = vld [vmem:[#allocation5 + $0xfc] sm:$0xf]  ;;  %v3674_v35 = vld [vmem:[#allocation5 + $0x268] sm:$0xf] }
  0x84   : > { %1624 = vmatpush.bf16.msra.mxu2 %v3447_v24  ;;  %v4277_v24 = vld [vmem:[#allocation5 + $0x310] sm:$0xf0]  ;;  %v3491_v38 = vor.u32 %v4210_v30, %v3488_v31  ;;  %v3408_v30 = vld [vmem:[#allocation5 + $0x6c] sm:$0xf0] }
  0x85   : > { %1643 = vmatpush.bf16.msra.mxu3 %v3607_v36  ;;  %3997 = vmatmul.msk.bf16.gmra.mxu0 %vm1408_vm1, %v4723_v40  ;;  %v3887_v36 = vor.u32 %v4312_v17, %v3886_v16  ;;  %v3747_v32 = vor.u32 %v4277_v24, %v3746_v23  ;;  %v4285_v17 = vld [vmem:[#allocation5 + $0x354] sm:$0xf]  ;;  %v4250_v23 = vld [vmem:[#allocation5 + $0x23c] sm:$0xf]  ;;  %v3648_v24 = vld [vmem:[#allocation5 + $0x24c] sm:$0xf0] }
  0x86   : > { %1539 = vmatmul.bf16.gmra.mxu1 %v4697_v49  ;;  %1661 = vmatpush.bf16.msrb.mxu0 %v3787_v3  ;;  %v4255_v3 = vld [vmem:[#allocation5 + $0x264] sm:$0xf]  ;;  %v3651_v31 = vor.u32 %v4250_v23, %v3648_v24  ;;  %v4225_v23 = vld [vmem:[#allocation5 + $0x174] sm:$0xf]  ;;  %v3548_v24 = vld [vmem:[#allocation5 + $0x184] sm:$0xf0] }
  0x87   : > { %1558 = vmatmul.bf16.gmra.mxu2 %v4700_v54  ;;  %1681 = vmatpush.bf16.msrb.mxu1 %v3927_v60  ;;  %v3686_v60 = vld [vmem:[#allocation5 + $0x288] sm:$0xf] }
  0x88   : > { %1625 = vmatpush.bf16.msra.mxu2 %v3427_v37  ;;  %1577 = vmatmul.bf16.gmra.mxu3 %v4702_v58  ;;  %v3867_v37 = vor.u32 %v4307_v29, %v3866_v28  ;;  %v3687_v18 = vor.u32 %v4262_v61, %v3686_v60  ;;  %v3928_v28 = vld [vmem:[#allocation5 + $0x47c] sm:$0xf0]  ;;  %v4190_v29 = vld [vmem:[#allocation5 + $0x5c] sm:$0xf]  ;;  %v4235_v60 = vld [vmem:[#allocation5 + $0x1c4] sm:$0xf] }
  0x89   : > { %1644 = vmatpush.bf16.msra.mxu3 %v3587_v41  ;;  %v4302_v41 = vld [vmem:[#allocation5 + $0x3d8] sm:$0xf0]  ;;  %v3588_v61 = vld [vmem:[#allocation5 + $0x1d4] sm:$0xf0] }
  0x8a   : > { %1662 = vmatpush.bf16.msrb.mxu0 %v3767_v21  ;;  %v3847_v50 = vor.u32 %v4302_v41, %v3846_v39  ;;  %v3948_v21 = vld [vmem:[#allocation5 + $0x4a4] sm:$0xf0]  ;;  %v4185_v39 = vld [vmem:[#allocation5 + $0x34] sm:$0xf] }
  0x8b   : > { %1682 = vmatpush.bf16.msrb.mxu1 %v3907_v13  ;;  %v3428_v13 = vld [vmem:[#allocation5 + $0x94] sm:$0xf0]  ;;  %v3951_v25 = vor.u32 %v4325_v20, %v3948_v21  ;;  %v3388_v41 = vld [vmem:[#allocation5 + $0x44] sm:$0xf0] }
  0x8c   : > { %1626 = vmatpush.bf16.msra.mxu2 %v3407_v51  ;;  %v4295_v51 = vld [vmem:[#allocation5 + $0x3a4] sm:$0xf]  ;;  %v3391_v48 = vor.u32 %v4185_v39, %v3388_v41  ;;  %v4298_v39 = vld [vmem:[#allocation5 + $0x3b8] sm:$0xf0] }
  0x8d   : > { %1645 = vmatpush.bf16.msra.mxu3 %v3567_v55  ;;  %v4335_v55 = vld [vmem:[#allocation5 + $0x4e4] sm:$0xf]  ;;  %v3831_v0 = vor.u32 %v4295_v51, %v3828_v53  ;;  %v4180_v53 = vld [vmem:[#allocation5 + $0xc] sm:$0xf] }
  0x8e   : > { %1663 = vmatpush.bf16.msrb.mxu0 %v3747_v32  ;;  %v3991_v1 = vor.u32 %v4335_v55, %v3988_v56  ;;  %v4280_v32 = vld [vmem:[#allocation5 + $0x32c] sm:$0xf]  ;;  %v4315_v51 = vld [vmem:[#allocation5 + $0x444] sm:$0xf]  ;;  %v3368_v55 = vld [vmem:[#allocation5 + $0x1c] sm:$0xf0] }
  0x8f   : > { %1683 = vmatpush.bf16.msrb.mxu1 %v3887_v36  ;;  %v3791_v36 = vor.u32 %v4285_v17, %v3788_v19  ;;  %v3371_v7 = vor.u32 %v4180_v53, %v3368_v55  ;;  %v4265_v17 = vld [vmem:[#allocation5 + $0x2b4] sm:$0xf]  ;;  %v4230_v19 = vld [vmem:[#allocation5 + $0x19c] sm:$0xf]  ;;  %v3814_v55 = vld [vmem:[#allocation5 + $0x380] sm:$0xf] }
  0x90   : > { %1627 = vmatpush.bf16.msra.mxu2 %v3387_v5  ;;  %v3668_v5 = vld [vmem:[#allocation5 + $0x274] sm:$0xf0]  ;;  %v4253_v53 = vld [vmem:[#allocation5 + $0x250] sm:$0xf0] }
  0x91   : > { %1646 = vmatpush.bf16.msra.mxu3 %v3547_v10  ;;  %v3968_v10 = vld [vmem:[#allocation5 + $0x4cc] sm:$0xf0] }
  0x92   : > { %1664 = vmatpush.bf16.msrb.mxu0 %v3727_v44  ;;  %v3971_v16 = vor.u32 %v4330_v9, %v3968_v10  ;;  %v4240_v44 = vld [vmem:[#allocation5 + $0x1ec] sm:$0xf] }
  0x93   : > { %1684 = vmatpush.bf16.msrb.mxu1 %v3867_v37 }
  0x94   : > { %1628 = vmatpush.bf16.msra.mxu2 %v3367_v22  ;;  %v3671_v22 = vor.u32 %v4255_v3, %v3668_v5  ;;  %v3728_v3 = vld [vmem:[#allocation5 + $0x2ec] sm:$0xf0]  ;;  %v4310_v5 = vld [vmem:[#allocation5 + $0x41c] sm:$0xf] }
  0x95   : > { %1647 = vmatpush.bf16.msra.mxu3 %v3527_v26  ;;  %1591 = vmatmul.bf16.vlgmr.msra.gmra.mxu0 %v4684_v8  ;;  %v3431_v26 = vor.u32 %v4195_v12, %v3428_v13  ;;  %v3891_v9 = vor.u32 %v4310_v5, %v3888_v6  ;;  %v4305_v12 = vld [vmem:[#allocation5 + $0x3f4] sm:$0xf]  ;;  %v3868_v13 = vld [vmem:[#allocation5 + $0x404] sm:$0xf0]  ;;  %v3634_v5 = vld [vmem:[#allocation5 + $0x218] sm:$0xf] }
  0x96   : > { %3998 = vmatmul.msk.bf16.vlgmr.msra.gmra.mxu1 %vm1408_vm1, %v4714_v46  ;;  %1665 = vmatpush.bf16.msrb.mxu0 %v3707_v59  ;;  %v3611_v59 = vor.u32 %v4240_v44, %v3608_v45  ;;  %v3871_v20 = vor.u32 %v4305_v12, %v3868_v13  ;;  %v4338_v44 = vld [vmem:[#allocation5 + $0x4f8] sm:$0xf0]  ;;  %v4248_v6 = vld [vmem:[#allocation5 + $0x228] sm:$0xf0]  ;;  %v3954_v13 = vld [vmem:[#allocation5 + $0x498] sm:$0xf] }
  0x97   : > { %1629 = vmatmul.bf16.vlgmr.msra.gmra.mxu2 %v4677_v62  ;;  %1685 = vmatpush.bf16.msrb.mxu1 %v3847_v50  ;;  %v3748_v50 = vld [vmem:[#allocation5 + $0x314] sm:$0xf0] }
  0x98   : > { %1704 = vmatpush.bf16.msrb.mxu2 %v1423_v33  ;;  %1648 = vmatmul.bf16.vlgmr.msra.gmra.mxu3 %v4680_v2  ;;  %v3768_v33 = vld [vmem:[#allocation5 + $0x33c] sm:$0xf0]  ;;  %v3751_v56 = vor.u32 %v4275_v47, %v3748_v50 }
  0x99   : > { %1716 = vmatpush.bf16.msrb.mxu3 %v3511_v27  ;;  %v4320_v27 = vld [vmem:[#allocation5 + $0x46c] sm:$0xf]  ;;  %v3771_v42 = vor.u32 %v4280_v32, %v3768_v33  ;;  %v3528_v32 = vld [vmem:[#allocation5 + $0x15c] sm:$0xf0]  ;;  %v3514_v33 = vld [vmem:[#allocation5 + $0x128] sm:$0xf] }
  0x9a   : > { %1666 = vmatpush.bf16.msrb.mxu0 %v3687_v18  ;;  %v3931_v37 = vor.u32 %v4320_v27, %v3928_v28  ;;  %v3708_v18 = vld [vmem:[#allocation5 + $0x2c4] sm:$0xf0]  ;;  %v3848_v27 = vld [vmem:[#allocation5 + $0x3dc] sm:$0xf0] }
  0x9b   : > { %1754 = vmatpush.bf16.msra.mxu1 %v3831_v0  ;;  %v4270_v0 = vld [vmem:[#allocation5 + $0x2dc] sm:$0xf]  ;;  %v3711_v21 = vor.u32 %v4265_v17, %v3708_v18  ;;  %v3494_v50 = vld [vmem:[#allocation5 + $0x100] sm:$0xf]  ;;  %v3454_v17 = vld [vmem:[#allocation5 + $0xb0] sm:$0xf] }
  0x9c   : > { %1773 = vmatpush.bf16.msra.mxu2 %v3991_v1  ;;  %v1081_v1 = vunpack.c.h.b16 %v4730_v14  ;;  %v3568_v14 = vld [vmem:[#allocation5 + $0x1ac] sm:$0xf0] }
  0x9d   : > { %1717 = vmatpush.bf16.msrb.mxu3 %v3491_v38  ;;  %v3411_v38 = vor.u32 %v4190_v29, %v3408_v30  ;;  %v3551_v30 = vor.u32 %v4225_v23, %v3548_v24  ;;  %v3614_v18 = vld [vmem:[#allocation5 + $0x1f0] sm:$0xf] }
  0x9e   : > { %1735 = vmatpush.bf16.msra.mxu0 %v3671_v22  ;;  %v1246_v10 = vpack.c.b16 %v1081_v1, %v1081_v1  ;;  %v3571_v22 = vor.u32 %v4230_v19, %v3568_v14  ;;  %v4243_v14 = vld [vmem:[#allocation5 + $0x200] sm:$0xf0]  ;;  %v3934_v24 = vld [vmem:[#allocation5 + $0x470] sm:$0xf] }
  0x9f   : > { %1755 = vmatpush.bf16.msra.mxu1 %v3811_v15  ;;  %v3591_v15 = vor.u32 %v4235_v60, %v3588_v61  ;;  %v3974_v60 = vld [vmem:[#allocation5 + $0x4c0] sm:$0xf]  ;;  %v4333_v61 = vld [vmem:[#allocation5 + $0x4d0] sm:$0xf0]  ;;  %v3615_v23 = vor.u32 %v4243_v14, %v3614_v18 }
  0xa0   : > { %1774 = vmatpush.bf16.msra.mxu2 %v3971_v16  ;;  %v1426_v16 = vsel %vm1415_vm0, %v1246_v10, 0  ;;  %v4208_v10 = vld [vmem:[#allocation5 + $0xe8] sm:$0xf0] }
  0xa1   : > { %1718 = vmatpush.bf16.msrb.mxu3 %v3471_v52  ;;  %v3908_v52 = vld [vmem:[#allocation5 + $0x454] sm:$0xf0] }
  0xa2   : > { %1736 = vmatpush.bf16.msra.mxu0 %v3651_v31  ;;  %v3911_v57 = vor.u32 %v4315_v51, %v3908_v52  ;;  %v4220_v31 = vld [vmem:[#allocation5 + $0x14c] sm:$0xf]  ;;  %v4213_v51 = vld [vmem:[#allocation5 + $0x110] sm:$0xf0]  ;;  %v3654_v52 = vld [vmem:[#allocation5 + $0x240] sm:$0xf] }
  0xa3   : > { %1756 = vmatpush.bf16.msra.mxu1 %v3791_v36  ;;  %v4300_v36 = vld [vmem:[#allocation5 + $0x3cc] sm:$0xf]  ;;  %v3531_v45 = vor.u32 %v4220_v31, %v3528_v32  ;;  %v3495_v1 = vor.u32 %v4213_v51, %v3494_v50  ;;  %v3754_v31 = vld [vmem:[#allocation5 + $0x308] sm:$0xf]  ;;  %v4278_v32 = vld [vmem:[#allocation5 + $0x318] sm:$0xf0] }
  0xa4   : > { %1775 = vmatpush.bf16.msra.mxu2 %v3951_v25  ;;  %v4260_v25 = vld [vmem:[#allocation5 + $0x28c] sm:$0xf]  ;;  %v3851_v29 = vor.u32 %v4300_v36, %v3848_v27  ;;  %v3434_v27 = vld [vmem:[#allocation5 + $0x88] sm:$0xf]  ;;  %v3894_v51 = vld [vmem:[#allocation5 + $0x420] sm:$0xf] }
  0xa5   : > { %1719 = vmatpush.bf16.msrb.mxu3 %v3451_v11  ;;  %1596 = vmatmul.bf16.gmra.mxu0 %v4704_v63  ;;  %v3731_v11 = vor.u32 %v4270_v0, %v3728_v3  ;;  %v3975_v0 = vor.u32 %v4333_v61, %v3974_v60  ;;  %v3474_v3 = vld [vmem:[#allocation5 + $0xd8] sm:$0xf]  ;;  %v4228_v60 = vld [vmem:[#allocation5 + $0x188] sm:$0xf0] }
  0xa6   : > { %3999 = vmatmul.msk.bf16.gmra.mxu1 %vm1408_vm1, %v4723_v40  ;;  %1737 = vmatpush.bf16.msra.mxu0 %v3631_v43  ;;  %v3994_v43 = vld [vmem:[#allocation5 + $0x4e8] sm:$0xf]  ;;  %v3475_v19 = vor.u32 %v4208_v10, %v3474_v3  ;;  %v3714_v61 = vld [vmem:[#allocation5 + $0x2b8] sm:$0xf]  ;;  %v3374_v10 = vld [vmem:[#allocation5 + $0x10] sm:$0xf] }
  0xa7   : > { %1634 = vmatmul.bf16.gmra.mxu2 %v4697_v49  ;;  %1757 = vmatpush.bf16.msra.mxu1 %v3771_v42  ;;  %v3995_v47 = vor.u32 %v4338_v44, %v3994_v43  ;;  %v4233_v44 = vld [vmem:[#allocation5 + $0x1b0] sm:$0xf0] }
  0xa8   : > { %1776 = vmatpush.bf16.msra.mxu2 %v3931_v37  ;;  %1653 = vmatmul.bf16.gmra.mxu3 %v4700_v54  ;;  %v4258_v37 = vld [vmem:[#allocation5 + $0x278] sm:$0xf0] }
  0xa9   : > { %1720 = vmatpush.bf16.msrb.mxu3 %v3431_v26  ;;  %v3688_v26 = vld [vmem:[#allocation5 + $0x29c] sm:$0xf0]  ;;  %v3675_v41 = vor.u32 %v4258_v37, %v3674_v35  ;;  %v3914_v35 = vld [vmem:[#allocation5 + $0x448] sm:$0xf]  ;;  %v4318_v37 = vld [vmem:[#allocation5 + $0x458] sm:$0xf0] }
  0xaa   : > { %1738 = vmatpush.bf16.msra.mxu0 %v3611_v59  ;;  %v3691_v28 = vor.u32 %v4260_v25, %v3688_v26  ;;  %v4323_v25 = vld [vmem:[#allocation5 + $0x480] sm:$0xf0] }
  0xab   : > { %1758 = vmatpush.bf16.msra.mxu1 %v3751_v56  ;;  %v4293_v56 = vld [vmem:[#allocation5 + $0x390] sm:$0xf0]  ;;  %v3935_v36 = vor.u32 %v4323_v25, %v3934_v24  ;;  %v512_v25 = vld [vmem:[#allocation5 + $0x510] sm:$0xf] }
  0xac   : > { %1777 = vmatpush.bf16.msra.mxu2 %v3911_v57  ;;  %v3655_v57 = vor.u32 %v4253_v53, %v3654_v52  ;;  %v3815_v59 = vor.u32 %v4293_v56, %v3814_v55  ;;  %v4313_v52 = vld [vmem:[#allocation5 + $0x430] sm:$0xf0]  ;;  %v3394_v56 = vld [vmem:[#allocation5 + $0x38] sm:$0xf] }
  0xad   : > { %1721 = vmatpush.bf16.msrb.mxu3 %v3411_v38  ;;  %v3834_v38 = vld [vmem:[#allocation5 + $0x3a8] sm:$0xf]  ;;  %v3895_v55 = vor.u32 %v4313_v52, %v3894_v51 }
  0xae   : > { %1739 = vmatpush.bf16.msra.mxu0 %v3591_v15  ;;  %v3835_v42 = vor.u32 %v4298_v39, %v3834_v38  ;;  %v4328_v15 = vld [vmem:[#allocation5 + $0x4a8] sm:$0xf0]  ;;  %v3755_v38 = vor.u32 %v4278_v32, %v3754_v31  ;;  %v3915_v39 = vor.u32 %v4318_v37, %v3914_v35 }
  0xaf   : > { %1759 = vmatpush.bf16.msra.mxu1 %v3731_v11  ;;  %v3635_v11 = vor.u32 %v4248_v6, %v3634_v5  ;;  %v3874_v5 = vld [vmem:[#allocation5 + $0x3f8] sm:$0xf]  ;;  %v4308_v6 = vld [vmem:[#allocation5 + $0x408] sm:$0xf0] }
  0xb0   : > { %1778 = vmatpush.bf16.msra.mxu2 %v3891_v9  ;;  %v4288_v9 = vld [vmem:[#allocation5 + $0x368] sm:$0xf0] }
  0xb1   : > { %1722 = vmatpush.bf16.msrb.mxu3 %v3391_v48  ;;  %v3515_v48 = vor.u32 %v4218_v34, %v3514_v33  ;;  %v4198_v33 = vld [vmem:[#allocation5 + $0x98] sm:$0xf0] }
  0xb2   : > { %1740 = vmatpush.bf16.msra.mxu0 %v3571_v22  ;;  %v4203_v22 = vld [vmem:[#allocation5 + $0xc0] sm:$0xf0]  ;;  %v3435_v43 = vor.u32 %v4198_v33, %v3434_v27 }
  0xb3   : > { %1760 = vmatpush.bf16.msra.mxu1 %v3711_v21  ;;  %v4283_v21 = vld [vmem:[#allocation5 + $0x340] sm:$0xf0] }
  0xb4   : > { %1779 = vmatpush.bf16.msra.mxu2 %v3871_v20  ;;  %v3774_v20 = vld [vmem:[#allocation5 + $0x330] sm:$0xf] }
  0xb5   : > { %1723 = vmatpush.bf16.msrb.mxu3 %v3371_v7  ;;  %1667 = vmatmul.bf16.vlgmr.msrb.gmra.mxu0 %v4682_v4  ;;  %v3794_v7 = vld [vmem:[#allocation5 + $0x358] sm:$0xf]  ;;  %v3775_v26 = vor.u32 %v4283_v21, %v3774_v20  ;;  %v3854_v20 = vld [vmem:[#allocation5 + $0x3d0] sm:$0xf]  ;;  %v4303_v21 = vld [vmem:[#allocation5 + $0x3e0] sm:$0xf0] }
  0xb6   : > { %1686 = vmatmul.bf16.vlgmr.msrb.gmra.mxu1 %v4684_v8  ;;  %1741 = vmatpush.bf16.msra.mxu0 %v3551_v30  ;;  %v3795_v12 = vor.u32 %v4288_v9, %v3794_v7  ;;  %v4238_v30 = vld [vmem:[#allocation5 + $0x1d8] sm:$0xf0]  ;;  %v3875_v9 = vor.u32 %v4308_v6, %v3874_v5 }
  0xb7   : > { %4000 = vmatmul.msk.bf16.vlgmr.msrb.gmra.mxu2 %vm1408_vm1, %v4714_v46  ;;  %1761 = vmatpush.bf16.msra.mxu1 %v3691_v28  ;;  %v3594_v28 = vld [vmem:[#allocation5 + $0x1c8] sm:$0xf] }
  0xb8   : > { %1780 = vmatpush.bf16.msra.mxu2 %v3851_v29  ;;  %1724 = vmatmul.bf16.vlgmr.msrb.gmra.mxu3 %v4677_v62  ;;  %v3455_v29 = vor.u32 %v4203_v22, %v3454_v17  ;;  %v3595_v34 = vor.u32 %v4238_v30, %v3594_v28  ;;  %v4263_v17 = vld [vmem:[#allocation5 + $0x2a0] sm:$0xf0] }
  0xb9   : > { %1799 = vmatpush.bf16.msra.mxu3 %v1426_v16  ;;  %v3955_v16 = vor.u32 %v4328_v15, %v3954_v13  ;;  %v4223_v15 = vld [vmem:[#allocation5 + $0x160] sm:$0xf0] }
  0xba   : > { %1742 = vmatpush.bf16.msra.mxu0 %v3531_v45  ;;  %v3734_v45 = vld [vmem:[#allocation5 + $0x2e0] sm:$0xf] }
  0xbb   : > { %1830 = vmatpush.bf16.msrb.mxu1 %v3675_v41  ;;  %v3414_v41 = vld [vmem:[#allocation5 + $0x60] sm:$0xf] }
  0xbc   : > { %1849 = vmatpush.bf16.msrb.mxu2 %v3835_v42  ;;  %v3574_v42 = vld [vmem:[#allocation5 + $0x1a0] sm:$0xf] }
  0xbd   : > { %1868 = vmatpush.bf16.msrb.mxu3 %v3995_v47  ;;  %v4273_v47 = vld [vmem:[#allocation5 + $0x2f0] sm:$0xf0]  ;;  %v3575_v50 = vor.u32 %v4233_v44, %v3574_v42 }
  0xbe   : > { %1811 = vmatpush.bf16.msrb.mxu0 %v3515_v48  ;;  %v4193_v48 = vld [vmem:[#allocation5 + $0x70] sm:$0xf0]  ;;  %v3735_v53 = vor.u32 %v4273_v47, %v3734_v45 }
  0xbf   : > { %1831 = vmatpush.bf16.msrb.mxu1 %v3655_v57  ;;  %v3554_v57 = vld [vmem:[#allocation5 + $0x178] sm:$0xf] }
  0xc0   : > { %1850 = vmatpush.bf16.msrb.mxu2 %v3815_v59  ;;  %v3415_v59 = vor.u32 %v4193_v48, %v3414_v41  ;;  %v3555_v3 = vor.u32 %v4228_v60, %v3554_v57 }
  0xc1   : > { %1869 = vmatpush.bf16.msrb.mxu3 %v3975_v0  ;;  %v4268_v0 = vld [vmem:[#allocation5 + $0x2c8] sm:$0xf0] }
  0xc2   : > { %1812 = vmatpush.bf16.msrb.mxu0 %v3495_v1  ;;  %v4188_v1 = vld [vmem:[#allocation5 + $0x48] sm:$0xf0]  ;;  %v3715_v7 = vor.u32 %v4268_v0, %v3714_v61 }
  0xc3   : > { %1832 = vmatpush.bf16.msrb.mxu1 %v3635_v11  ;;  %v3534_v11 = vld [vmem:[#allocation5 + $0x150] sm:$0xf]  ;;  %v3395_v13 = vor.u32 %v4188_v1, %v3394_v56 }
  0xc4   : > { %1851 = vmatpush.bf16.msrb.mxu2 %v3795_v12  ;;  %v3535_v14 = vor.u32 %v4223_v15, %v3534_v11 }
  0xc5   : > { %1870 = vmatpush.bf16.msrb.mxu3 %v3955_v16  ;;  %1672 = vmatmul.bf16.gmra.mxu0 %v4702_v58  ;;  %v3694_v16 = vld [vmem:[#allocation5 + $0x290] sm:$0xf] }
  0xc6   : > { %1691 = vmatmul.bf16.gmra.mxu1 %v4704_v63  ;;  %1813 = vmatpush.bf16.msrb.mxu0 %v3475_v19  ;;  %v4183_v19 = vld [vmem:[#allocation5 + $0x20] sm:$0xf0]  ;;  %v3695_v22 = vor.u32 %v4263_v17, %v3694_v16 }
  0xc7   : > { %1833 = vmatpush.bf16.msrb.mxu1 %v3615_v23  ;;  %4001 = vmatmul.msk.bf16.gmra.mxu2 %vm1408_vm1, %v4723_v40  ;;  %v3855_v23 = vor.u32 %v4303_v21, %v3854_v20  ;;  %v3375_v24 = vor.u32 %v4183_v19, %v3374_v10 }
  0xc8   : > { %1729 = vmatmul.bf16.gmra.mxu3 %v4697_v49  ;;  %1852 = vmatpush.bf16.msrb.mxu2 %v3775_v26  ;;  %v1082_v26 = vunpack.c.l.b16 %v512_v25 }
  0xc9   : > { %1871 = vmatpush.bf16.msrb.mxu3 %v3935_v36 }
  0xca   : > { %1814 = vmatpush.bf16.msrb.mxu0 %v3455_v29  ;;  %v1247_v28 = vpack.c.b16 %v1082_v26, %v1082_v26 }
  0xcb   : > { %1834 = vmatpush.bf16.msrb.mxu1 %v3595_v34 }
  0xcc   : > { %1853 = vmatpush.bf16.msrb.mxu2 %v3755_v38  ;;  %v1429_v31 = vsel %vm1415_vm0, %v1247_v28, 0 }
  0xcd   : > { %1872 = vmatpush.bf16.msrb.mxu3 %v3915_v39 }
  0xce   : > { %1815 = vmatpush.bf16.msrb.mxu0 %v3435_v43 }
  0xcf   : > { %1835 = vmatpush.bf16.msrb.mxu1 %v3575_v50 }
  0xd0   : > { %1854 = vmatpush.bf16.msrb.mxu2 %v3735_v53 }
  0xd1   : > { %1873 = vmatpush.bf16.msrb.mxu3 %v3895_v55 }
  0xd2   : > { %v1440_v12 = vpop.f32.mrf.mxu0  ;;  %1816 = vmatpush.bf16.msrb.mxu0 %v3415_v59 }
  0xd3   : > { %1836 = vmatpush.bf16.msrb.mxu1 %v3555_v3  ;;  %v1459_v18 = vpop.f32.mrf.mxu1 }
  0xd4   : > { %1855 = vmatpush.bf16.msrb.mxu2 %v3715_v7  ;;  %v1460_v39 = vadd.f32 %v1459_v18, %v1440_v12 }
  0xd5   : > { %1874 = vmatpush.bf16.msrb.mxu3 %v3875_v9  ;;  %1743 = vmatmul.bf16.vlgmr.msra.gmra.mxu0 %v4680_v2 }
  0xd6   : > { %1762 = vmatmul.bf16.vlgmr.msra.gmra.mxu1 %v4682_v4  ;;  %1817 = vmatpush.bf16.msrb.mxu0 %v3395_v13 }
  0xd7   : > { %1837 = vmatpush.bf16.msrb.mxu1 %v3535_v14  ;;  %1781 = vmatmul.bf16.vlgmr.msra.gmra.mxu2 %v4684_v8 }
  0xd8   : > { %4002 = vmatmul.msk.bf16.vlgmr.msra.gmra.mxu3 %vm1408_vm1, %v4714_v46  ;;  %1856 = vmatpush.bf16.msrb.mxu2 %v3695_v22 }
  0xd9   : > { %1875 = vmatpush.bf16.msrb.mxu3 %v3855_v23 }
  0xda   : > { %v1478_v36 = vpop.f32.mrf.mxu2  ;;  %v1442_v27 = vpop.f32.mrf.mxu0  ;;  %1818 = vmatpush.bf16.msrb.mxu0 %v3375_v24 }
  0xdb   : > { %v1461_v29 = vpop.f32.mrf.mxu1  ;;  %v1497_v30 = vpop.f32.mrf.mxu3  ;;  %v1479_v43 = vadd.f32 %v1478_v36, %v1460_v39 }
  0xdc   : > { %v1462_v48 = vadd.f32 %v1461_v29, %v1442_v27 }
  0xdd   : > { %v1498_v44 = vadd.f32 %v1497_v30, %v1479_v43 }
  0xde   : > { %1894 = vmatpush.bf16.msra.mxu0 %v1429_v31 }
  0xe2   : > { %v1480_v32 = vpop.f32.mrf.mxu2  ;;  %v1445_v33 = vpop.f32.mrf.mxu0 }
  0xe3   : > { %v1464_v34 = vpop.f32.mrf.mxu1  ;;  %v1499_v35 = vpop.f32.mrf.mxu3  ;;  %v1481_v53 = vadd.f32 %v1480_v32, %v1462_v48 }
  0xe4   : > { %v1465_v60 = vadd.f32 %v1464_v34, %v1445_v33 }
  0xe5   : > { %1748 = vmatmul.bf16.gmra.mxu0 %v4700_v54  ;;  %v1500_v56 = vadd.f32 %v1499_v35, %v1481_v53 }
  0xe6   : > { %1767 = vmatmul.bf16.gmra.mxu1 %v4702_v58 }
  0xe7   : > { %1786 = vmatmul.bf16.gmra.mxu2 %v4704_v63 }
  0xe8   : > { %4003 = vmatmul.msk.bf16.gmra.mxu3 %vm1408_vm1, %v4723_v40 }
  0xea   : > { %v1483_v37 = vpop.f32.mrf.mxu2  ;;  %v1447_v38 = vpop.f32.mrf.mxu0 }
  0xeb   : > { %v1466_v41 = vpop.f32.mrf.mxu1  ;;  %v1502_v42 = vpop.f32.mrf.mxu3  ;;  %v1484_v3 = vadd.f32 %v1483_v37, %v1465_v60 }
  0xec   : > { %v1467_v9 = vadd.f32 %v1466_v41, %v1447_v38 }
  0xed   : > { %v1503_v6 = vadd.f32 %v1502_v42, %v1484_v3 }
  0xf2   : > { %v1485_v45 = vpop.f32.mrf.mxu2  ;;  %v1516_v47 = vpop.f32.mrf.mxu0 }
  0xf3   : > { %v1504_v50 = vpop.f32.mrf.mxu3  ;;  %v1517_v51 = vadd.f32 %v1516_v47, %v1498_v44  ;;  %v1535_v52 = vpop.f32.mrf.mxu1 }
  0xf5   : > { %v1906_v55 = vmax.f32 %v1517_v51, 0.0  ;;  %1819 = vmatmul.bf16.vlgmr.msrb.gmra.mxu0 %v4677_v62 }
  0xf6   : > { %1838 = vmatmul.bf16.vlgmr.msrb.gmra.mxu1 %v4680_v2 }
  0xf7   : > { %1926 = vst [vmem:[#allocation2] sm:$0xff] %v1906_v55  ;;  %1857 = vmatmul.bf16.vlgmr.msrb.gmra.mxu2 %v4682_v4  ;;  %v1486_v4 = vadd.f32 %v1485_v45, %v1467_v9 }
  0xf8   : > { %1876 = vmatmul.bf16.vlgmr.msrb.gmra.mxu3 %v4684_v8 }
  0xf9   : > { %v1505_v8 = vadd.f32 %v1504_v50, %v1486_v4 }
  0xfa   : > { %v1554_v57 = vpop.f32.mrf.mxu2  ;;  %v1518_v59 = vpop.f32.mrf.mxu0 }
  0xfb   : > { %v1519_v61 = vadd.f32 %v1518_v59, %v1500_v56  ;;  %v1537_v0 = vpop.f32.mrf.mxu1  ;;  %v1573_v1 = vpop.f32.mrf.mxu3  ;;  %v1555_v19 = vadd.f32 %v1554_v57, %v1535_v52 }
  0xfd   : > { %v1911_v5 = vmax.f32 %v1519_v61, 0.0  ;;  %v1574_v20 = vadd.f32 %v1573_v1, %v1555_v19 }
  0xff   : > { %1931 = vst [vmem:[#allocation2 + $0x28] sm:$0xff] %v1911_v5 }
 0x102   : > { %v1556_v7 = vpop.f32.mrf.mxu2  ;;  %v1521_v62 = vpop.f32.mrf.mxu0 }
 0x103   : > { %v1522_v2 = vadd.f32 %v1521_v62, %v1503_v6  ;;  %v1540_v10 = vpop.f32.mrf.mxu1  ;;  %v1575_v11 = vpop.f32.mrf.mxu3  ;;  %v1557_v24 = vadd.f32 %v1556_v7, %v1537_v0 }
 0x105   : > { %v1916_v12 = vmax.f32 %v1522_v2, 0.0  ;;  %1824 = vmatmul.bf16.gmra.mxu0 %v4697_v49 }
 0x106   : > { %1843 = vmatmul.bf16.gmra.mxu1 %v4700_v54 }
 0x107   : > { %1936 = vst [vmem:[#allocation2 + $0x50] sm:$0xff] %v1916_v12  ;;  %1862 = vmatmul.bf16.gmra.mxu2 %v4702_v58 }
 0x108   : > { %1881 = vmatmul.bf16.gmra.mxu3 %v4704_v63  ;;  %v1576_v63 = vadd.f32 %v1575_v11, %v1557_v24 }
 0x10a   : > { %v1559_v13 = vpop.f32.mrf.mxu2  ;;  %v1523_v15 = vpop.f32.mrf.mxu0 }
 0x10b   : > { %v1524_v16 = vadd.f32 %v1523_v15, %v1505_v8  ;;  %v1542_v17 = vpop.f32.mrf.mxu1  ;;  %v1578_v18 = vpop.f32.mrf.mxu3  ;;  %v1560_v30 = vadd.f32 %v1559_v13, %v1540_v10 }
 0x10d   : > { %v1921_v14 = vmax.f32 %v1524_v16, 0.0  ;;  %v1579_v33 = vadd.f32 %v1578_v18, %v1560_v30 }
 0x10f   : > { %1941 = vst [vmem:[#allocation2 + $0x78] sm:$0xff] %v1921_v14 }
 0x112   : > { %v1561_v21 = vpop.f32.mrf.mxu2  ;;  %v1592_v22 = vpop.f32.mrf.mxu0 }
 0x113   : > { %v1580_v49 = vpop.f32.mrf.mxu3  ;;  %v1593_v23 = vadd.f32 %v1592_v22, %v1574_v20  ;;  %v1611_v54 = vpop.f32.mrf.mxu1  ;;  %v1562_v41 = vadd.f32 %v1561_v21, %v1542_v17 }
 0x115   : > { %v1612_v25 = vadd.f32 %v1611_v54, %v1593_v23  ;;  %4004 = vmatmul.msk.bf16.vlgmr.msra.gmra.mxu0 %vm1408_vm1, %v4714_v46  ;;  %v1581_v43 = vadd.f32 %v1580_v49, %v1562_v41 }
 0x117   : > { %v1907_v58 = vmax.f32 %v1612_v25, 0.0 }
 0x119   : > { %1927 = vst [vmem:[#allocation2 + $0x8] sm:$0xff] %v1907_v58 }
 0x11a   : > { %v1630_v26 = vpop.f32.mrf.mxu2  ;;  %v1594_v36 = vpop.f32.mrf.mxu0 }
 0x11b   : > { %v1595_v27 = vadd.f32 %v1594_v36, %v1576_v63  ;;  %v1613_v28 = vpop.f32.mrf.mxu1  ;;  %v1649_v29 = vpop.f32.mrf.mxu3 }
 0x11c   : > { %v1650_v56 = vadd.f32 %v1649_v29, %v1630_v26 }
 0x11d   : > { %v1614_v31 = vadd.f32 %v1613_v28, %v1595_v27 }
 0x11f   : > { %v1912_v32 = vmax.f32 %v1614_v31, 0.0 }
 0x121   : > { %1932 = vst [vmem:[#allocation2 + $0x30] sm:$0xff] %v1912_v32 }
 0x122   : > { %v1632_v34 = vpop.f32.mrf.mxu2  ;;  %v1597_v35 = vpop.f32.mrf.mxu0 }
 0x123   : > { %v1598_v37 = vadd.f32 %v1597_v35, %v1579_v33  ;;  %v1616_v38 = vpop.f32.mrf.mxu1  ;;  %v1651_v39 = vpop.f32.mrf.mxu3 }
 0x124   : > { %v1652_v1 = vadd.f32 %v1651_v39, %v1632_v34 }
 0x125   : > { %v1617_v46 = vadd.f32 %v1616_v38, %v1598_v37  ;;  %4005 = vmatmul.msk.bf16.gmra.mxu0 %vm1408_vm1, %v4723_v40 }
 0x127   : > { %v1917_v42 = vmax.f32 %v1617_v46, 0.0 }
 0x129   : > { %1937 = vst [vmem:[#allocation2 + $0x58] sm:$0xff] %v1917_v42 }
 0x12a   : > { %v1635_v44 = vpop.f32.mrf.mxu2  ;;  %v1599_v45 = vpop.f32.mrf.mxu0 }
 0x12b   : > { %v1600_v47 = vadd.f32 %v1599_v45, %v1581_v43  ;;  %v1618_v48 = vpop.f32.mrf.mxu1  ;;  %v1654_v50 = vpop.f32.mrf.mxu3 }
 0x12c   : > { %v1655_v11 = vadd.f32 %v1654_v50, %v1635_v44 }
 0x12d   : > { %v1619_v51 = vadd.f32 %v1618_v48, %v1600_v47 }
 0x12f   : > { %v1922_v52 = vmax.f32 %v1619_v51, 0.0 }
 0x131   : > { %1942 = vst [vmem:[#allocation2 + $0x80] sm:$0xff] %v1922_v52 }
 0x132   : > { %v1637_v53 = vpop.f32.mrf.mxu2  ;;  %v1668_v55 = vpop.f32.mrf.mxu0 }
 0x133   : > { %v1656_v57 = vpop.f32.mrf.mxu3  ;;  %v1687_v59 = vpop.f32.mrf.mxu1  ;;  %v1669_v60 = vadd.f32 %v1668_v55, %v1650_v56 }
 0x134   : > { %v1657_v19 = vadd.f32 %v1656_v57, %v1637_v53 }
 0x135   : > { %v1688_v61 = vadd.f32 %v1687_v59, %v1669_v60 }
 0x13a   : > { %v1706_v0 = vpop.f32.mrf.mxu2  ;;  %v1670_v40 = vpop.f32.mrf.mxu0 }
 0x13b   : > { %v1707_v3 = vadd.f32 %v1706_v0, %v1688_v61  ;;  %v1689_v5 = vpop.f32.mrf.mxu1  ;;  %v1725_v6 = vpop.f32.mrf.mxu3  ;;  %v1671_v62 = vadd.f32 %v1670_v40, %v1652_v1 }
 0x13d   : > { %v1908_v7 = vmax.f32 %v1707_v3, 0.0  ;;  %v1690_v9 = vadd.f32 %v1689_v5, %v1671_v62 }
 0x13f   : > { %1928 = vst [vmem:[#allocation2 + $0x10] sm:$0xff] %v1908_v7 }
 0x142   : > { %v1708_v2 = vpop.f32.mrf.mxu2  ;;  %v1673_v10 = vpop.f32.mrf.mxu0 }
 0x143   : > { %v1709_v4 = vadd.f32 %v1708_v2, %v1690_v9  ;;  %v1692_v12 = vpop.f32.mrf.mxu1  ;;  %v1727_v8 = vpop.f32.mrf.mxu3  ;;  %v1674_v15 = vadd.f32 %v1673_v10, %v1655_v11 }
 0x145   : > { %v1913_v13 = vmax.f32 %v1709_v4, 0.0  ;;  %v1693_v16 = vadd.f32 %v1692_v12, %v1674_v15 }
 0x147   : > { %1933 = vst [vmem:[#allocation2 + $0x38] sm:$0xff] %v1913_v13 }
 0x14a   : > { %v1711_v17 = vpop.f32.mrf.mxu2  ;;  %v1675_v18 = vpop.f32.mrf.mxu0 }
 0x14b   : > { %v1712_v14 = vadd.f32 %v1711_v17, %v1693_v16  ;;  %v1694_v20 = vpop.f32.mrf.mxu1  ;;  %v1730_v21 = vpop.f32.mrf.mxu3  ;;  %v1676_v49 = vadd.f32 %v1675_v18, %v1657_v19 }
 0x14d   : > { %v1918_v22 = vmax.f32 %v1712_v14, 0.0  ;;  %v1695_v23 = vadd.f32 %v1694_v20, %v1676_v49 }
 0x14f   : > { %1938 = vst [vmem:[#allocation2 + $0x60] sm:$0xff] %v1918_v22 }
 0x152   : > { %v1713_v54 = vpop.f32.mrf.mxu2  ;;  %v1744_v24 = vpop.f32.mrf.mxu0 }
 0x153   : > { %v1714_v25 = vadd.f32 %v1713_v54, %v1695_v23  ;;  %v1732_v58 = vpop.f32.mrf.mxu3  ;;  %v1763_v63 = vpop.f32.mrf.mxu1  ;;  %v1745_v36 = vadd.f32 %v1744_v24, %v1725_v6 }
 0x155   : > { %v1923_v26 = vmax.f32 %v1714_v25, 0.0  ;;  %v1764_v27 = vadd.f32 %v1763_v63, %v1745_v36 }
 0x157   : > { %1943 = vst [vmem:[#allocation2 + $0x88] sm:$0xff] %v1923_v26 }
 0x15a   : > { %v1782_v28 = vpop.f32.mrf.mxu2  ;;  %v1746_v29 = vpop.f32.mrf.mxu0 }
 0x15b   : > { %v1783_v30 = vadd.f32 %v1782_v28, %v1764_v27  ;;  %v1801_v31 = vpop.f32.mrf.mxu3  ;;  %v1765_v32 = vpop.f32.mrf.mxu1  ;;  %v1747_v33 = vadd.f32 %v1746_v29, %v1727_v8 }
 0x15d   : > { %v1802_v34 = vadd.f32 %v1801_v31, %v1783_v30  ;;  %v1766_v37 = vadd.f32 %v1765_v32, %v1747_v33 }
 0x15f   : > { %v1909_v35 = vmax.f32 %v1802_v34, 0.0 }
 0x161   : > { %1929 = vst [vmem:[#allocation2 + $0x18] sm:$0xff] %v1909_v35 }
 0x162   : > { %v1784_v38 = vpop.f32.mrf.mxu2  ;;  %v1749_v39 = vpop.f32.mrf.mxu0 }
 0x163   : > { %v1785_v41 = vadd.f32 %v1784_v38, %v1766_v37  ;;  %v1803_v46 = vpop.f32.mrf.mxu3  ;;  %v1750_v42 = vadd.f32 %v1749_v39, %v1730_v21  ;;  %v1768_v44 = vpop.f32.mrf.mxu1 }
 0x165   : > { %v1804_v43 = vadd.f32 %v1803_v46, %v1785_v41  ;;  %v1769_v47 = vadd.f32 %v1768_v44, %v1750_v42 }
 0x167   : > { %v1914_v45 = vmax.f32 %v1804_v43, 0.0 }
 0x169   : > { %1934 = vst [vmem:[#allocation2 + $0x40] sm:$0xff] %v1914_v45 }
 0x16a   : > { %v1787_v48 = vpop.f32.mrf.mxu2  ;;  %v1751_v50 = vpop.f32.mrf.mxu0 }
 0x16b   : > { %v1788_v51 = vadd.f32 %v1787_v48, %v1769_v47  ;;  %v1806_v52 = vpop.f32.mrf.mxu3  ;;  %v1752_v53 = vadd.f32 %v1751_v50, %v1732_v58  ;;  %v1770_v57 = vpop.f32.mrf.mxu1 }
 0x16d   : > { %v1807_v55 = vadd.f32 %v1806_v52, %v1788_v51  ;;  %v1771_v59 = vadd.f32 %v1770_v57, %v1752_v53 }
 0x16f   : > { %v1919_v56 = vmax.f32 %v1807_v55, 0.0 }
 0x171   : > { %1939 = vst [vmem:[#allocation2 + $0x68] sm:$0xff] %v1919_v56 }
 0x172   : > { %v1789_v60 = vpop.f32.mrf.mxu2  ;;  %v1820_v61 = vpop.f32.mrf.mxu0 }
 0x173   : > { %v1790_v0 = vadd.f32 %v1789_v60, %v1771_v59  ;;  %v1808_v40 = vpop.f32.mrf.mxu3  ;;  %v1839_v6 = vpop.f32.mrf.mxu1 }
 0x174   : > { %v1840_v10 = vadd.f32 %v1839_v6, %v1820_v61 }
 0x175   : > { %v1809_v1 = vadd.f32 %v1808_v40, %v1790_v0 }
 0x177   : > { %v1924_v3 = vmax.f32 %v1809_v1, 0.0 }
 0x179   : > { %1944 = vst [vmem:[#allocation2 + $0x90] sm:$0xff] %v1924_v3 }
 0x17a   : > { %v1822_v5 = vpop.f32.mrf.mxu0  ;;  %v1858_v62 = vpop.f32.mrf.mxu2 }
 0x17b   : > { %v1877_v9 = vpop.f32.mrf.mxu3  ;;  %v1841_v11 = vpop.f32.mrf.mxu1  ;;  %v1859_v4 = vadd.f32 %v1858_v62, %v1840_v10 }
 0x17c   : > { %v1842_v16 = vadd.f32 %v1841_v11, %v1822_v5 }
 0x17d   : > { %v1878_v8 = vadd.f32 %v1877_v9, %v1859_v4 }
 0x182   : > { %v1825_v7 = vpop.f32.mrf.mxu0  ;;  %v1860_v12 = vpop.f32.mrf.mxu2 }
 0x183   : > { %v1879_v13 = vpop.f32.mrf.mxu3  ;;  %v1861_v18 = vadd.f32 %v1860_v12, %v1842_v16  ;;  %v1844_v14 = vpop.f32.mrf.mxu1 }
 0x184   : > { %v1845_v49 = vadd.f32 %v1844_v14, %v1825_v7 }
 0x185   : > { %v1880_v21 = vadd.f32 %v1879_v13, %v1861_v18 }
 0x18a   : > { %v1827_v2 = vpop.f32.mrf.mxu0  ;;  %v1863_v20 = vpop.f32.mrf.mxu2 }
 0x18b   : > { %v1882_v54 = vpop.f32.mrf.mxu3  ;;  %v1864_v24 = vadd.f32 %v1863_v20, %v1845_v49  ;;  %v1846_v58 = vpop.f32.mrf.mxu1 }
 0x18c   : > { %v1847_v27 = vadd.f32 %v1846_v58, %v1827_v2 }
 0x18d   : > { %v1883_v63 = vadd.f32 %v1882_v54, %v1864_v24 }
 0x192   : > { %v1896_v15 = vpop.f32.mrf.mxu0  ;;  %v1865_v26 = vpop.f32.mrf.mxu2 }
 0x193   : > { %v1897_v17 = vadd.f32 %v1896_v15, %v1878_v8  ;;  %v1866_v29 = vadd.f32 %v1865_v26, %v1847_v27  ;;  %v1884_v31 = vpop.f32.mrf.mxu3 }
 0x195   : > { %v1910_v19 = vmax.f32 %v1897_v17, 0.0  ;;  %v1885_v32 = vadd.f32 %v1884_v31, %v1866_v29 }
 0x197   : > { %1930 = vst.msk [vmem:[#allocation2 + $0x20] sm:$0xff] %vm1408_vm1, %v1910_v19 }
 0x19a   : > { %v1898_v22 = vpop.f32.mrf.mxu0 }
 0x19b   : > { %v1899_v23 = vadd.f32 %v1898_v22, %v1880_v21 }
 0x19d   : > { %v1915_v25 = vmax.f32 %v1899_v23, 0.0 }
 0x19f   : > { %1935 = vst.msk [vmem:[#allocation2 + $0x48] sm:$0xff] %vm1408_vm1, %v1915_v25 }
 0x1a2   : > { %v1901_v36 = vpop.f32.mrf.mxu0 }
 0x1a3   : > { %v1902_v28 = vadd.f32 %v1901_v36, %v1883_v63 }
 0x1a5   : > { %v1920_v30 = vmax.f32 %v1902_v28, 0.0 }
 0x1a7   : > { %1940 = vst.msk [vmem:[#allocation2 + $0x70] sm:$0xff] %vm1408_vm1, %v1920_v30 }
 0x1aa   : > { %v1903_v33 = vpop.f32.mrf.mxu0 }
 0x1ab   : > { %v1904_v34 = vadd.f32 %v1903_v33, %v1885_v32 }
 0x1ad   : > { %v1925_v35 = vmax.f32 %v1904_v34, 0.0 }
 0x1af   : > { %1945 = vst.msk [vmem:[#allocation2 + $0x98] sm:$0xff] %vm1408_vm1, %v1925_v35 }
 0x1b0 LB: >> { %s4009_s8 = sld [smem:[#allocation8 + $0x1]]  ;;  %s4006_s9 = sshll.u32 %s4547_s7, 3  ;;  %vm2009_vm2 = vcmask 1039360   ;;  %vm2082_vm3 = vcmask 1031168   ;;  %vm2155_vm4 = vcmask 1022976   ;;  %vm2228_vm5 = vcmask 1014784   ;;  %s4547_s7 = sphi %s4786_s7, %s1951_s7  }
 0x1b1   : >> { %s4794_s10 = sshra.s32 %s4006_s9, 3  ;;  %s4010_s12 = sld [smem:[#allocation8 + $0x81]]  ;;  %vm2620_vm6 = vcmask 31744  }
 0x1b2   : >> { %s4339_s11 = smul.u32 40, %s4794_s10  ;;  %s4553_s14 = smov 127  }
 0x1b3   : >> { %s4011_s15 = sld [smem:[#allocation8 + $0x2]]  ;;  %s4554_s16 = smov 126  }
 0x1b4   : >> { %s1957_s13 = scalar_lea.vmem [#allocation2], %s4339_s11  ;;  %s4012_s17 = sld [smem:[#allocation8 + $0x82]] }
 0x1b5   : >> { %s4013_s23 = sld [smem:[#allocation8 + $0x3]]  ;;  %s4555_s24 = smov 125  }
 0x1b6   : >> { %v1988_v37 = vstv %s4009_s8  ;;  %v4799_v38 = vld [vmem:[%s1957_s13 + $0x10] sm:$0xff]  ;;  %v4801_v39 = vld [vmem:[%s1957_s13] sm:$0xff]  ;;  %v4811_v44 = vld [vmem:[%s1957_s13 + $0x18] sm:$0xff]  ;;  %s4014_s29 = sld [smem:[#allocation8 + $0x83]]  ;;  %s4556_s26 = smov 124  }
 0x1b7   : >> { %v4803_v41 = vld [vmem:[%s1957_s13 + $0x20] sm:$0xff]  ;;  %v1991_v46 = vmul.f32 %v1988_v37, %v4799_v38  ;;  %v1989_v42 = vmul.f32 %v1988_v37, %v4801_v39  ;;  %v4813_v45 = vld [vmem:[%s1957_s13 + $0x8] sm:$0xff]  ;;  %v2025_v47 = vstv %s4010_s12  ;;  %v1992_v48 = vmul.f32 %v1988_v37, %v4811_v44  ;;  %s4015_s30 = sld [smem:[#allocation8 + $0x4]]  ;;  %s2279_s6 = sadd.s32 16, %s4006_s9 }
 0x1b8   : >> { %v1993_v43 = vmul.f32 %v1988_v37, %v4803_v41  ;;  %v1990_v50 = vmul.f32 %v1988_v37, %v4813_v45  ;;  %v2026_v51 = vmul.f32 %v2025_v47, %v4801_v39  ;;  %v2028_v52 = vmul.f32 %v2025_v47, %v4799_v38  ;;  %s4016_s20 = sld [smem:[#allocation8 + $0x84]]  ;;  %s2280_s28 = sshra.s32 %s2279_s6, 3 }
 0x1b9   : >> { %2003 = vrot.lane.b32.xlu1 %v1991_v46, %s4553_s14  ;;  %1999 = vrot.lane.b32.xlu0 %v1989_v42, %s4553_s14  ;;  %v2027_v53 = vmul.f32 %v2025_v47, %v4813_v45  ;;  %v2029_v55 = vmul.f32 %v2025_v47, %v4811_v44  ;;  %v2061_v56 = vstv %s4011_s15  ;;  %v2030_v59 = vmul.f32 %v2025_v47, %v4803_v41  ;;  %s4020_s8 = sld [smem:[#allocation8 + $0x6]]  ;;  %s4883_s12 = smul.u32 40, %s2280_s28 }
 0x1ba   : >> { %2007 = vrot.lane.b32.xlu2 %v1993_v43, %s4553_s14  ;;  %v2062_v57 = vmul.f32 %v2061_v56, %v4801_v39  ;;  %v2063_v60 = vmul.f32 %v2061_v56, %v4813_v45  ;;  %v2065_v61 = vmul.f32 %v2061_v56, %v4811_v44  ;;  %v2064_v0 = vmul.f32 %v2061_v56, %v4799_v38  ;;  %s4021_s13 = sld [smem:[#allocation8 + $0x86]]  ;;  %s5118_s28 = scalar_lea.vmem [#allocation3], %s4339_s11 }
 0x1bb   : >> { %v2066_v40 = vmul.f32 %v2061_v56, %v4803_v41  ;;  %v2098_v1 = vstv %s4012_s17  ;;  %v2134_v7 = vstv %s4013_s23  ;;  %s2284_s9 = scalar_lea.vmem [#allocation2], %s4883_s12  ;;  %s1963_s15 = sld [smem:[#allocation8]] }
 0x1bc   : >> { %v2100_v3 = vmul.f32 %v2098_v1, %v4813_v45  ;;  %v2099_v5 = vmul.f32 %v2098_v1, %v4801_v39  ;;  %v2101_v6 = vmul.f32 %v2098_v1, %v4799_v38  ;;  %v2103_v62 = vmul.f32 %v2098_v1, %v4803_v41  ;;  %v4892_v26 = vld [vmem:[%s2284_s9] sm:$0xff]  ;;  %v4894_v27 = vld [vmem:[%s2284_s9 + $0x8] sm:$0xff]  ;;  %v4902_v32 = vld [vmem:[%s2284_s9 + $0x18] sm:$0xff]  ;;  %s4022_s17 = sld [smem:[#allocation8 + $0x7]]  ;;  %s2635_s11 = scalar_lea.vmem [#allocation3], %s4883_s12 }
 0x1bd   : >> { %v2102_v9 = vmul.f32 %v2098_v1, %v4811_v44  ;;  %v2135_v2 = vmul.f32 %v2134_v7, %v4801_v39  ;;  %v2137_v10 = vmul.f32 %v2134_v7, %v4799_v38  ;;  %v2136_v11 = vmul.f32 %v2134_v7, %v4813_v45  ;;  %v4904_v33 = vld [vmem:[%s2284_s9 + $0x10] sm:$0xff]  ;;  %v4906_v34 = vld [vmem:[%s2284_s9 + $0x20] sm:$0xff]  ;;  %s4023_s23 = sld [smem:[#allocation8 + $0x87]]  ;;  %s1951_s7 = sadd.s32 1, %s4547_s7  }
 0x1be   : >> { %v2138_v4 = vmul.f32 %v2134_v7, %v4811_v44  ;;  %v2171_v12 = vstv %s4014_s29  ;;  %v2139_v13 = vmul.f32 %v2134_v7, %v4803_v41  ;;  %v2207_v19 = vstv %s4015_s30  ;;  %s4024_s29 = sld [smem:[#allocation8 + $0x8]]  ;;  %p1948_p13 = scmp.ge.s32.totalorder %s1951_s7, 2  }
 0x1bf   : >> { %v2172_v8 = vmul.f32 %v2171_v12, %v4801_v39  ;;  %v2173_v15 = vmul.f32 %v2171_v12, %v4813_v45  ;;  %v2175_v16 = vmul.f32 %v2171_v12, %v4811_v44  ;;  %v2174_v17 = vmul.f32 %v2171_v12, %v4799_v38  ;;  %s4025_s30 = sld [smem:[#allocation8 + $0x88]] }
 0x1c0   : >> { %v2176_v18 = vmul.f32 %v2171_v12, %v4803_v41  ;;  %v2209_v14 = vmul.f32 %v2207_v19, %v4813_v45  ;;  %v2208_v20 = vmul.f32 %v2207_v19, %v4801_v39  ;;  %v2210_v21 = vmul.f32 %v2207_v19, %v4799_v38  ;;  %s4028_s6 = sld [smem:[#allocation8 + $0xa]] }
 0x1c1   : >> { %2005 = vrot.lane.b32.xlu1 %v1992_v48, %s4553_s14  ;;  %2001 = vrot.lane.b32.xlu0 %v1990_v50, %s4553_s14  ;;  %v2244_v22 = vstv %s4016_s20  ;;  %v2212_v49 = vmul.f32 %v2207_v19, %v4803_v41  ;;  %v2211_v23 = vmul.f32 %v2207_v19, %v4811_v44  ;;  %v2315_v36 = vstv %s4020_s8  ;;  %s4027_s20 = sld [smem:[#allocation8 + $0x89]] }
 0x1c2   : >> { %2036 = vrot.lane.b32.xlu2 %v2026_v51, %s4553_s14  ;;  %v2245_v54 = vmul.f32 %v2244_v22, %v4801_v39  ;;  %v2247_v25 = vmul.f32 %v2244_v22, %v4799_v38  ;;  %v2246_v58 = vmul.f32 %v2244_v22, %v4813_v45  ;;  %v2248_v63 = vmul.f32 %v2244_v22, %v4811_v44  ;;  %s4030_s10 = sld [smem:[#allocation8 + $0x8a]] }
 0x1c3   : >> { %v2316_v29 = vmul.f32 %v2315_v36, %v4892_v26  ;;  %v2249_v30 = vmul.f32 %v2244_v22, %v4803_v41  ;;  %v2317_v31 = vmul.f32 %v2315_v36, %v4894_v27  ;;  %v2319_v37 = vmul.f32 %v2315_v36, %v4902_v32 }
 0x1c4   : >> { %v2318_v46 = vmul.f32 %v2315_v36, %v4904_v33  ;;  %v2320_v42 = vmul.f32 %v2315_v36, %v4906_v34  ;;  %v2351_v43 = vstv %s4021_s13  ;;  %v1964_v47 = vstv %s1963_s15 }
 0x1c5   : >> { %v2354_v56 = vmul.f32 %v2351_v43, %v4904_v33  ;;  %v2355_v7 = vmul.f32 %v2351_v43, %v4902_v32  ;;  %v1966_v36 = vmul.f32 %v1964_v47, %v4813_v45  ;;  %vm2942_vm7 = vcmask (%p1948_p13), 1041408  }
 0x1c6   : > { %vm3041_vm8 = vcmask (%p1948_p13), 39936  }
 0x1c9   : >> { %2040 = vrot.lane.b32.xlu1 %v2028_v52, %s4553_s14  ;;  %2038 = vrot.lane.b32.xlu0 %v2027_v53, %s4553_s14  ;;  %v2353_v52 = vmul.f32 %v2351_v43, %v4894_v27  ;;  %v2352_v53 = vmul.f32 %v2351_v43, %v4892_v26 }
 0x1ca   : >> { %2042 = vrot.lane.b32.xlu2 %v2029_v55, %s4553_s14  ;;  %v1969_v55 = vmul.f32 %v1964_v47, %v4803_v41 }
 0x1d1   : >> { %2072 = vrot.lane.b32.xlu1 %v2062_v57, %s4554_s16  ;;  %2044 = vrot.lane.b32.xlu0 %v2030_v59, %s4553_s14 }
 0x1d2   : >> { %2074 = vrot.lane.b32.xlu2 %v2063_v60, %s4554_s16 }
 0x1d9   : >> { %2078 = vrot.lane.b32.xlu1 %v2065_v61, %s4554_s16  ;;  %2076 = vrot.lane.b32.xlu0 %v2064_v0, %s4554_s16  ;;  %v2387_v61 = vstv %s4022_s17 }
 0x1da   : >> { %2080 = vrot.lane.b32.xlu2 %v2066_v40, %s4554_s16 }
 0x1e1   : >> { %2111 = vrot.lane.b32.xlu1 %v2100_v3, %s4554_s16  ;;  %2109 = vrot.lane.b32.xlu0 %v2099_v5, %s4554_s16 }
 0x1e2   : >> { %2113 = vrot.lane.b32.xlu2 %v2101_v6, %s4554_s16  ;;  %v2356_v6 = vmul.f32 %v2351_v43, %v4906_v34 }
 0x1e9   : >> { %2117 = vrot.lane.b32.xlu1 %v2103_v62, %s4554_s16  ;;  %2115 = vrot.lane.b32.xlu0 %v2102_v9, %s4554_s16  ;;  %v2388_v9 = vmul.f32 %v2387_v61, %v4892_v26 }
 0x1ea   : >> { %2145 = vrot.lane.b32.xlu2 %v2135_v2, %s4555_s24 }
 0x1f1   : >> { %2149 = vrot.lane.b32.xlu1 %v2137_v10, %s4555_s24  ;;  %2147 = vrot.lane.b32.xlu0 %v2136_v11, %s4555_s24 }
 0x1f2   : >> { %2151 = vrot.lane.b32.xlu2 %v2138_v4, %s4555_s24 }
 0x1f9   : >> { %2182 = vrot.lane.b32.xlu1 %v2172_v8, %s4555_s24  ;;  %2153 = vrot.lane.b32.xlu0 %v2139_v13, %s4555_s24  ;;  %v2390_v13 = vmul.f32 %v2387_v61, %v4904_v33 }
 0x1fa   : >> { %2184 = vrot.lane.b32.xlu2 %v2173_v15, %s4555_s24  ;;  %v2389_v15 = vmul.f32 %v2387_v61, %v4894_v27 }
 0x201   : >> { %2188 = vrot.lane.b32.xlu1 %v2175_v16, %s4555_s24  ;;  %2186 = vrot.lane.b32.xlu0 %v2174_v17, %s4555_s24  ;;  %v2391_v16 = vmul.f32 %v2387_v61, %v4902_v32  ;;  %v1965_v17 = vmul.f32 %v1964_v47, %v4801_v39 }
 0x202   : >> { %2190 = vrot.lane.b32.xlu2 %v2176_v18, %s4555_s24  ;;  %v2423_v18 = vstv %s4023_s23 }
 0x209   : >> { %2220 = vrot.lane.b32.xlu1 %v2209_v14, %s4556_s26  ;;  %2218 = vrot.lane.b32.xlu0 %v2208_v20, %s4556_s26 }
 0x20a   : >> { %2222 = vrot.lane.b32.xlu2 %v2210_v21, %s4556_s26 }
 0x211   : >> { %2226 = vrot.lane.b32.xlu1 %v2212_v49, %s4556_s26  ;;  %2224 = vrot.lane.b32.xlu0 %v2211_v23, %s4556_s26 }
 0x212   : >> { %2255 = vrot.lane.b32.xlu2 %v2245_v54, %s4556_s26  ;;  %v2424_v54 = vmul.f32 %v2423_v18, %v4892_v26 }
 0x214   : >> { %v2008_v24 = vpop.permute.xlu2 %2007 }
 0x215   : >> { %v2023_v57 = vadd.f32 %v2008_v24, %v1969_v55  ;;  %v2426_v55 = vmul.f32 %v2423_v18, %v4904_v33 }
 0x219   : >> { %2259 = vrot.lane.b32.xlu1 %v2247_v25, %s4556_s26  ;;  %2257 = vrot.lane.b32.xlu0 %v2246_v58, %s4556_s26  ;;  %v2425_v25 = vmul.f32 %v2423_v18, %v4894_v27  ;;  %v1968_v58 = vmul.f32 %v1964_v47, %v4811_v44 }
 0x21a   : >> { %2261 = vrot.lane.b32.xlu2 %v2248_v63, %s4556_s26  ;;  %v1967_v63 = vmul.f32 %v1964_v47, %v4799_v38 }
 0x21c   : >> { %v2037_v28 = vpop.permute.xlu2 %2036 }
 0x221   : >> { %2326 = vrot.lane.b32.xlu1 %v2316_v29, %s4553_s14  ;;  %2263 = vrot.lane.b32.xlu0 %v2249_v30, %s4556_s26 }
 0x222   : >> { %2328 = vrot.lane.b32.xlu2 %v2317_v31, %s4553_s14 }
 0x224   : >> { %v2043_v35 = vpop.permute.xlu2 %2042 }
 0x229   : >> { %2332 = vrot.lane.b32.xlu1 %v2319_v37, %s4553_s14  ;;  %2330 = vrot.lane.b32.xlu0 %v2318_v46, %s4553_s14 }
 0x22a   : >> { %2334 = vrot.lane.b32.xlu2 %v2320_v42, %s4553_s14 }
 0x22b   : >> { %v2004_v48 = vpop.permute.xlu1 %2003  ;;  %v2000_v50 = vpop.permute.xlu0 %1999 }
 0x22c   : >> { %v4914_v51 = vpop.permute.xlu2 %2074 }
 0x231   : >> { %2364 = vrot.lane.b32.xlu1 %v2353_v52, %s4553_s14  ;;  %2362 = vrot.lane.b32.xlu0 %v2352_v53, %s4553_s14 }
 0x232   : >> { %2366 = vrot.lane.b32.xlu2 %v2354_v56, %s4553_s14  ;;  %v2428_v56 = vmul.f32 %v2423_v18, %v4906_v34 }
 0x233   : >> { %v2006_v59 = vpop.permute.xlu1 %2005  ;;  %v2002_v60 = vpop.permute.xlu0 %2001 }
 0x234   : >> { %v2012_v0 = vsel %vm2009_vm2, %v2004_v48, %v2006_v59  ;;  %v2013_v40 = vsel %vm2009_vm2, %v2006_v59, %v2008_v24  ;;  %v2010_v1 = vsel %vm2009_vm2, %v2000_v50, %v2002_v60  ;;  %v2011_v3 = vsel %vm2009_vm2, %v2002_v60, %v2004_v48  ;;  %v2081_v5 = vpop.permute.xlu2 %2080 }
 0x235   : >> { %v4929_v62 = vadd.f32 %v2081_v5, %v2023_v57  ;;  %v2019_v19 = vadd.f32 %v2010_v1, %v1965_v17  ;;  %v2392_v24 = vmul.f32 %v2387_v61, %v4906_v34  ;;  %v2022_v29 = vadd.f32 %v2013_v40, %v1968_v58 }
 0x236   : >> { %v2020_v30 = vadd.f32 %v2011_v3, %v1966_v36  ;;  %v2427_v48 = vmul.f32 %v2423_v18, %v4902_v32  ;;  %v2495_v18 = vstv %s4025_s30 }
 0x239   : >> { %2370 = vrot.lane.b32.xlu1 %v2356_v6, %s4553_s14  ;;  %2368 = vrot.lane.b32.xlu0 %v2355_v7, %s4553_s14  ;;  %s4008_s14 = sld [smem:[#allocation8 + $0x80]] }
 0x23a   : >> { %2398 = vrot.lane.b32.xlu2 %v2388_v9, %s4554_s16 }
 0x23b   : >> { %v2041_v2 = vpop.permute.xlu1 %2040  ;;  %v2039_v10 = vpop.permute.xlu0 %2038 }
 0x23c   : >> { %v4936_v11 = vsel %vm2009_vm2, %v2041_v2, %v2043_v35  ;;  %v2046_v4 = vsel %vm2009_vm2, %v2037_v28, %v2039_v10  ;;  %v2047_v12 = vsel %vm2009_vm2, %v2039_v10, %v2041_v2  ;;  %v4940_v8 = vpop.permute.xlu2 %2113  ;;  %v2021_v28 = vadd.f32 %v2012_v0, %v1967_v63 }
 0x23f   : >> { %v1976_v31 = vstv %s4008_s14 }
 0x240   : >> { %v1978_v57 = vmul.f32 %v1976_v31, %v4813_v45  ;;  %v1977_v59 = vmul.f32 %v1976_v31, %v4801_v39  ;;  %v1981_v9 = vmul.f32 %v1976_v31, %v4803_v41  ;;  %v1979_v10 = vmul.f32 %v1976_v31, %v4799_v38 }
 0x241   : >> { %2402 = vrot.lane.b32.xlu1 %v2390_v13, %s4554_s16  ;;  %2400 = vrot.lane.b32.xlu0 %v2389_v15, %s4554_s16 }
 0x242   : >> { %2404 = vrot.lane.b32.xlu2 %v2391_v16, %s4554_s16  ;;  %v2055_v60 = vadd.f32 %v2046_v4, %v1977_v59  ;;  %v2056_v61 = vadd.f32 %v2047_v12, %v1978_v57  ;;  %v1980_v4 = vmul.f32 %v1976_v31, %v4811_v44  ;;  %v2057_v13 = vadd.f32 %v4936_v11, %v1979_v10 }
 0x243   : >> { %v2073_v14 = vpop.permute.xlu1 %2072  ;;  %v2045_v20 = vpop.permute.xlu0 %2044  ;;  %v2496_v11 = vmul.f32 %v2495_v18, %v4892_v26  ;;  %v2500_v57 = vmul.f32 %v2495_v18, %v4906_v34 }
 0x244   : >> { %v2083_v21 = vsel %vm2082_vm3, %v2073_v14, %v4914_v51  ;;  %v2049_v22 = vsel %vm2009_vm2, %v2043_v35, %v2045_v20  ;;  %v4952_v49 = vpop.permute.xlu2 %2145  ;;  %v2059_v12 = vadd.f32 %v2045_v20, %v1981_v9 }
 0x245   : >> { %v4954_v23 = vadd.f32 %v2083_v21, %v2019_v19  ;;  %v2058_v15 = vadd.f32 %v2049_v22, %v1980_v4 }
 0x249   : >> { %2434 = vrot.lane.b32.xlu1 %v2424_v54, %s4554_s16  ;;  %2406 = vrot.lane.b32.xlu0 %v2392_v24, %s4554_s16 }
 0x24a   : >> { %2436 = vrot.lane.b32.xlu2 %v2425_v25, %s4554_s16 }
 0x24b   : >> { %v2079_v35 = vpop.permute.xlu1 %2078  ;;  %v2077_v37 = vpop.permute.xlu0 %2076 }
 0x24c   : >> { %v2086_v46 = vsel %vm2082_vm3, %v2079_v35, %v2081_v5  ;;  %v2084_v42 = vsel %vm2082_vm3, %v4914_v51, %v2077_v37  ;;  %v2085_v43 = vsel %vm2082_vm3, %v2077_v37, %v2079_v35  ;;  %v4969_v47 = vpop.permute.xlu2 %2151  ;;  %v2459_v51 = vstv %s4024_s29 }
 0x24d   : >> { %v4972_v50 = vadd.f32 %v2086_v46, %v2022_v29  ;;  %v2093_v52 = vadd.f32 %v2084_v42, %v2020_v30  ;;  %v2094_v53 = vadd.f32 %v2085_v43, %v2021_v28  ;;  %v2461_v6 = vmul.f32 %v2459_v51, %v4894_v27 }
 0x24e   : >> { %v2460_v7 = vmul.f32 %v2459_v51, %v4892_v26  ;;  %v2462_v2 = vmul.f32 %v2459_v51, %v4904_v33  ;;  %v2464_v54 = vmul.f32 %v2459_v51, %v4906_v34  ;;  %v2463_v20 = vmul.f32 %v2459_v51, %v4902_v32 }
 0x24f   : >> { %v2498_v28 = vmul.f32 %v2495_v18, %v4904_v33  ;;  %v2497_v35 = vmul.f32 %v2495_v18, %v4894_v27  ;;  %v2499_v37 = vmul.f32 %v2495_v18, %v4902_v32 }
 0x251   : >> { %2440 = vrot.lane.b32.xlu1 %v2427_v48, %s4554_s16  ;;  %2438 = vrot.lane.b32.xlu0 %v2426_v55, %s4554_s16 }
 0x252   : >> { %2442 = vrot.lane.b32.xlu2 %v2428_v56, %s4554_s16  ;;  %s4026_s16 = sld [smem:[#allocation8 + $0x9]] }
 0x253   : >> { %v2112_v0 = vpop.permute.xlu1 %2111  ;;  %v2110_v40 = vpop.permute.xlu0 %2109 }
 0x254   : >> { %v2120_v1 = vsel %vm2082_vm3, %v2112_v0, %v4940_v8  ;;  %v2119_v3 = vsel %vm2082_vm3, %v2110_v40, %v2112_v0  ;;  %v4984_v45 = vpop.permute.xlu2 %2184 }
 0x255   : >> { %v4986_v39 = vadd.f32 %v2120_v1, %v2056_v61  ;;  %v2128_v5 = vadd.f32 %v2119_v3, %v2055_v60 }
 0x259   : >> { %2472 = vrot.lane.b32.xlu1 %v2461_v6, %s4555_s24  ;;  %2470 = vrot.lane.b32.xlu0 %v2460_v7, %s4555_s24 }
 0x25a   : >> { %2474 = vrot.lane.b32.xlu2 %v2462_v2, %s4555_s24 }
 0x25b   : >> { %v2118_v16 = vpop.permute.xlu1 %2117  ;;  %v2116_v17 = vpop.permute.xlu0 %2115 }
 0x25c   : >> { %v2132_v41 = vadd.f32 %v2118_v16, %v2059_v12  ;;  %v2121_v19 = vsel %vm2082_vm3, %v4940_v8, %v2116_v17  ;;  %v2122_v38 = vsel %vm2082_vm3, %v2116_v17, %v2118_v16  ;;  %v2191_v44 = vpop.permute.xlu2 %2190 }
 0x25d   : >> { %v2130_v14 = vadd.f32 %v2121_v19, %v2057_v13  ;;  %v2131_v21 = vadd.f32 %v2122_v38, %v2058_v15 }
 0x25e   : >> { %v5003_v24 = vadd.f32 %v2191_v44, %v2132_v41 }
 0x261   : >> { %2478 = vrot.lane.b32.xlu1 %v2464_v54, %s4555_s24  ;;  %2476 = vrot.lane.b32.xlu0 %v2463_v20, %s4555_s24 }
 0x262   : >> { %2506 = vrot.lane.b32.xlu2 %v2496_v11, %s4555_s24 }
 0x263   : >> { %v2150_v8 = vpop.permute.xlu1 %2149  ;;  %v2148_v22 = vpop.permute.xlu0 %2147 }
 0x264   : >> { %v2158_v25 = vsel %vm2155_vm4, %v2150_v8, %v4969_v47  ;;  %v2156_v58 = vsel %vm2155_vm4, %v4952_v49, %v2148_v22  ;;  %v2157_v63 = vsel %vm2155_vm4, %v2148_v22, %v2150_v8  ;;  %v5014_v36 = vpop.permute.xlu2 %2222  ;;  %v2531_v49 = vstv %s4026_s16 }
 0x265   : >> { %v5017_v29 = vadd.f32 %v2158_v25, %v2094_v53  ;;  %v2165_v30 = vadd.f32 %v2156_v58, %v4954_v23  ;;  %v2166_v31 = vadd.f32 %v2157_v63, %v2093_v52  ;;  %v2532_v56 = vmul.f32 %v2531_v49, %v4892_v26 }
 0x266   : >> { %v2533_v59 = vmul.f32 %v2531_v49, %v4894_v27  ;;  %v2535_v0 = vmul.f32 %v2531_v49, %v4902_v32  ;;  %v2536_v6 = vmul.f32 %v2531_v49, %v4906_v34 }
 0x269   : >> { %2510 = vrot.lane.b32.xlu1 %v2498_v28, %s4555_s24  ;;  %2508 = vrot.lane.b32.xlu0 %v2497_v35, %s4555_s24 }
 0x26a   : >> { %2512 = vrot.lane.b32.xlu2 %v2499_v37, %s4555_s24 }
 0x26b   : >> { %v2183_v46 = vpop.permute.xlu1 %2182  ;;  %v2154_v42 = vpop.permute.xlu0 %2153 }
 0x26c   : >> { %v2192_v43 = vsel %vm2155_vm4, %v2183_v46, %v4984_v45  ;;  %v2159_v23 = vsel %vm2155_vm4, %v4969_v47, %v2154_v42  ;;  %v2169_v48 = vadd.f32 %v2154_v42, %v4929_v62  ;;  %v2256_v52 = vpop.permute.xlu2 %2255 }
 0x26d   : >> { %v5030_v53 = vadd.f32 %v2192_v43, %v2128_v5  ;;  %v2168_v55 = vadd.f32 %v2159_v23, %v4972_v50  ;;  %v2534_v5 = vmul.f32 %v2531_v49, %v4904_v33 }
 0x271   : >> { %2542 = vrot.lane.b32.xlu1 %v2532_v56, %s4556_s26  ;;  %2514 = vrot.lane.b32.xlu0 %v2500_v57, %s4555_s24  ;;  %s4018_s24 = sld [smem:[#allocation8 + $0x5]] }
 0x272   : >> { %2544 = vrot.lane.b32.xlu2 %v2533_v59, %s4556_s26 }
 0x273   : >> { %v2189_v47 = vpop.permute.xlu1 %2188  ;;  %v2187_v62 = vpop.permute.xlu0 %2186 }
 0x274   : >> { %v2195_v51 = vsel %vm2155_vm4, %v2189_v47, %v2191_v44  ;;  %v2193_v50 = vsel %vm2155_vm4, %v4984_v45, %v2187_v62  ;;  %v2194_v60 = vsel %vm2155_vm4, %v2187_v62, %v2189_v47  ;;  %v2262_v61 = vpop.permute.xlu2 %2261  ;;  %v2567_v45 = vstv %s4027_s20 }
 0x275   : >> { %v2204_v40 = vadd.f32 %v2195_v51, %v2131_v21  ;;  %v2202_v1 = vadd.f32 %v2193_v50, %v4986_v39  ;;  %v2203_v3 = vadd.f32 %v2194_v60, %v2130_v14  ;;  %v2569_v13 = vmul.f32 %v2567_v45, %v4894_v27 }
 0x276   : >> { %v2568_v15 = vmul.f32 %v2567_v45, %v4892_v26  ;;  %v2570_v16 = vmul.f32 %v2567_v45, %v4904_v33  ;;  %v2572_v11 = vmul.f32 %v2567_v45, %v4906_v34  ;;  %v2571_v8 = vmul.f32 %v2567_v45, %v4902_v32 }
 0x277   : >> { %v2291_v17 = vstv %s4018_s24 }
 0x278   : >> { %v2296_v18 = vmul.f32 %v2291_v17, %v4906_v34  ;;  %v2292_v49 = vmul.f32 %v2291_v17, %v4892_v26  ;;  %v2295_v59 = vmul.f32 %v2291_v17, %v4902_v32  ;;  %v2294_v47 = vmul.f32 %v2291_v17, %v4904_v33 }
 0x279   : >> { %2548 = vrot.lane.b32.xlu1 %v2535_v0, %s4556_s26  ;;  %2546 = vrot.lane.b32.xlu0 %v2534_v5, %s4556_s26 }
 0x27a   : >> { %2550 = vrot.lane.b32.xlu2 %v2536_v6, %s4556_s26 }
 0x27b   : >> { %v2221_v7 = vpop.permute.xlu1 %2220  ;;  %v2219_v9 = vpop.permute.xlu0 %2218 }
 0x27c   : >> { %v2230_v2 = vsel %vm2228_vm5, %v2221_v7, %v5014_v36  ;;  %v2229_v39 = vsel %vm2228_vm5, %v2219_v9, %v2221_v7  ;;  %v2329_v10 = vpop.permute.xlu2 %2328 }
 0x27d   : >> { %v2239_v4 = vadd.f32 %v2230_v2, %v2166_v31  ;;  %v2238_v12 = vadd.f32 %v2229_v39, %v2165_v30 }
 0x27f   : >> { %v2297_v42 = vadd.f32 %v2292_v49, %v2238_v12 }
 0x281   : >> { %2580 = vrot.lane.b32.xlu1 %v2569_v13, %s4556_s26  ;;  %2578 = vrot.lane.b32.xlu0 %v2568_v15, %s4556_s26 }
 0x282   : >> { %2582 = vrot.lane.b32.xlu2 %v2570_v16, %s4556_s26 }
 0x283   : >> { %v2227_v41 = vpop.permute.xlu1 %2226  ;;  %v2225_v19 = vpop.permute.xlu0 %2224 }
 0x284   : >> { %v2242_v38 = vadd.f32 %v2227_v41, %v2169_v48  ;;  %v2231_v44 = vsel %vm2228_vm5, %v5014_v36, %v2225_v19  ;;  %v2232_v14 = vsel %vm2228_vm5, %v2225_v19, %v2227_v41  ;;  %v2335_v21 = vpop.permute.xlu2 %2334 }
 0x285   : >> { %v2240_v54 = vadd.f32 %v2231_v44, %v5017_v29  ;;  %v2241_v20 = vadd.f32 %v2232_v14, %v2168_v55 }
 0x286   : >> { %v2301_v22 = vadd.f32 %v2296_v18, %v2242_v38 }
 0x287   : >> { %v2300_v51 = vadd.f32 %v2295_v59, %v2241_v20  ;;  %v2299_v60 = vadd.f32 %v2294_v47, %v2240_v54 }
 0x288   : >> { %v5066_v25 = vadd.f32 %v2335_v21, %v2301_v22 }
 0x289   : >> { %2586 = vrot.lane.b32.xlu1 %v2572_v11, %s4556_s26  ;;  %2584 = vrot.lane.b32.xlu0 %v2571_v8, %s4556_s26  ;;  %s4019_s26 = sld [smem:[#allocation8 + $0x85]] }
 0x28b   : >> { %v2260_v58 = vpop.permute.xlu1 %2259  ;;  %v2258_v63 = vpop.permute.xlu0 %2257 }
 0x28c   : >> { %v2267_v36 = vsel %vm2228_vm5, %v2260_v58, %v2262_v61  ;;  %v2265_v28 = vsel %vm2228_vm5, %v2256_v52, %v2258_v63  ;;  %v2266_v29 = vsel %vm2228_vm5, %v2258_v63, %v2260_v58  ;;  %v2367_v30 = vpop.permute.xlu2 %2366 }
 0x28d   : >> { %v2276_v31 = vadd.f32 %v2267_v36, %v2203_v3  ;;  %v2274_v35 = vadd.f32 %v2265_v28, %v5030_v53  ;;  %v2275_v37 = vadd.f32 %v2266_v29, %v2202_v1  ;;  %v2293_v53 = vmul.f32 %v2291_v17, %v4894_v27 }
 0x28f   : >> { %v2298_v50 = vadd.f32 %v2293_v53, %v2239_v4  ;;  %v2303_v5 = vstv %s4019_s26 }
 0x290   : >> { %v2305_v7 = vmul.f32 %v2303_v5, %v4894_v27  ;;  %v2304_v9 = vmul.f32 %v2303_v5, %v4892_v26  ;;  %v2308_v18 = vmul.f32 %v2303_v5, %v4906_v34  ;;  %v2306_v41 = vmul.f32 %v2303_v5, %v4904_v33 }
 0x291   : >> { %v2307_v19 = vmul.f32 %v2303_v5, %v4902_v32 }
 0x292   : >> { %v2310_v39 = vadd.f32 %v2305_v7, %v2275_v37  ;;  %v2309_v12 = vadd.f32 %v2304_v9, %v2274_v35  ;;  %v2311_v26 = vadd.f32 %v2306_v41, %v2276_v31 }
 0x293   : >> { %v2327_v46 = vpop.permute.xlu1 %2326  ;;  %v2264_v43 = vpop.permute.xlu0 %2263 }
 0x294   : >> { %v2336_v23 = vsel %vm2009_vm2, %v2327_v46, %v2329_v10  ;;  %v2268_v48 = vsel %vm2228_vm5, %v2262_v61, %v2264_v43  ;;  %v2278_v55 = vadd.f32 %v2264_v43, %v5003_v24  ;;  %v2399_v56 = vpop.permute.xlu2 %2398 }
 0x295   : >> { %v2345_v52 = vadd.f32 %v2336_v23, %v2297_v42  ;;  %v2277_v57 = vadd.f32 %v2268_v48, %v2204_v40 }
 0x296   : >> { %v2313_v27 = vadd.f32 %v2308_v18, %v2278_v55 }
 0x297   : >> { %v2312_v44 = vadd.f32 %v2307_v19, %v2277_v57 }
 0x29b   : >> { %v2333_v62 = vpop.permute.xlu1 %2332  ;;  %v2331_v0 = vpop.permute.xlu0 %2330 }
 0x29c   : >> { %v2339_v1 = vsel %vm2009_vm2, %v2333_v62, %v2335_v21  ;;  %v2337_v61 = vsel %vm2009_vm2, %v2329_v10, %v2331_v0  ;;  %v2338_v24 = vsel %vm2009_vm2, %v2331_v0, %v2333_v62  ;;  %v2405_v3 = vpop.permute.xlu2 %2404 }
 0x29d   : >> { %v2348_v40 = vadd.f32 %v2339_v1, %v2300_v51  ;;  %v5084_v6 = vadd.f32 %v2337_v61, %v2298_v50  ;;  %v2347_v45 = vadd.f32 %v2338_v24, %v2299_v60  ;;  %v2603_v1 = vstv %s4028_s6 }
 0x2a3   : >> { %v2365_v2 = vpop.permute.xlu1 %2364  ;;  %v2363_v4 = vpop.permute.xlu0 %2362 }
 0x2a4   : >> { %v2373_v13 = vsel %vm2009_vm2, %v2365_v2, %v2367_v30  ;;  %v2372_v10 = vsel %vm2009_vm2, %v2363_v4, %v2365_v2  ;;  %v2437_v15 = vpop.permute.xlu2 %2436 }
 0x2a5   : >> { %v2382_v16 = vadd.f32 %v2373_v13, %v2310_v39  ;;  %v2381_v17 = vadd.f32 %v2372_v10, %v2309_v12 }
 0x2ab   : >> { %v2371_v38 = vpop.permute.xlu1 %2370  ;;  %v2369_v14 = vpop.permute.xlu0 %2368 }
 0x2ac   : >> { %v2385_v21 = vadd.f32 %v2371_v38, %v2313_v27  ;;  %v2374_v54 = vsel %vm2009_vm2, %v2367_v30, %v2369_v14  ;;  %v2375_v20 = vsel %vm2009_vm2, %v2369_v14, %v2371_v38  ;;  %v2443_v11 = vpop.permute.xlu2 %2442 }
 0x2ad   : >> { %v5095_v8 = vadd.f32 %v2374_v54, %v2311_v26  ;;  %v2384_v22 = vadd.f32 %v2375_v20, %v2312_v44 }
 0x2ae   : >> { %v5097_v58 = vadd.f32 %v2443_v11, %v2385_v21 }
 0x2b3   : >> { %v2403_v34 = vpop.permute.xlu1 %2402  ;;  %v2401_v33 = vpop.permute.xlu0 %2400 }
 0x2b4   : >> { %v2410_v32 = vsel %vm2082_vm3, %v2403_v34, %v2405_v3  ;;  %v2408_v63 = vsel %vm2082_vm3, %v2399_v56, %v2401_v33  ;;  %v2475_v36 = vpop.permute.xlu2 %2474  ;;  %v2409_v4 = vsel %vm2082_vm3, %v2401_v33, %v2403_v34 }
 0x2b5   : >> { %v2419_v28 = vadd.f32 %v2410_v32, %v2347_v45  ;;  %v2417_v29 = vadd.f32 %v2408_v63, %v2345_v52 }
 0x2bb   : >> { %v2435_v31 = vpop.permute.xlu1 %2434  ;;  %v2407_v35 = vpop.permute.xlu0 %2406 }
 0x2bc   : >> { %v2444_v30 = vsel %vm2082_vm3, %v2435_v31, %v2437_v15  ;;  %v2411_v37 = vsel %vm2082_vm3, %v2405_v3, %v2407_v35  ;;  %v2507_v49 = vpop.permute.xlu2 %2506  ;;  %v2421_v62 = vadd.f32 %v2407_v35, %v5066_v25 }
 0x2bd   : >> { %v2453_v46 = vadd.f32 %v2444_v30, %v2381_v17  ;;  %v2420_v42 = vadd.f32 %v2411_v37, %v2348_v40  ;;  %v2623_v37 = vstv %s4030_s10 }
 0x2c3   : >> { %v5103_v43 = vpop.permute.xlu1 %2440  ;;  %v5105_v23 = vpop.permute.xlu0 %2438 }
 0x2c4   : >> { %v2447_v48 = vsel %vm2082_vm3, %v5103_v43, %v2443_v11  ;;  %v2445_v55 = vsel %vm2082_vm3, %v2437_v15, %v5105_v23  ;;  %v5111_v56 = vpop.permute.xlu2 %2512 }
 0x2c5   : >> { %v5113_v52 = vadd.f32 %v2447_v48, %v2384_v22  ;;  %v2454_v57 = vadd.f32 %v2445_v55, %v2382_v16  ;;  %v2418_v16 = vadd.f32 %v2409_v4, %v5084_v6  ;;  %v4357_v4 = vld [vmem:[%s5331_s2 + $0x70] sm:$0xff] (%p1948_p13) }
 0x2cb   : >> { %v2473_v59 = vpop.permute.xlu1 %2472  ;;  %v2471_v53 = vpop.permute.xlu0 %2470 }
 0x2cc   : >> { %v2545_v47 = vpop.permute.xlu2 %2544  ;;  %v2480_v45 = vsel %vm2155_vm4, %v2471_v53, %v2473_v59  ;;  %v2481_v13 = vsel %vm2155_vm4, %v2473_v59, %v2475_v36  ;;  %v2446_v59 = vsel %vm2082_vm3, %v5105_v23, %v5103_v43 }
 0x2cd   : >> { %v2489_v25 = vadd.f32 %v2480_v45, %v2417_v29  ;;  %v2490_v18 = vadd.f32 %v2481_v13, %v2418_v16  ;;  %v5178_v13 = vld [vmem:[%s5331_s2 + $0xf8] sm:$0xff] (%p1948_p13)  ;;  %v4356_v16 = vld [vmem:[%s5331_s2 + $0x68] sm:$0xff] (%p1948_p13) }
 0x2ce   : > { %3003 = vmatpush.bf16.msrb.mxu0 (%p1948_p13), %v5178_v13 }
 0x2d3   : >> { %v2479_v51 = vpop.permute.xlu1 %2478  ;;  %v2477_v50 = vpop.permute.xlu0 %2476 }
 0x2d4   : >> { %v2493_v60 = vadd.f32 %v2479_v51, %v2421_v62  ;;  %v2551_v0 = vpop.permute.xlu2 %2550  ;;  %v2482_v10 = vsel %vm2155_vm4, %v2475_v36, %v2477_v50  ;;  %v2483_v15 = vsel %vm2155_vm4, %v2477_v50, %v2479_v51  ;;  %v2455_v62 = vadd.f32 %v2446_v59, %v5095_v8 }
 0x2d5   : >> { %v2491_v41 = vadd.f32 %v2482_v10, %v2419_v28  ;;  %v2492_v19 = vadd.f32 %v2483_v15, %v2420_v42  ;;  %v5184_v10 = vld [vmem:[%s5331_s2 + $0xf0] sm:$0xff] (%p1948_p13)  ;;  %v4348_v15 = vld [vmem:[%s5331_s2 + $0x28] sm:$0xff] (%p1948_p13) }
 0x2d6   : >> { %v2565_v61 = vadd.f32 %v2551_v0, %v2493_v60  ;;  %3004 = vmatpush.bf16.msrb.mxu0 (%p1948_p13), %v5184_v10 }
 0x2d8   : >> { %v2608_v24 = vadd.f32 %v2603_v1, %v2565_v61 }
 0x2da   : >> { %v2613_v3 = vmax.f32 %v2608_v24, 0.0 }
 0x2db   : >> { %v2511_v5 = vpop.permute.xlu1 %2510  ;;  %v2509_v40 = vpop.permute.xlu0 %2508 }
 0x2dc   : >> { %2621 = vst.msk [vmem:[%s5118_s28 + $0x20] sm:$0xff] %vm2620_vm6, %v2613_v3  ;;  %v2516_v34 = vsel %vm2155_vm4, %v2507_v49, %v2509_v40  ;;  %v2517_v33 = vsel %vm2155_vm4, %v2509_v40, %v2511_v5  ;;  %v2583_v28 = vpop.permute.xlu2 %2582 }
 0x2dd   : >> { %v2525_v29 = vadd.f32 %v2516_v34, %v2453_v46  ;;  %v2526_v31 = vadd.f32 %v2517_v33, %v2454_v57  ;;  %v2518_v57 = vsel %vm2155_vm4, %v2511_v5, %v5111_v56  ;;  %v4344_v33 = vld [vmem:[%s5331_s2 + $0x8] sm:$0xff] (%p1948_p13) }
 0x2e3   : >> { %v2543_v7 = vpop.permute.xlu1 %2542  ;;  %v2515_v9 = vpop.permute.xlu0 %2514 }
 0x2e4   : >> { %v2552_v2 = vsel %vm2228_vm5, %v2543_v7, %v2545_v47  ;;  %v2529_v60 = vadd.f32 %v2515_v9, %v5097_v58 }
 0x2e5   : >> { %v2561_v39 = vadd.f32 %v2552_v2, %v2489_v25  ;;  %v4366_v2 = vld [vmem:[%s5331_s2 + $0xb8] sm:$0xff] (%p1948_p13) }
 0x2e6   : > { %2984 = vmatpush.bf16.msra.mxu3 (%p1948_p13), %v4366_v2 }
 0x2e7   : >> { %v2604_v12 = vadd.f32 %v2603_v1, %v2561_v39  ;;  %v4349_v39 = vld [vmem:[%s5331_s2 + $0x30] sm:$0xff] (%p1948_p13) }
 0x2e9   : >> { %v2609_v17 = vmax.f32 %v2604_v12, 0.0  ;;  %v4365_v12 = vld [vmem:[%s5331_s2 + $0xb0] sm:$0xff] (%p1948_p13) }
 0x2ea   : > { %2985 = vmatpush.bf16.msra.mxu3 (%p1948_p13), %v4365_v12 }
 0x2eb   : >> { %2616 = vst [vmem:[%s5118_s28] sm:$0xff] %v2609_v17  ;;  %v2549_v27 = vpop.permute.xlu1 %2548  ;;  %v2547_v38 = vpop.permute.xlu0 %2546  ;;  %v4364_v17 = vld [vmem:[%s5331_s2 + $0xa8] sm:$0xff] (%p1948_p13) }
 0x2ec   : >> { %v2555_v26 = vsel %vm2228_vm5, %v2549_v27, %v2551_v0  ;;  %v2553_v44 = vsel %vm2228_vm5, %v2545_v47, %v2547_v38  ;;  %v2554_v14 = vsel %vm2228_vm5, %v2547_v38, %v2549_v27  ;;  %v2519_v47 = vsel %vm2155_vm4, %v5111_v56, %v2515_v9  ;;  %v4358_v9 = vld [vmem:[%s5331_s2 + $0x78] sm:$0xff] (%p1948_p13)  ;;  %v4363_v27 = vld [vmem:[%s5331_s2 + $0xa0] sm:$0xff] (%p1948_p13) }
 0x2ed   : >> { %v2564_v21 = vadd.f32 %v2555_v26, %v2492_v19  ;;  %v2562_v54 = vadd.f32 %v2553_v44, %v2490_v18  ;;  %v2563_v20 = vadd.f32 %v2554_v14, %v2491_v41  ;;  %v2527_v0 = vadd.f32 %v2518_v57, %v2455_v62  ;;  %2965 = vmatpush.bf16.msra.mxu2 (%p1948_p13), %v4358_v9  ;;  %v5199_v18 = vld [vmem:[%s5331_s2 + $0xe8] sm:$0xff] (%p1948_p13)  ;;  %v4347_v41 = vld [vmem:[%s5331_s2 + $0x20] sm:$0xff] (%p1948_p13)  ;;  %v4346_v26 = vld [vmem:[%s5331_s2 + $0x18] sm:$0xff] (%p1948_p13) }
 0x2ee   : > { %v4355_v19 = vld [vmem:[%s5331_s2 + $0x60] sm:$0xff] (%p1948_p13)  ;;  %2986 = vmatpush.bf16.msra.mxu3 (%p1948_p13), %v4364_v17  ;;  %3005 = vmatpush.bf16.msrb.mxu0 (%p1948_p13), %v5199_v18  ;;  %v4354_v44 = vld [vmem:[%s5331_s2 + $0x58] sm:$0xff] (%p1948_p13) }
 0x2ef   : >> { %v2607_v6 = vadd.f32 %v2603_v1, %v2564_v21  ;;  %v2605_v11 = vadd.f32 %v2603_v1, %v2562_v54  ;;  %v2606_v22 = vadd.f32 %v2603_v1, %v2563_v20  ;;  %v2528_v1 = vadd.f32 %v2519_v47, %v5113_v52  ;;  %v4350_v52 = vld [vmem:[%s5331_s2 + $0x38] sm:$0xff] (%p1948_p13)  ;;  %v5214_v38 = vld [vmem:[%s5331_s2 + $0xe0] sm:$0xff] (%p1948_p13)  ;;  %v4345_v54 = vld [vmem:[%s5331_s2 + $0x10] sm:$0xff] (%p1948_p13) }
 0x2f0   : > { %2946 = vmatpush.bf16.msra.mxu1 (%p1948_p13), %v4350_v52  ;;  %v4362_v14 = vld [vmem:[%s5331_s2 + $0x98] sm:$0xff] (%p1948_p13)  ;;  %v4353_v20 = vld [vmem:[%s5331_s2 + $0x50] sm:$0xff] (%p1948_p13)  ;;  %v4367_v47 = vld [vmem:[%s5331_s2 + $0xc0] sm:$0xff] (%p1948_p13) }
 0x2f1   : >> { %v2612_v32 = vmax.f32 %v2607_v6, 0.0  ;;  %v2610_v63 = vmax.f32 %v2605_v11, 0.0  ;;  %v2611_v36 = vmax.f32 %v2606_v22, 0.0  ;;  %2966 = vmatpush.bf16.msra.mxu2 (%p1948_p13), %v4357_v4  ;;  %v5229_v21 = vld [vmem:[%s5331_s2 + $0xd8] sm:$0xff] (%p1948_p13)  ;;  %v2735_v6 = vld [vmem:[%s5331_s2 + $0x100] sm:$0x3] (%p1948_p13) }
 0x2f2   : > { %2987 = vmatpush.bf16.msra.mxu3 (%p1948_p13), %v4363_v27  ;;  %3006 = vmatpush.bf16.msrb.mxu0 (%p1948_p13), %v5214_v38  ;;  %v4361_v11 = vld [vmem:[%s5331_s2 + $0x90] sm:$0xff] (%p1948_p13)  ;;  %v2869_v34 = vunpack.c.l.b16 (%p1948_p13), %v2735_v6 }
 0x2f3   : >> { %2619 = vst [vmem:[%s5118_s28 + $0x18] sm:$0xff] %v2612_v32  ;;  %v2581_v35 = vpop.permute.xlu1 %2580  ;;  %v2579_v30 = vpop.permute.xlu0 %2578  ;;  %v4369_v22 = vld [vmem:[%s5331_s2 + $0xd0] sm:$0xff] (%p1948_p13)  ;;  %v4352_v32 = vld [vmem:[%s5331_s2 + $0x48] sm:$0xff] (%p1948_p13) }
 0x2f4   : >> { %2617 = vst [vmem:[%s5118_s28 + $0x8] sm:$0xff] %v2610_v63  ;;  %v2589_v42 = vsel %vm2228_vm5, %v2581_v35, %v2583_v28  ;;  %v2588_v48 = vsel %vm2228_vm5, %v2579_v30, %v2581_v35  ;;  %2947 = vmatpush.bf16.msra.mxu1 (%p1948_p13), %v4349_v39  ;;  %v4360_v63 = vld [vmem:[%s5331_s2 + $0x88] sm:$0xff] (%p1948_p13) }
 0x2f5   : >> { %2618 = vst [vmem:[%s5118_s28 + $0x10] sm:$0xff] %v2611_v36  ;;  %v2598_v49 = vadd.f32 %v2589_v42, %v2526_v31  ;;  %v2597_v55 = vadd.f32 %v2588_v48, %v2525_v29  ;;  %2967 = vmatpush.bf16.msra.mxu2 (%p1948_p13), %v4356_v16  ;;  %v4343_v36 = vld [vmem:[%s5331_s2] sm:$0xff] (%p1948_p13)  ;;  %v2902_v31 = vpack.c.b16 (%p1948_p13), %v2869_v34, %v2869_v34  ;;  %v4368_v35 = vld [vmem:[%s5331_s2 + $0xc8] sm:$0xff] (%p1948_p13) }
 0x2f6   : > { %2988 = vmatpush.bf16.msra.mxu3 (%p1948_p13), %v4362_v14  ;;  %3007 = vmatpush.bf16.msrb.mxu0 (%p1948_p13), %v5229_v21  ;;  %v4359_v48 = vld [vmem:[%s5331_s2 + $0x80] sm:$0xff] (%p1948_p13) }
 0x2f7   : >> { %v2625_v53 = vadd.f32 %v2623_v37, %v2598_v49  ;;  %v2624_v46 = vadd.f32 %v2623_v37, %v2597_v55 }
 0x2f8   : > { %2948 = vmatpush.bf16.msra.mxu1 (%p1948_p13), %v4348_v15 }
 0x2f9   : >> { %v2630_v51 = vmax.f32 %v2625_v53, 0.0  ;;  %v2629_v50 = vmax.f32 %v2624_v46, 0.0  ;;  %2968 = vmatpush.bf16.msra.mxu2 (%p1948_p13), %v4355_v19  ;;  %v2944_v46 = vsel (%p1948_p13), %vm2942_vm7, %v2902_v31, 0 }
 0x2fa   : > { %2989 = vmatpush.bf16.msra.mxu3 (%p1948_p13), %v4361_v11  ;;  %3008 = vmatpush.bf16.msrb.mxu0 (%p1948_p13), %v4369_v22 }
 0x2fb   : >> { %2637 = vst [vmem:[%s2635_s11 + $0x8] sm:$0xff] %v2630_v51  ;;  %v2587_v43 = vpop.permute.xlu1 %2586  ;;  %v2585_v23 = vpop.permute.xlu0 %2584 }
 0x2fc   : >> { %2636 = vst [vmem:[%s2635_s11] sm:$0xff] %v2629_v50  ;;  %v2601_v61 = vadd.f32 %v2587_v43, %v2529_v60  ;;  %v2590_v24 = vsel %vm2228_vm5, %v2583_v28, %v2585_v23  ;;  %v2591_v3 = vsel %vm2228_vm5, %v2585_v23, %v2587_v43  ;;  %2949 = vmatpush.bf16.msra.mxu1 (%p1948_p13), %v4347_v41  ;;  %v4351_v28 = vld [vmem:[%s5331_s2 + $0x40] sm:$0xff] (%p1948_p13) }
 0x2fd   : >> { %v2599_v56 = vadd.f32 %v2590_v24, %v2527_v0  ;;  %v2600_v5 = vadd.f32 %v2591_v3, %v2528_v1  ;;  %2969 = vmatpush.bf16.msra.mxu2 (%p1948_p13), %v4354_v44 }
 0x2fe   : >> { %v2628_v8 = vadd.f32 %v2623_v37, %v2601_v61  ;;  %2990 = vmatpush.bf16.msra.mxu3 (%p1948_p13), %v4360_v63  ;;  %3009 = vmatpush.bf16.msrb.mxu0 (%p1948_p13), %v4368_v35 }
 0x2ff   : >> { %v2626_v40 = vadd.f32 %v2623_v37, %v2599_v56  ;;  %v2627_v45 = vadd.f32 %v2623_v37, %v2600_v5 }
 0x300   : >> { %v2633_v25 = vmax.f32 %v2628_v8, 0.0  ;;  %1950 = sbr.rel (!%p1948_p13) target bundleno = 432 (0x1b0), region = 167  ;;  %2950 = vmatpush.bf16.msra.mxu1 (%p1948_p13), %v4346_v26 }
 0x301   : >> { %v2631_v58 = vmax.f32 %v2626_v40, 0.0  ;;  %v2632_v7 = vmax.f32 %v2627_v45, 0.0  ;;  %2970 = vmatpush.bf16.msra.mxu2 (%p1948_p13), %v4353_v20 }
 0x302   : >> { %2640 = vst.msk [vmem:[%s2635_s11 + $0x20] sm:$0xff] %vm2620_vm6, %v2633_v25  ;;  %2991 = vmatpush.bf16.msra.mxu3 (%p1948_p13), %v4359_v48  ;;  %3010 = vmatpush.bf16.msrb.mxu0 (%p1948_p13), %v4367_v47 }
 0x303   : >> { %2638 = vst [vmem:[%s2635_s11 + $0x10] sm:$0xff] %v2631_v58 }
 0x304   : >> { %2639 = vst [vmem:[%s2635_s11 + $0x18] sm:$0xff] %v2632_v7  ;;  %2951 = vmatpush.bf16.msra.mxu1 (%p1948_p13), %v4345_v54 }
 0x305   : > { %2971 = vmatpush.bf16.msra.mxu2 %v4352_v32  ;;  %s4375_s16 = sshll.u32 (%p4622_p5), %s4603_s21, 4 }
 0x306   : > { %4384 = vmatpush.bf16.msrb.mxu3 %v2944_v46  ;;  %s3152_s26 = scalar_lea.vmem (%p4622_p5), %s5334_s5, %s4375_s16 }
 0x308   : > { %2952 = vmatpush.bf16.msra.mxu1 %v4344_v33 }
 0x309   : > { %2972 = vmatpush.bf16.msra.mxu2 %v4351_v28 }
 0x30b   : > { %v2641_v29 = vld [vmem:[#allocation3] sm:$0xff]  ;;  %v2646_v30 = vld [vmem:[#allocation3 + $0x28] sm:$0xff]  ;;  %v2647_v42 = vld [vmem:[#allocation3 + $0x30] sm:$0xff] }
 0x30c   : > { %v2642_v37 = vld [vmem:[#allocation3 + $0x8] sm:$0xff]  ;;  %v2643_v49 = vld [vmem:[#allocation3 + $0x10] sm:$0xff]  ;;  %v2648_v55 = vld [vmem:[#allocation3 + $0x38] sm:$0xff]  ;;  %v2661_v59 = vpack.c.bf16 %v2646_v30, %v2641_v29  ;;  %2953 = vmatpush.bf16.msra.mxu1 %v4343_v36 }
 0x30d   : > { %v2662_v53 = vpack.c.bf16 %v2647_v42, %v2642_v37  ;;  %v2663_v57 = vpack.c.bf16 %v2648_v55, %v2643_v49  ;;  %v2644_v62 = vld [vmem:[#allocation3 + $0x18] sm:$0xff]  ;;  %v2649_v51 = vld [vmem:[#allocation3 + $0x40] sm:$0xff]  ;;  %4376 = vmatpush.bf16.msrb.mxu2 %v5178_v13  ;;  %v2651_v60 = vld [vmem:[#allocation3 + $0x50] sm:$0xff] }
 0x30e   : > { %v2664_v50 = vpack.c.bf16 %v2649_v51, %v2644_v62  ;;  %v2656_v0 = vld [vmem:[#allocation3 + $0x78] sm:$0xff]  ;;  %v2657_v43 = vld [vmem:[#allocation3 + $0x80] sm:$0xff]  ;;  %v2658_v61 = vld [vmem:[#allocation3 + $0x88] sm:$0xff] }
 0x30f   : > { %2954 = vmatmul.bf16.vlgmr.msra.gmra.mxu1 %v2661_v59  ;;  %2973 = vmatmul.bf16.vlgmr.msra.gmra.mxu2 %v2662_v53  ;;  %v2652_v1 = vld [vmem:[#allocation3 + $0x58] sm:$0xff]  ;;  %v2653_v23 = vld [vmem:[#allocation3 + $0x60] sm:$0xff]  ;;  %v2666_v24 = vpack.c.bf16 %v2656_v0, %v2651_v60  ;;  %v2654_v5 = vld [vmem:[#allocation3 + $0x68] sm:$0xff] }
 0x310   : > { %3029 = vmatpush.bf16.msrb.mxu1 %v2944_v46  ;;  %2992 = vmatmul.bf16.vlgmr.msra.gmra.mxu3 %v2663_v57  ;;  %v2667_v3 = vpack.c.bf16 %v2657_v43, %v2652_v1  ;;  %v2668_v56 = vpack.c.bf16 %v2658_v61, %v2653_v23  ;;  %v2659_v8 = vld [vmem:[#allocation3 + $0x90] sm:$0xff]  ;;  %v2645_v40 = vld [vmem:[#allocation3 + $0x20] sm:$0xff]  ;;  %v2650_v45 = vld [vmem:[#allocation3 + $0x48] sm:$0xff] }
 0x311   : > { %4377 = vmatpush.bf16.msrb.mxu2 %v5184_v10  ;;  %3011 = vmatmul.bf16.vlgmr.msrb.gmra.mxu0 %v2664_v50  ;;  %v2655_v25 = vld [vmem:[#allocation3 + $0x70] sm:$0xff]  ;;  %v2660_v58 = vld [vmem:[#allocation3 + $0x98] sm:$0xff]  ;;  %v2669_v7 = vpack.c.bf16 %v2659_v8, %v2654_v5  ;;  %v2665_v52 = vpack.c.bf16 %v2650_v45, %v2645_v40  ;;  %v4447_v10 = vld [vmem:[%s5332_s3] ss:$0 sm:$0xff] }
 0x312   : > { %v2670_v9 = vpack.c.bf16 %v2660_v58, %v2655_v25 }
 0x315   : > { %4378 = vmatpush.bf16.msrb.mxu2 %v5199_v18 }
 0x319   : > { %4379 = vmatpush.bf16.msrb.mxu2 %v5214_v38 }
 0x31d   : > { %4380 = vmatpush.bf16.msrb.mxu2 %v5229_v21 }
 0x31f   : > { %2959 = vmatmul.bf16.gmra.mxu1 %v2666_v24  ;;  %2978 = vmatmul.bf16.gmra.mxu2 %v2667_v3 }
 0x320   : > { %2997 = vmatmul.bf16.gmra.mxu3 %v2668_v56 }
 0x321   : > { %4381 = vmatpush.bf16.msrb.mxu2 %v4369_v22 }
 0x325   : > { %4382 = vmatpush.bf16.msrb.mxu2 %v4368_v35 }
 0x329   : > { %4383 = vmatpush.bf16.msrb.mxu2 %v4367_v47 }
 0x32f   : > { %3016 = vmatmul.bf16.vlgmr.msrb.gmra.mxu2 %v2669_v7  ;;  %4160 = vmatmul.msk.bf16.vlgmr.msrb.gmra.mxu1 %vm2620_vm6, %v2665_v52 }
 0x330   : > { %4161 = vmatmul.msk.bf16.vlgmr.msrb.gmra.mxu3 %vm2620_vm6, %v2670_v9 }
 0x38c   : > { %v2955_v2 = vpop.f32.mrf.mxu1 }
 0x38d   : > { %v2956_v17 = vadd.f32 %v4447_v10, %v2955_v2 }
 0x38e   : > { %v3012_v38 = vpop.f32.mrf.mxu0 }
 0x392   : > { %v2974_v39 = vpop.f32.mrf.mxu2 }
 0x393   : > { %v2993_v4 = vpop.f32.mrf.mxu3  ;;  %v2975_v41 = vadd.f32 %v2974_v39, %v2956_v17 }
 0x394   : > { %v2957_v12 = vpop.f32.mrf.mxu1 }
 0x395   : > { %v2994_v26 = vadd.f32 %v2993_v4, %v2975_v41  ;;  %v2958_v44 = vadd.f32 %v4447_v10, %v2957_v12 }
 0x396   : > { %v3014_v63 = vpop.f32.mrf.mxu0 }
 0x397   : > { %v3013_v54 = vadd.f32 %v3012_v38, %v2994_v26 }
 0x39a   : > { %v2976_v13 = vpop.f32.mrf.mxu2 }
 0x39b   : > { %v2995_v15 = vpop.f32.mrf.mxu3  ;;  %v2977_v20 = vadd.f32 %v2976_v13, %v2958_v44 }
 0x39c   : > { %v2960_v16 = vpop.f32.mrf.mxu1 }
 0x39d   : > { %v2961_v14 = vadd.f32 %v4447_v10, %v2960_v16  ;;  %v2996_v33 = vadd.f32 %v2995_v15, %v2977_v20 }
 0x39f   : > { %v3015_v29 = vadd.f32 %v3014_v63, %v2996_v33 }
 0x3a2   : > { %v2979_v18 = vpop.f32.mrf.mxu2 }
 0x3a3   : > { %v2998_v19 = vpop.f32.mrf.mxu3  ;;  %v2980_v22 = vadd.f32 %v2979_v18, %v2961_v14 }
 0x3a4   : > { %v2962_v27 = vpop.f32.mrf.mxu1 }
 0x3a5   : > { %v2999_v36 = vadd.f32 %v2998_v19, %v2980_v22  ;;  %v2963_v31 = vadd.f32 %v4447_v10, %v2962_v27 }
 0x3aa   : > { %v2981_v21 = vpop.f32.mrf.mxu2 }
 0x3ab   : > { %v3000_v6 = vpop.f32.mrf.mxu3  ;;  %v2982_v42 = vadd.f32 %v2981_v21, %v2963_v31 }
 0x3ac   : > { %v3031_v11 = vpop.f32.mrf.mxu1 }
 0x3ad   : > { %v3032_v34 = vadd.f32 %v3031_v11, %v3013_v54  ;;  %v3001_v53 = vadd.f32 %v3000_v6, %v2982_v42 }
 0x3af   : > { %v3042_v32 = vsel %vm3041_vm8, %v3032_v34, -inf }
 0x3b0   : > { %3043 = vmax.xlane.f32.xlu0 %v3042_v32 }
 0x3b2   : > { %v3017_v28 = vpop.f32.mrf.mxu2 }
 0x3b3   : > { %v3018_v35 = vadd.f32 %v3017_v28, %v2999_v36  ;;  %v3036_v30 = vpop.f32.mrf.mxu3 }
 0x3b4   : > { %v3033_v37 = vpop.f32.mrf.mxu1 }
 0x3b5   : > { %v3037_v48 = vadd.f32 %v3036_v30, %v3018_v35  ;;  %v3034_v49 = vadd.f32 %v3033_v37, %v3015_v29 }
 0x3b7   : > { %v3048_v55 = vsel %vm3041_vm8, %v3037_v48, -inf  ;;  %v3045_v59 = vsel %vm3041_vm8, %v3034_v49, -inf }
 0x3b8   : > { %3049 = vmax.xlane.f32.xlu1 %v3048_v55  ;;  %3046 = vmax.xlane.f32.xlu0 %v3045_v59 }
 0x3ba   : > { %v3019_v46 = vpop.f32.mrf.mxu2 }
 0x3bb   : > { %v3020_v57 = vadd.f32 %v3019_v46, %v3001_v53  ;;  %v3038_v47 = vpop.f32.mrf.mxu3 }
 0x3bd   : > { %v3039_v62 = vadd.f32 %v3038_v47, %v3020_v57 }
 0x3bf   : > { %v3051_v51 = vsel %vm3041_vm8, %v3039_v62, -inf }
 0x3c0   : > { %3052 = vmax.xlane.f32.xlu1 %v3051_v51 }
 0x423   : > { %v3044_v50 = vpop.xlane.xlu0 %3043 }
 0x424   : > { %v3054_v60 = vsub.f32 %v3032_v34, %v3044_v50 }
 0x426   : > { %v3058_v0 = vmul.f32 1.442695, %v3054_v60 }
 0x428   : > { %4448 = vpow2.f32 %v3058_v0 }
 0x42b   : > { %v3050_v1 = vpop.xlane.xlu1 %3049  ;;  %v3047_v43 = vpop.xlane.xlu0 %3046 }
 0x42c   : > { %v3056_v23 = vsub.f32 %v3037_v48, %v3050_v1  ;;  %v3055_v61 = vsub.f32 %v3034_v49, %v3047_v43 }
 0x42e   : > { %v4449_v24 = vpop.eup %4448  ;;  %v3062_v3 = vmul.f32 1.442695, %v3056_v23  ;;  %v3060_v56 = vmul.f32 1.442695, %v3055_v61 }
 0x42f   : > { %v3066_v5 = vsel %vm3041_vm8, %v4449_v24, 0.0 }
 0x430   : > { %4450 = vpow2.f32 %v3062_v3  ;;  %3067 = vadd.xlane.f32.xlu2 %v3066_v5 }
 0x431   : > { %4452 = vpow2.f32 %v3060_v56 }
 0x433   : > { %v3053_v8 = vpop.xlane.xlu1 %3052 }
 0x434   : > { %v3057_v40 = vsub.f32 %v3039_v62, %v3053_v8 }
 0x436   : > { %v5286_v45 = vpop.eup %4450  ;;  %v3064_v25 = vmul.f32 1.442695, %v3057_v40 }
 0x437   : > { %v5288_v58 = vpop.eup %4452  ;;  %v3072_v7 = vsel %vm3041_vm8, %v5286_v45, 0.0 }
 0x438   : > { %4454 = vpow2.f32 %v3064_v25  ;;  %3073 = vadd.xlane.f32.xlu0 %v3072_v7  ;;  %v3069_v52 = vsel %vm3041_vm8, %v5288_v58, 0.0 }
 0x439   : > { %3070 = vadd.xlane.f32.xlu2 %v3069_v52 }
 0x43e   : > { %v5294_v9 = vpop.eup %4454 }
 0x43f   : > { %v3075_v2 = vsel %vm3041_vm8, %v5294_v9, 0.0 }
 0x440   : > { %3076 = vadd.xlane.f32.xlu1 %v3075_v2 }
 0x4a3   : > { %v3068_v39 = vpop.xlane.xlu2 %3067 }
 0x4a4   : > { %4456 = vrcp.f32 %v3068_v39  ;;  %v3089_v16 = vand.u32 2147483648, %v3068_v39  ;;  %v3087_v18 = vand.u32 2147483647, %v3068_v39  ;;  %vm3083_vm10 = vweird.f32 %v3068_v39 }
 0x4a6   : > { %v3090_v27 = vor.u32 1.1754944e-38, %v3089_v16  ;;  %vm3088_vm12 = vcmp.eq.f32.partialorder %v3087_v18, 8.507059e+37 }
 0x4aa   : > { %v4457_v4 = vpop.eup %4456 }
 0x4ab   : > { %v3079_v12 = vmul.f32 %v4457_v4, %v3068_v39  ;;  %v3074_v13 = vpop.xlane.xlu0 %3073  ;;  %vm3084_vm9 = vweird.f32 %v4457_v4 }
 0x4ac   : > { %v3071_v10 = vpop.xlane.xlu2 %3070  ;;  %4458 = vrcp.f32 %v3074_v13  ;;  %vm3085_vm11 = vmor %vm3083_vm10, %vm3084_vm9  ;;  %v3119_v22 = vand.u32 2147483648, %v3074_v13  ;;  %v3117_v32 = vand.u32 2147483647, %v3074_v13  ;;  %vm3113_vm15 = vweird.f32 %v3074_v13 }
 0x4ad   : > { %v3080_v15 = vsub.f32 1.0, %v3079_v12  ;;  %4460 = vrcp.f32 %v3071_v10  ;;  %v3104_v34 = vand.u32 2147483648, %v3071_v10  ;;  %v3102_v36 = vand.u32 2147483647, %v3071_v10 }
 0x4ae   : > { %vm3098_vm0 = vweird.f32 %v3071_v10  ;;  %v3120_v35 = vor.u32 1.1754944e-38, %v3119_v22  ;;  %vm3118_vm3 = vcmp.eq.f32.partialorder %v3117_v32, 8.507059e+37 }
 0x4af   : > { %v3081_v17 = vmul.f32 %v4457_v4, %v3080_v15  ;;  %v3105_v30 = vor.u32 1.1754944e-38, %v3104_v34  ;;  %vm3103_vm4 = vcmp.eq.f32.partialorder %v3102_v36, 8.507059e+37 }
 0x4b1   : > { %v3082_v41 = vadd.f32 %v4457_v4, %v3081_v17 }
 0x4b2   : > { %v4459_v19 = vpop.eup %4458 }
 0x4b3   : > { %v4461_v38 = vpop.eup %4460  ;;  %v3086_v26 = vsel %vm3085_vm11, %v4457_v4, %v3082_v41  ;;  %v3109_v44 = vmul.f32 %v4459_v19, %v3074_v13  ;;  %v3077_v14 = vpop.xlane.xlu1 %3076  ;;  %vm3114_vm13 = vweird.f32 %v4459_v19 }
 0x4b4   : > { %v3091_v21 = vsel %vm3088_vm12, %v3090_v27, %v3086_v26  ;;  %v3094_v54 = vmul.f32 %v4461_v38, %v3071_v10  ;;  %4462 = vrcp.f32 %v3077_v14  ;;  %vm3099_vm14 = vweird.f32 %v4461_v38  ;;  %vm3115_vm1 = vmor %vm3113_vm15, %vm3114_vm13 }
 0x4b5   : > { %v3092_v20 = vmul.f32 %v4449_v24, %v3091_v21  ;;  %v3110_v6 = vsub.f32 1.0, %v3109_v44  ;;  %vm3100_vm2 = vmor %vm3098_vm0, %vm3099_vm14  ;;  %v3134_v57 = vand.u32 2147483648, %v3077_v14  ;;  %v3132_v62 = vand.u32 2147483647, %v3077_v14 }
 0x4b6   : > { %v3095_v11 = vsub.f32 1.0, %v3094_v54  ;;  %vm3128_vm6 = vweird.f32 %v3077_v14 }
 0x4b7   : > { %3138 = vst.msk [vmem:[%s4784_s18] sm:$0xff] %vm3041_vm8, %v3092_v20  ;;  %v3111_v33 = vmul.f32 %v4459_v19, %v3110_v6  ;;  %v3135_v50 = vor.u32 1.1754944e-38, %v3134_v57  ;;  %vm3133_vm9 = vcmp.eq.f32.partialorder %v3132_v62, 8.507059e+37 }
 0x4b8   : > { %v3096_v63 = vmul.f32 %v4461_v38, %v3095_v11 }
 0x4b9   : > { %v3112_v28 = vadd.f32 %v4459_v19, %v3111_v33 }
 0x4ba   : > { %v4463_v29 = vpop.eup %4462  ;;  %v3097_v31 = vadd.f32 %v4461_v38, %v3096_v63 }
 0x4bb   : > { %v3116_v37 = vsel %vm3115_vm1, %v4459_v19, %v3112_v28  ;;  %v3124_v42 = vmul.f32 %v4463_v29, %v3077_v14  ;;  %vm3129_vm5 = vweird.f32 %v4463_v29 }
 0x4bc   : > { %v3101_v48 = vsel %vm3100_vm2, %v4461_v38, %v3097_v31  ;;  %v3121_v49 = vsel %vm3118_vm3, %v3120_v35, %v3116_v37  ;;  %vm3130_vm7 = vmor %vm3128_vm6, %vm3129_vm5 }
 0x4bd   : > { %v3106_v55 = vsel %vm3103_vm4, %v3105_v30, %v3101_v48  ;;  %v3122_v59 = vmul.f32 %v5286_v45, %v3121_v49  ;;  %v3125_v53 = vsub.f32 1.0, %v3124_v42 }
 0x4be   : > { %v3107_v46 = vmul.f32 %v5288_v58, %v3106_v55  ;;  %v3187_v43 = vld [vmem:[%s4784_s18] sm:$0xff] (%p4622_p5) }
 0x4bf   : > { %4162 = vst.msk [vmem:[%s4784_s18 + $0x10] sm:$0xff] %vm3041_vm8, %v3122_v59  ;;  %v3126_v47 = vmul.f32 %v4463_v29, %v3125_v53 }
 0x4c0   : > { %3139 = vst.msk [vmem:[%s4784_s18 + $0x8] sm:$0xff] %vm3041_vm8, %v3107_v46 }
 0x4c1   : > { %v3127_v51 = vadd.f32 %v4463_v29, %v3126_v47  ;;  %3188 = vst [vmem:[%s3152_s26] sm:$0xff] (%p4622_p5), %v3187_v43 }
 0x4c3   : > { %v3131_v60 = vsel %vm3130_vm7, %v4463_v29, %v3127_v51  ;;  %3149 = sbr.rel (!%p4622_p5) target bundleno = 1232 (0x4d0), region = 85 }
 0x4c4   : > { %v3136_v0 = vsel %vm3133_vm9, %v3135_v50, %v3131_v60 }
 0x4c5   : > { %v3137_v1 = vmul.f32 %v5294_v9, %v3136_v0 }
 0x4c6   : > { %v3191_v61 = vld [vmem:[%s4784_s18 + $0x10] sm:$0xff] (%p4622_p5) }
 0x4c7   : > { %4163 = vst.msk [vmem:[%s4784_s18 + $0x18] sm:$0xff] %vm3041_vm8, %v3137_v1  ;;  %v3189_v23 = vld [vmem:[%s4784_s18 + $0x8] sm:$0xff] (%p4622_p5) }
 0x4c8   : > { %3190 = vst [vmem:[%s3152_s26 + $0x8] sm:$0xff] %v3189_v23 }
 0x4c9   : > { %3192 = vst [vmem:[%s3152_s26 + $0x30] sm:$0xff] %v3191_v61 }
 0x4ce   : > { %v3193_v24 = vld [vmem:[%s4784_s18 + $0x18] sm:$0xff] }
 0x4cf   : > { %3194 = vst [vmem:[%s3152_s26 + $0x38] sm:$0xff] %v3193_v24 }
 0x4d0 PF: > { %p14_p0 = scmp.ge.s32.totalorder %s4606_s22, 5   ;;  %s5338_s18 = smov %s4539_s19 }
 0x4d1   : > { %s5339_s19 = smov %s4616_s25  ;;  %s5340_s20 = smov %s4606_s22 }
 0x4d2   :  { %16 = sbr.rel (!%p14_p0) target bundleno = 3 (0x3), region = 178 }
 0x4d7   :  { %3210 = vsyncpa [#allocation6], 1 }
 0x4d8   :  { %3212 = vsyncpa [#allocation6 + $0x1], 1 }
 0x4d9   :  { %3213 = vsyncpa [#allocation7], 1 }
 0x4da   :  { %3215 = vsyncpa [#allocation7 + $0x1], 1 }

</bundles_post_ra>
